<compile_context>
chip_gen: v6e
topology: v6e:2x2x1
jax: 0.10.0
libtpu: 0.0.40
codegen_flags: <defaults>
</compile_context>

<pallas_src>
import functools

import jax
import jax.numpy as jnp
from jax.experimental import pallas as pl
from jax.experimental.pallas import tpu as pltpu


# ------------------------------------------------------------------
# Fused encoder kernel: grid = (num_layers,)
# ------------------------------------------------------------------

def _clip_encoder_kernel(
    patches_ref, conv_w_ref, pos_cls_ref, ln_pre_g_ref, ln_pre_b_ref,
    ln1_g_ref, ln1_b_ref, w_qkv_ref, b_qkv_ref, w_out_ref, b_out_ref,
    ln2_g_ref, ln2_b_ref, w_fc_ref, b_fc_ref, w_proj_ref, b_proj_ref,
    ln_post_g_ref, ln_post_b_ref, proj_w_ref, proj_b_ref,
    out_ref,                    # [B, output_dim]
    x_scratch,                  # VMEM [M, W] f32 residual stream (persists across layers)
    *, batch, seq, heads, head_dim, seq_real, eps):

    layer = pl.program_id(0)
    n_layers = pl.num_programs(0)
    B, S = batch, seq
    W = heads * head_dim

    def ln(v, g_ref, b_ref):
        v = v.astype(jnp.float32)
        mean = jnp.mean(v, axis=-1, keepdims=True)
        var = jnp.mean(jnp.square(v - mean), axis=-1, keepdims=True)
        return (v - mean) * jax.lax.rsqrt(var + eps) * g_ref[...] + b_ref[...]

    # ---- layer 0 only: conv patch-embed + CLS/pos-emb + ln_pre ----------------
    @pl.when(layer == 0)
    def _():
        pt = patches_ref[...].astype(jnp.bfloat16)                       # [M, Kp]
        emb = jnp.dot(pt, conv_w_ref[...], preferred_element_type=jnp.float32)
        x0 = emb + pos_cls_ref[...]                                      # [M, W] f32
        x_scratch[...] = ln(x0, ln_pre_g_ref, ln_pre_b_ref)

    x = x_scratch[...]                                                   # [M, W] f32

    # ---- attention half-block: ln_1 + QKV + MHSA + out-proj + residual --------
    h = ln(x, ln1_g_ref, ln1_b_ref)
    qkv = jnp.dot(h.astype(jnp.bfloat16), w_qkv_ref[...],
                  preferred_element_type=jnp.float32) + b_qkv_ref[...]   # [M, 3W]
    # attention scale is already folded into the Q columns of w_qkv / b_qkv.

    key_valid = jax.lax.broadcasted_iota(jnp.int32, (S, S), 1) < seq_real
    batch_outs = []
    for b in range(B):                       # static unroll; all data stays in vregs
        qkv_b = qkv[b * S:(b + 1) * S, :]                                # [S, 3W]
        head_outs = []
        for hh in range(heads):
            q = qkv_b[:, hh * head_dim:(hh + 1) * head_dim].astype(jnp.bfloat16)
            k = qkv_b[:, W + hh * head_dim:W + (hh + 1) * head_dim].astype(jnp.bfloat16)
            v = qkv_b[:, 2 * W + hh * head_dim:2 * W + (hh + 1) * head_dim].astype(jnp.bfloat16)
            s = jnp.einsum('qd,kd->qk', q, k,
                           preferred_element_type=jnp.float32)           # [S, S]
            s = jnp.where(key_valid, s, -1e30)                           # mask padded keys
            s = s - jnp.max(s, axis=-1, keepdims=True)
            p = jnp.exp(s)
            p = p / jnp.sum(p, axis=-1, keepdims=True)                   # exact softmax
            head_outs.append(jnp.dot(p.astype(jnp.bfloat16), v,
                                     preferred_element_type=jnp.float32))
        batch_outs.append(jnp.concatenate(head_outs, axis=-1))           # [S, W]
    attn = jnp.concatenate(batch_outs, axis=0)                           # [M, W]

    y = jnp.dot(attn.astype(jnp.bfloat16), w_out_ref[...],
                preferred_element_type=jnp.float32) + b_out_ref[...]
    x = x + y

    # ---- MLP half-block: ln_2 + fc + QuickGELU + proj + residual --------------
    h = ln(x, ln2_g_ref, ln2_b_ref)
    u = jnp.dot(h.astype(jnp.bfloat16), w_fc_ref[...],
                preferred_element_type=jnp.float32) + b_fc_ref[...]
    u = u * jax.nn.sigmoid(1.702 * u)                                    # QuickGELU, f32
    y = jnp.dot(u.astype(jnp.bfloat16), w_proj_ref[...],
                preferred_element_type=jnp.float32) + b_proj_ref[...]
    x = x + y

    x_scratch[...] = x

    # ---- last layer only: ln_post on CLS token + final projection -------------
    @pl.when(layer == n_layers - 1)
    def _():
        cls = jnp.concatenate([x[b * S:b * S + 1, :] for b in range(B)], axis=0)  # [B, W]
        hc = ln(cls, ln_post_g_ref, ln_post_b_ref)
        feats = jnp.dot(hc.astype(jnp.bfloat16), proj_w_ref[...],
                        preferred_element_type=jnp.float32) + proj_b_ref[...]
        out_ref[...] = feats.astype(out_ref.dtype)


# ------------------------------------------------------------------
# Parameters (f32 "PyTorch-like") and packing into kernel layout
# ------------------------------------------------------------------

class VisionConfig:
    image_size = 16
    patch_size = 4
    in_channels = 3
    width = 128          # transformer hidden size (lane-dense)
    layers = 2
    heads = 4            # head_dim = 32
    output_dim = 128     # final CLIP embedding dim (lane-dense)


def init_params(cfg, key):
    def nrm(k, shape, std=0.02):
        return std * jax.random.normal(k, shape, dtype=jnp.float32)

    W = cfg.width
    Kp = cfg.in_channels * cfg.patch_size ** 2
    n_patches = (cfg.image_size // cfg.patch_size) ** 2
    keys = iter(jax.random.split(key, 8 + 8 * cfg.layers))
    p = {
        "conv1_w": nrm(next(keys), (Kp, W)),                  # CLIP conv1 (bias=False)
        "class_embedding": nrm(next(keys), (W,)),
        "positional_embedding": nrm(next(keys), (n_patches + 1, W)),
        "ln_pre_g": jnp.ones((W,), jnp.float32),
        "ln_pre_b": jnp.zeros((W,), jnp.float32),
        "ln_post_g": jnp.ones((W,), jnp.float32),
        "ln_post_b": jnp.zeros((W,), jnp.float32),
        "proj": nrm(next(keys), (W, cfg.output_dim)),
        "proj_b": jnp.zeros((cfg.output_dim,), jnp.float32),
        "layers": [],
    }
    for _ in range(cfg.layers):
        p["layers"].append({
            "ln_1_g": jnp.ones((W,), jnp.float32),
            "ln_1_b": jnp.zeros((W,), jnp.float32),
            "attn_in_w": nrm(next(keys), (W, 3 * W)),
            "attn_in_b": jnp.zeros((3 * W,), jnp.float32),
            "attn_out_w": nrm(next(keys), (W, W)),
            "attn_out_b": jnp.zeros((W,), jnp.float32),
            "ln_2_g": jnp.ones((W,), jnp.float32),
            "ln_2_b": jnp.zeros((W,), jnp.float32),
            "mlp_fc_w": nrm(next(keys), (W, 4 * W)),
            "mlp_fc_b": jnp.zeros((4 * W,), jnp.float32),
            "mlp_proj_w": nrm(next(keys), (4 * W, W)),
            "mlp_proj_b": jnp.zeros((W,), jnp.float32),
        })
    return p


def pack_params(params, cfg):
    """Stack per-layer weights to [L,...], fold attention scale, cast MXU weights bf16."""
    W = cfg.width
    L = cfg.layers
    head_dim = W // cfg.heads
    scale = head_dim ** -0.5
    Kp = cfg.in_channels * cfg.patch_size ** 2
    Kp_pad = ((Kp + 127) // 128) * 128                 # lane-dense conv contraction
    n_patches = (cfg.image_size // cfg.patch_size) ** 2
    S_real = n_patches + 1
    S_pad = ((S_real + 15) // 16) * 16                 # multiple of 16 (bf16 sublane tile)

    conv_w = jnp.zeros((Kp_pad, W), jnp.float32).at[:Kp, :].set(params["conv1_w"])

    pos_cls = jnp.zeros((S_pad, W), jnp.float32)
    pos_cls = pos_cls.at[0, :].set(params["class_embedding"]
                                   + params["positional_embedding"][0])
    pos_cls = pos_cls.at[1:S_real, :].set(params["positional_embedding"][1:])

    def stack(name):
        return jnp.stack([lp[name] for lp in params["layers"]], axis=0)

    # fold 1/sqrt(head_dim) into the Q part of the fused QKV projection
    qkv_scale = jnp.concatenate([jnp.full((W,), scale, jnp.float32),
                                 jnp.ones((2 * W,), jnp.float32)])
    w_qkv = stack("attn_in_w") * qkv_scale[None, None, :]
    b_qkv = stack("attn_in_b") * qkv_scale[None, :]

    return {
        "conv_w": conv_w.astype(jnp.bfloat16),
        "pos_cls": pos_cls,                                   # [S_pad, W] f32
        "ln_pre_g": params["ln_pre_g"].reshape(1, W),
        "ln_pre_b": params["ln_pre_b"].reshape(1, W),
        "ln1_g": stack("ln_1_g").reshape(L, 1, W),
        "ln1_b": stack("ln_1_b").reshape(L, 1, W),
        "w_qkv": w_qkv.astype(jnp.bfloat16),                  # [L, W, 3W]
        "b_qkv": b_qkv.reshape(L, 1, 3 * W),
        "w_out": stack("attn_out_w").astype(jnp.bfloat16),    # [L, W, W]
        "b_out": stack("attn_out_b").reshape(L, 1, W),
        "ln2_g": stack("ln_2_g").reshape(L, 1, W),
        "ln2_b": stack("ln_2_b").reshape(L, 1, W),
        "w_fc": stack("mlp_fc_w").astype(jnp.bfloat16),       # [L, W, 4W]
        "b_fc": stack("mlp_fc_b").reshape(L, 1, 4 * W),
        "w_proj": stack("mlp_proj_w").astype(jnp.bfloat16),   # [L, 4W, W]
        "b_proj": stack("mlp_proj_b").reshape(L, 1, W),
        "ln_post_g": params["ln_post_g"].reshape(1, W),
        "ln_post_b": params["ln_post_b"].reshape(1, W),
        "proj_w": params["proj"].astype(jnp.bfloat16),        # [W, output_dim]
        "proj_b": params["proj_b"].reshape(1, cfg.output_dim),
    }


# ------------------------------------------------------------------
# encode_image: glue (patch extraction) + ONE fused pallas_call
# ------------------------------------------------------------------

def encode_image(packed, image, cfg):
    """image: NCHW float32 [B, C, H, W] -> [B, output_dim]."""
    B, C, H, Wimg = image.shape
    ps = cfg.patch_size
    gh, gw = H // ps, Wimg // ps
    n_patches = gh * gw
    W = cfg.width
    heads = cfg.heads
    head_dim = W // heads
    L = cfg.layers
    out_dim = cfg.output_dim
    S_real = n_patches + 1
    S_pad = packed["pos_cls"].shape[0]
    Kp = C * ps * ps
    Kp_pad = packed["conv_w"].shape[0]
    M = B * S_pad

    # --- one-time glue: extract non-overlapping patches, zero rows for CLS + padding
    p = image.reshape(B, C, gh, ps, gw, ps).transpose(0, 2, 4, 1, 3, 5)
    p = p.reshape(B, n_patches, Kp)
    patches = jnp.zeros((B, S_pad, Kp_pad), jnp.float32)
    patches = patches.at[:, 1:1 + n_patches, :Kp].set(p)
    patches = patches.reshape(M, Kp_pad)
    pos_cls = jnp.tile(packed["pos_cls"], (B, 1))             # [M, W]

    kernel = functools.partial(
        _clip_encoder_kernel, batch=B, seq=S_pad, heads=heads,
        head_dim=head_dim, seq_real=S_real, eps=1e-5)

    def const_spec(a):   # resident across all layers (constant block index)
        return pl.BlockSpec(a.shape, lambda l, nd=a.ndim: (0,) * nd)

    def layer_spec(a):   # [L, ...] stacked weights, blocked (and pipelined) over layers
        return pl.BlockSpec((None,) + a.shape[1:], lambda l: (l, 0, 0))

    in_specs = [
        const_spec(patches), const_spec(packed["conv_w"]), const_spec(pos_cls),
        const_spec(packed["ln_pre_g"]), const_spec(packed["ln_pre_b"]),
        layer_spec(packed["ln1_g"]), layer_spec(packed["ln1_b"]),
        layer_spec(packed["w_qkv"]), layer_spec(packed["b_qkv"]),
        layer_spec(packed["w_out"]), layer_spec(packed["b_out"]),
        layer_spec(packed["ln2_g"]), layer_spec(packed["ln2_b"]),
        layer_spec(packed["w_fc"]), layer_spec(packed["b_fc"]),
        layer_spec(packed["w_proj"]), layer_spec(packed["b_proj"]),
        const_spec(packed["ln_post_g"]), const_spec(packed["ln_post_b"]),
        const_spec(packed["proj_w"]), const_spec(packed["proj_b"]),
    ]

    feats = pl.pallas_call(
        kernel,
        out_shape=jax.ShapeDtypeStruct((B, out_dim), jnp.float32),
        grid=(L,),
        in_specs=in_specs,
        out_specs=pl.BlockSpec((B, out_dim), lambda l: (0, 0)),
        scratch_shapes=[pltpu.VMEM((M, W), jnp.float32)],
        compiler_params=pltpu.CompilerParams(
            dimension_semantics=("arbitrary",)),   # layers are sequential (scratch carry)
    )(patches, packed["conv_w"], pos_cls,
      packed["ln_pre_g"], packed["ln_pre_b"],
      packed["ln1_g"], packed["ln1_b"], packed["w_qkv"], packed["b_qkv"],
      packed["w_out"], packed["b_out"], packed["ln2_g"], packed["ln2_b"],
      packed["w_fc"], packed["b_fc"], packed["w_proj"], packed["b_proj"],
      packed["ln_post_g"], packed["ln_post_b"], packed["proj_w"], packed["proj_b"])
    return feats


# ------------------------------------------------------------------
# ImageCLIP wrapper (mirrors the PyTorch module: forward = encode_image)
# ------------------------------------------------------------------

class ImageCLIP:
    def __init__(self, params, cfg):
        self.cfg = cfg
        self.packed = pack_params(params, cfg)

    def __call__(self, image):
        return encode_image(self.packed, image, self.cfg)


if __name__ == "__main__":
    cfg = VisionConfig()
    key = jax.random.PRNGKey(0)
    k_param, k_img = jax.random.split(key)

    params = init_params(cfg, k_param)
    image = jax.random.normal(
        k_img, (2, cfg.in_channels, cfg.image_size, cfg.image_size), dtype=jnp.float32)

    model = ImageCLIP(params, cfg)
    out = jax.jit(model.__call__)(image)
    out = jax.block_until_ready(out)

    assert out.shape == (2, cfg.output_dim)
    assert bool(jnp.all(jnp.isfinite(out)))
    print("KERNEL_OK")
</pallas_src>

<mosaic_0001>
module attributes {stable_mosaic.version = 11 : i64} {
  func.func @_clip_encoder_kernel(%arg0: i32, %arg1: memref<64x128xf32, #tpu.memory_space<vmem>>, %arg2: memref<128x128xbf16, #tpu.memory_space<vmem>>, %arg3: memref<64x128xf32, #tpu.memory_space<vmem>>, %arg4: memref<1x128xf32, #tpu.memory_space<vmem>>, %arg5: memref<1x128xf32, #tpu.memory_space<vmem>>, %arg6: memref<1x1x128xf32, #tpu.memory_space<vmem>>, %arg7: memref<1x1x128xf32, #tpu.memory_space<vmem>>, %arg8: memref<1x128x384xbf16, #tpu.memory_space<vmem>>, %arg9: memref<1x1x384xf32, #tpu.memory_space<vmem>>, %arg10: memref<1x128x128xbf16, #tpu.memory_space<vmem>>, %arg11: memref<1x1x128xf32, #tpu.memory_space<vmem>>, %arg12: memref<1x1x128xf32, #tpu.memory_space<vmem>>, %arg13: memref<1x1x128xf32, #tpu.memory_space<vmem>>, %arg14: memref<1x128x512xbf16, #tpu.memory_space<vmem>>, %arg15: memref<1x1x512xf32, #tpu.memory_space<vmem>>, %arg16: memref<1x512x128xbf16, #tpu.memory_space<vmem>>, %arg17: memref<1x1x128xf32, #tpu.memory_space<vmem>>, %arg18: memref<1x128xf32, #tpu.memory_space<vmem>>, %arg19: memref<1x128xf32, #tpu.memory_space<vmem>>, %arg20: memref<128x128xbf16, #tpu.memory_space<vmem>>, %arg21: memref<1x128xf32, #tpu.memory_space<vmem>>, %arg22: memref<2x128xf32, #tpu.memory_space<vmem>>, %arg23: memref<64x128xf32, #tpu.memory_space<vmem>>) attributes {dimension_semantics = [#tpu.dimension_semantics<arbitrary>], iteration_bounds = array<i64: 2>, scalar_prefetch = 0 : i64, scratch_operands = 1 : i64, tpu.core_type = #tpu.core_type<tc>, window_params = [{pipeline_mode = #tpu.pipeline_mode<synchronous>, transform_indices = @transform_0, window_bounds = array<i64: 64, 128>}, {pipeline_mode = #tpu.pipeline_mode<synchronous>, transform_indices = @transform_1, window_bounds = array<i64: 128, 128>}, {pipeline_mode = #tpu.pipeline_mode<synchronous>, transform_indices = @transform_2, window_bounds = array<i64: 64, 128>}, {pipeline_mode = #tpu.pipeline_mode<synchronous>, transform_indices = @transform_3, window_bounds = array<i64: 1, 128>}, {pipeline_mode = #tpu.pipeline_mode<synchronous>, transform_indices = @transform_4, window_bounds = array<i64: 1, 128>}, {transform_indices = @transform_5, window_bounds = array<i64: 1, 1, 128>}, {transform_indices = @transform_6, window_bounds = array<i64: 1, 1, 128>}, {transform_indices = @transform_7, window_bounds = array<i64: 1, 128, 384>}, {transform_indices = @transform_8, window_bounds = array<i64: 1, 1, 384>}, {transform_indices = @transform_9, window_bounds = array<i64: 1, 128, 128>}, {transform_indices = @transform_10, window_bounds = array<i64: 1, 1, 128>}, {transform_indices = @transform_11, window_bounds = array<i64: 1, 1, 128>}, {transform_indices = @transform_12, window_bounds = array<i64: 1, 1, 128>}, {transform_indices = @transform_13, window_bounds = array<i64: 1, 128, 512>}, {transform_indices = @transform_14, window_bounds = array<i64: 1, 1, 512>}, {transform_indices = @transform_15, window_bounds = array<i64: 1, 512, 128>}, {transform_indices = @transform_16, window_bounds = array<i64: 1, 1, 128>}, {pipeline_mode = #tpu.pipeline_mode<synchronous>, transform_indices = @transform_17, window_bounds = array<i64: 1, 128>}, {pipeline_mode = #tpu.pipeline_mode<synchronous>, transform_indices = @transform_18, window_bounds = array<i64: 1, 128>}, {pipeline_mode = #tpu.pipeline_mode<synchronous>, transform_indices = @transform_19, window_bounds = array<i64: 128, 128>}, {pipeline_mode = #tpu.pipeline_mode<synchronous>, transform_indices = @transform_20, window_bounds = array<i64: 1, 128>}, {pipeline_mode = #tpu.pipeline_mode<synchronous>, transform_indices = @transform_21, window_bounds = array<i64: 2, 128>}]} {
    %c0_i32 = arith.constant 0 : i32
    %0 = arith.cmpi eq, %arg0, %c0_i32 : i32
    %1 = arith.extui %0 : i1 to i32
    %c0_i32_0 = arith.constant 0 : i32
    %2 = arith.cmpi ne, %1, %c0_i32_0 : i32
    scf.if %2 {
      %c0_96 = arith.constant 0 : index
      %c0_97 = arith.constant 0 : index
      %270 = vector.load %arg1[%c0_96, %c0_97] : memref<64x128xf32, #tpu.memory_space<vmem>>, vector<64x128xf32>
      %271 = arith.truncf %270 : vector<64x128xf32> to vector<64x128xbf16>
      %c0_98 = arith.constant 0 : index
      %c0_99 = arith.constant 0 : index
      %272 = vector.load %arg2[%c0_98, %c0_99] : memref<128x128xbf16, #tpu.memory_space<vmem>>, vector<128x128xbf16>
      %cst_100 = arith.constant dense<0.000000e+00> : vector<64x128xf32>
      %273 = tpu.matmul %271, %272, %cst_100 {dimension_numbers = #tpu.dot_dimension_numbers<[1], [0], [0], [1], [0, 0, 1, 1], [], []>} : vector<64x128xbf16>, vector<128x128xbf16>, vector<64x128xf32> -> vector<64x128xf32>
      %c0_101 = arith.constant 0 : index
      %c0_102 = arith.constant 0 : index
      %274 = vector.load %arg3[%c0_101, %c0_102] : memref<64x128xf32, #tpu.memory_space<vmem>>, vector<64x128xf32>
      %275 = arith.addf %273, %274 : vector<64x128xf32>
      %cst_103 = arith.constant dense<0.000000e+00> : vector<64xf32>
      %276 = vector.multi_reduction <add>, %275, %cst_103 [1] : vector<64x128xf32> to vector<64xf32>
      %277 = vector.shape_cast %276 : vector<64xf32> to vector<64x1xf32>
      %cst_104 = arith.constant 1.280000e+02 : f32
      %278 = vector.broadcast %cst_104 : f32 to vector<64x1xf32>
      %279 = arith.divf %277, %278 : vector<64x1xf32>
      %280 = vector.broadcast %279 : vector<64x1xf32> to vector<64x128xf32>
      %281 = arith.subf %275, %280 : vector<64x128xf32>
      %282 = arith.mulf %281, %281 : vector<64x128xf32>
      %cst_105 = arith.constant dense<0.000000e+00> : vector<64xf32>
      %283 = vector.multi_reduction <add>, %282, %cst_105 [1] : vector<64x128xf32> to vector<64xf32>
      %284 = vector.shape_cast %283 : vector<64xf32> to vector<64x1xf32>
      %cst_106 = arith.constant 1.280000e+02 : f32
      %285 = vector.broadcast %cst_106 : f32 to vector<64x1xf32>
      %286 = arith.divf %284, %285 : vector<64x1xf32>
      %287 = vector.broadcast %279 : vector<64x1xf32> to vector<64x128xf32>
      %288 = arith.subf %275, %287 : vector<64x128xf32>
      %cst_107 = arith.constant 9.99999974E-6 : f32
      %289 = vector.broadcast %cst_107 : f32 to vector<64x1xf32>
      %290 = arith.addf %286, %289 : vector<64x1xf32>
      %291 = math.rsqrt %290 : vector<64x1xf32>
      %292 = vector.broadcast %291 : vector<64x1xf32> to vector<64x128xf32>
      %293 = arith.mulf %288, %292 : vector<64x128xf32>
      %c0_108 = arith.constant 0 : index
      %c0_109 = arith.constant 0 : index
      %294 = vector.load %arg4[%c0_108, %c0_109] : memref<1x128xf32, #tpu.memory_space<vmem>>, vector<1x128xf32>
      %295 = vector.broadcast %294 : vector<1x128xf32> to vector<64x128xf32>
      %296 = arith.mulf %293, %295 : vector<64x128xf32>
      %c0_110 = arith.constant 0 : index
      %c0_111 = arith.constant 0 : index
      %297 = vector.load %arg5[%c0_110, %c0_111] : memref<1x128xf32, #tpu.memory_space<vmem>>, vector<1x128xf32>
      %298 = vector.broadcast %297 : vector<1x128xf32> to vector<64x128xf32>
      %299 = arith.addf %296, %298 : vector<64x128xf32>
      %c0_112 = arith.constant 0 : index
      %c0_113 = arith.constant 0 : index
      %300 = vector.load %arg23[%c0_112, %c0_113] : memref<64x128xf32, #tpu.memory_space<vmem>>, vector<64x128xf32>
      tpu.vector_store %arg23[%c0_112, %c0_113], %299 {strides = array<i32>} : memref<64x128xf32, #tpu.memory_space<vmem>>, vector<64x128xf32>,
    } else {
    }
    %c0 = arith.constant 0 : index
    %c0_1 = arith.constant 0 : index
    %3 = vector.load %arg23[%c0, %c0_1] : memref<64x128xf32, #tpu.memory_space<vmem>>, vector<64x128xf32>
    %cst = arith.constant dense<0.000000e+00> : vector<64xf32>
    %4 = vector.multi_reduction <add>, %3, %cst [1] : vector<64x128xf32> to vector<64xf32>
    %5 = vector.shape_cast %4 : vector<64xf32> to vector<64x1xf32>
    %cst_2 = arith.constant 1.280000e+02 : f32
    %6 = vector.broadcast %cst_2 : f32 to vector<64x1xf32>
    %7 = arith.divf %5, %6 : vector<64x1xf32>
    %8 = vector.broadcast %7 : vector<64x1xf32> to vector<64x128xf32>
    %9 = arith.subf %3, %8 : vector<64x128xf32>
    %10 = arith.mulf %9, %9 : vector<64x128xf32>
    %cst_3 = arith.constant dense<0.000000e+00> : vector<64xf32>
    %11 = vector.multi_reduction <add>, %10, %cst_3 [1] : vector<64x128xf32> to vector<64xf32>
    %12 = vector.shape_cast %11 : vector<64xf32> to vector<64x1xf32>
    %cst_4 = arith.constant 1.280000e+02 : f32
    %13 = vector.broadcast %cst_4 : f32 to vector<64x1xf32>
    %14 = arith.divf %12, %13 : vector<64x1xf32>
    %15 = vector.broadcast %7 : vector<64x1xf32> to vector<64x128xf32>
    %16 = arith.subf %3, %15 : vector<64x128xf32>
    %cst_5 = arith.constant 9.99999974E-6 : f32
    %17 = vector.broadcast %cst_5 : f32 to vector<64x1xf32>
    %18 = arith.addf %14, %17 : vector<64x1xf32>
    %19 = math.rsqrt %18 : vector<64x1xf32>
    %20 = vector.broadcast %19 : vector<64x1xf32> to vector<64x128xf32>
    %21 = arith.mulf %16, %20 : vector<64x128xf32>
    %c0_6 = arith.constant 0 : index
    %c0_7 = arith.constant 0 : index
    %c0_8 = arith.constant 0 : index
    %22 = vector.load %arg6[%c0_6, %c0_7, %c0_8] : memref<1x1x128xf32, #tpu.memory_space<vmem>>, vector<1x1x128xf32>
    %23 = vector.shape_cast %22 : vector<1x1x128xf32> to vector<1x128xf32>
    %24 = vector.broadcast %23 : vector<1x128xf32> to vector<64x128xf32>
    %25 = arith.mulf %21, %24 : vector<64x128xf32>
    %c0_9 = arith.constant 0 : index
    %c0_10 = arith.constant 0 : index
    %c0_11 = arith.constant 0 : index
    %26 = vector.load %arg7[%c0_9, %c0_10, %c0_11] : memref<1x1x128xf32, #tpu.memory_space<vmem>>, vector<1x1x128xf32>
    %27 = vector.shape_cast %26 : vector<1x1x128xf32> to vector<1x128xf32>
    %28 = vector.broadcast %27 : vector<1x128xf32> to vector<64x128xf32>
    %29 = arith.addf %25, %28 : vector<64x128xf32>
    %30 = arith.truncf %29 : vector<64x128xf32> to vector<64x128xbf16>
    %c0_12 = arith.constant 0 : index
    %c0_13 = arith.constant 0 : index
    %c0_14 = arith.constant 0 : index
    %31 = vector.load %arg8[%c0_12, %c0_13, %c0_14] : memref<1x128x384xbf16, #tpu.memory_space<vmem>>, vector<1x128x384xbf16>
    %32 = vector.shape_cast %31 : vector<1x128x384xbf16> to vector<128x384xbf16>
    %cst_15 = arith.constant dense<0.000000e+00> : vector<64x384xf32>
    %33 = tpu.matmul %30, %32, %cst_15 {dimension_numbers = #tpu.dot_dimension_numbers<[1], [0], [0], [1], [0, 0, 1, 1], [], []>} : vector<64x128xbf16>, vector<128x384xbf16>, vector<64x384xf32> -> vector<64x384xf32>
    %c0_16 = arith.constant 0 : index
    %c0_17 = arith.constant 0 : index
    %c0_18 = arith.constant 0 : index
    %34 = vector.load %arg9[%c0_16, %c0_17, %c0_18] : memref<1x1x384xf32, #tpu.memory_space<vmem>>, vector<1x1x384xf32>
    %35 = vector.shape_cast %34 : vector<1x1x384xf32> to vector<1x384xf32>
    %36 = vector.broadcast %35 : vector<1x384xf32> to vector<64x384xf32>
    %37 = arith.addf %33, %36 : vector<64x384xf32>
    %38 = tpu.iota {dimensions = array<i32: 1>} : vector<32x32xi32>
    %c17_i32 = arith.constant 17 : i32
    %39 = vector.broadcast %c17_i32 : i32 to vector<32x32xi32>
    %40 = arith.cmpi slt, %38, %39 : vector<32x32xi32>
    %41 = vector.extract_strided_slice %37 {offsets = [0, 0], sizes = [32, 384], strides = [1, 1]} : vector<64x384xf32> to vector<32x384xf32>
    %42 = vector.extract_strided_slice %41 {offsets = [0, 0], sizes = [32, 32], strides = [1, 1]} : vector<32x384xf32> to vector<32x32xf32>
    %43 = arith.truncf %42 : vector<32x32xf32> to vector<32x32xbf16>
    %44 = vector.extract_strided_slice %41 {offsets = [0, 128], sizes = [32, 32], strides = [1, 1]} : vector<32x384xf32> to vector<32x32xf32>
    %45 = arith.truncf %44 : vector<32x32xf32> to vector<32x32xbf16>
    %46 = vector.extract_strided_slice %41 {offsets = [0, 256], sizes = [32, 32], strides = [1, 1]} : vector<32x384xf32> to vector<32x32xf32>
    %47 = arith.truncf %46 : vector<32x32xf32> to vector<32x32xbf16>
    "tpu.trace_start"() <{level = 10 : i32, message = "qd,kd->qk"}> : () -> ()
    %cst_19 = arith.constant dense<0.000000e+00> : vector<32x32xf32>
    %48 = tpu.matmul %43, %45, %cst_19 {dimension_numbers = #tpu.dot_dimension_numbers<[1], [1], [0], [0], [0, 0, 1, 0], [], []>} : vector<32x32xbf16>, vector<32x32xbf16>, vector<32x32xf32> -> vector<32x32xf32>
    %cst_20 = arith.constant -1.000000e+30 : f32
    "tpu.trace_stop"() : () -> ()
    %49 = vector.broadcast %cst_20 : f32 to vector<32x32xf32>
    %50 = arith.select %40, %48, %49 : vector<32x32xi1>, vector<32x32xf32>
    %cst_21 = arith.constant dense<0xFF800000> : vector<32xf32>
    %51 = vector.multi_reduction <maximumf>, %50, %cst_21 [1] : vector<32x32xf32> to vector<32xf32>
    %52 = vector.shape_cast %51 : vector<32xf32> to vector<32x1xf32>
    %53 = vector.broadcast %52 : vector<32x1xf32> to vector<32x32xf32>
    %54 = arith.subf %50, %53 : vector<32x32xf32>
    %55 = math.exp %54 : vector<32x32xf32>
    %cst_22 = arith.constant dense<0.000000e+00> : vector<32xf32>
    %56 = vector.multi_reduction <add>, %55, %cst_22 [1] : vector<32x32xf32> to vector<32xf32>
    %57 = vector.shape_cast %56 : vector<32xf32> to vector<32x1xf32>
    %58 = vector.broadcast %57 : vector<32x1xf32> to vector<32x32xf32>
    %59 = arith.divf %55, %58 : vector<32x32xf32>
    %60 = arith.truncf %59 : vector<32x32xf32> to vector<32x32xbf16>
    %cst_23 = arith.constant dense<0.000000e+00> : vector<32x32xf32>
    %61 = tpu.matmul %60, %47, %cst_23 {dimension_numbers = #tpu.dot_dimension_numbers<[1], [0], [0], [1], [0, 0, 1, 1], [], []>} : vector<32x32xbf16>, vector<32x32xbf16>, vector<32x32xf32> -> vector<32x32xf32>
    %62 = vector.extract_strided_slice %41 {offsets = [0, 32], sizes = [32, 32], strides = [1, 1]} : vector<32x384xf32> to vector<32x32xf32>
    %63 = arith.truncf %62 : vector<32x32xf32> to vector<32x32xbf16>
    %64 = vector.extract_strided_slice %41 {offsets = [0, 160], sizes = [32, 32], strides = [1, 1]} : vector<32x384xf32> to vector<32x32xf32>
    %65 = arith.truncf %64 : vector<32x32xf32> to vector<32x32xbf16>
    %66 = vector.extract_strided_slice %41 {offsets = [0, 288], sizes = [32, 32], strides = [1, 1]} : vector<32x384xf32> to vector<32x32xf32>
    %67 = arith.truncf %66 : vector<32x32xf32> to vector<32x32xbf16>
    "tpu.trace_start"() <{level = 10 : i32, message = "qd,kd->qk"}> : () -> ()
    %cst_24 = arith.constant dense<0.000000e+00> : vector<32x32xf32>
    %68 = tpu.matmul %63, %65, %cst_24 {dimension_numbers = #tpu.dot_dimension_numbers<[1], [1], [0], [0], [0, 0, 1, 0], [], []>} : vector<32x32xbf16>, vector<32x32xbf16>, vector<32x32xf32> -> vector<32x32xf32>
    %cst_25 = arith.constant -1.000000e+30 : f32
    "tpu.trace_stop"() : () -> ()
    %69 = vector.broadcast %cst_25 : f32 to vector<32x32xf32>
    %70 = arith.select %40, %68, %69 : vector<32x32xi1>, vector<32x32xf32>
    %cst_26 = arith.constant dense<0xFF800000> : vector<32xf32>
    %71 = vector.multi_reduction <maximumf>, %70, %cst_26 [1] : vector<32x32xf32> to vector<32xf32>
    %72 = vector.shape_cast %71 : vector<32xf32> to vector<32x1xf32>
    %73 = vector.broadcast %72 : vector<32x1xf32> to vector<32x32xf32>
    %74 = arith.subf %70, %73 : vector<32x32xf32>
    %75 = math.exp %74 : vector<32x32xf32>
    %cst_27 = arith.constant dense<0.000000e+00> : vector<32xf32>
    %76 = vector.multi_reduction <add>, %75, %cst_27 [1] : vector<32x32xf32> to vector<32xf32>
    %77 = vector.shape_cast %76 : vector<32xf32> to vector<32x1xf32>
    %78 = vector.broadcast %77 : vector<32x1xf32> to vector<32x32xf32>
    %79 = arith.divf %75, %78 : vector<32x32xf32>
    %80 = arith.truncf %79 : vector<32x32xf32> to vector<32x32xbf16>
    %cst_28 = arith.constant dense<0.000000e+00> : vector<32x32xf32>
    %81 = tpu.matmul %80, %67, %cst_28 {dimension_numbers = #tpu.dot_dimension_numbers<[1], [0], [0], [1], [0, 0, 1, 1], [], []>} : vector<32x32xbf16>, vector<32x32xbf16>, vector<32x32xf32> -> vector<32x32xf32>
    %82 = vector.extract_strided_slice %41 {offsets = [0, 64], sizes = [32, 32], strides = [1, 1]} : vector<32x384xf32> to vector<32x32xf32>
    %83 = arith.truncf %82 : vector<32x32xf32> to vector<32x32xbf16>
    %84 = vector.extract_strided_slice %41 {offsets = [0, 192], sizes = [32, 32], strides = [1, 1]} : vector<32x384xf32> to vector<32x32xf32>
    %85 = arith.truncf %84 : vector<32x32xf32> to vector<32x32xbf16>
    %86 = vector.extract_strided_slice %41 {offsets = [0, 320], sizes = [32, 32], strides = [1, 1]} : vector<32x384xf32> to vector<32x32xf32>
    %87 = arith.truncf %86 : vector<32x32xf32> to vector<32x32xbf16>
    "tpu.trace_start"() <{level = 10 : i32, message = "qd,kd->qk"}> : () -> ()
    %cst_29 = arith.constant dense<0.000000e+00> : vector<32x32xf32>
    %88 = tpu.matmul %83, %85, %cst_29 {dimension_numbers = #tpu.dot_dimension_numbers<[1], [1], [0], [0], [0, 0, 1, 0], [], []>} : vector<32x32xbf16>, vector<32x32xbf16>, vector<32x32xf32> -> vector<32x32xf32>
    %cst_30 = arith.constant -1.000000e+30 : f32
    "tpu.trace_stop"() : () -> ()
    %89 = vector.broadcast %cst_30 : f32 to vector<32x32xf32>
    %90 = arith.select %40, %88, %89 : vector<32x32xi1>, vector<32x32xf32>
    %cst_31 = arith.constant dense<0xFF800000> : vector<32xf32>
    %91 = vector.multi_reduction <maximumf>, %90, %cst_31 [1] : vector<32x32xf32> to vector<32xf32>
    %92 = vector.shape_cast %91 : vector<32xf32> to vector<32x1xf32>
    %93 = vector.broadcast %92 : vector<32x1xf32> to vector<32x32xf32>
    %94 = arith.subf %90, %93 : vector<32x32xf32>
    %95 = math.exp %94 : vector<32x32xf32>
    %cst_32 = arith.constant dense<0.000000e+00> : vector<32xf32>
    %96 = vector.multi_reduction <add>, %95, %cst_32 [1] : vector<32x32xf32> to vector<32xf32>
    %97 = vector.shape_cast %96 : vector<32xf32> to vector<32x1xf32>
    %98 = vector.broadcast %97 : vector<32x1xf32> to vector<32x32xf32>
    %99 = arith.divf %95, %98 : vector<32x32xf32>
    %100 = arith.truncf %99 : vector<32x32xf32> to vector<32x32xbf16>
    %cst_33 = arith.constant dense<0.000000e+00> : vector<32x32xf32>
    %101 = tpu.matmul %100, %87, %cst_33 {dimension_numbers = #tpu.dot_dimension_numbers<[1], [0], [0], [1], [0, 0, 1, 1], [], []>} : vector<32x32xbf16>, vector<32x32xbf16>, vector<32x32xf32> -> vector<32x32xf32>
    %102 = vector.extract_strided_slice %41 {offsets = [0, 96], sizes = [32, 32], strides = [1, 1]} : vector<32x384xf32> to vector<32x32xf32>
    %103 = arith.truncf %102 : vector<32x32xf32> to vector<32x32xbf16>
    %104 = vector.extract_strided_slice %41 {offsets = [0, 224], sizes = [32, 32], strides = [1, 1]} : vector<32x384xf32> to vector<32x32xf32>
    %105 = arith.truncf %104 : vector<32x32xf32> to vector<32x32xbf16>
    %106 = vector.extract_strided_slice %41 {offsets = [0, 352], sizes = [32, 32], strides = [1, 1]} : vector<32x384xf32> to vector<32x32xf32>
    %107 = arith.truncf %106 : vector<32x32xf32> to vector<32x32xbf16>
    "tpu.trace_start"() <{level = 10 : i32, message = "qd,kd->qk"}> : () -> ()
    %cst_34 = arith.constant dense<0.000000e+00> : vector<32x32xf32>
    %108 = tpu.matmul %103, %105, %cst_34 {dimension_numbers = #tpu.dot_dimension_numbers<[1], [1], [0], [0], [0, 0, 1, 0], [], []>} : vector<32x32xbf16>, vector<32x32xbf16>, vector<32x32xf32> -> vector<32x32xf32>
    %cst_35 = arith.constant -1.000000e+30 : f32
    "tpu.trace_stop"() : () -> ()
    %109 = vector.broadcast %cst_35 : f32 to vector<32x32xf32>
    %110 = arith.select %40, %108, %109 : vector<32x32xi1>, vector<32x32xf32>
    %cst_36 = arith.constant dense<0xFF800000> : vector<32xf32>
    %111 = vector.multi_reduction <maximumf>, %110, %cst_36 [1] : vector<32x32xf32> to vector<32xf32>
    %112 = vector.shape_cast %111 : vector<32xf32> to vector<32x1xf32>
    %113 = vector.broadcast %112 : vector<32x1xf32> to vector<32x32xf32>
    %114 = arith.subf %110, %113 : vector<32x32xf32>
    %115 = math.exp %114 : vector<32x32xf32>
    %cst_37 = arith.constant dense<0.000000e+00> : vector<32xf32>
    %116 = vector.multi_reduction <add>, %115, %cst_37 [1] : vector<32x32xf32> to vector<32xf32>
    %117 = vector.shape_cast %116 : vector<32xf32> to vector<32x1xf32>
    %118 = vector.broadcast %117 : vector<32x1xf32> to vector<32x32xf32>
    %119 = arith.divf %115, %118 : vector<32x32xf32>
    %120 = arith.truncf %119 : vector<32x32xf32> to vector<32x32xbf16>
    %cst_38 = arith.constant dense<0.000000e+00> : vector<32x32xf32>
    %121 = tpu.matmul %120, %107, %cst_38 {dimension_numbers = #tpu.dot_dimension_numbers<[1], [0], [0], [1], [0, 0, 1, 1], [], []>} : vector<32x32xbf16>, vector<32x32xbf16>, vector<32x32xf32> -> vector<32x32xf32>
    %122 = tpu.concatenate %61, %81, %101, %121 in 1 : vector<32x32xf32>, vector<32x32xf32>, vector<32x32xf32>, vector<32x32xf32> -> vector<32x128xf32>
    %123 = vector.extract_strided_slice %37 {offsets = [32, 0], sizes = [32, 384], strides = [1, 1]} : vector<64x384xf32> to vector<32x384xf32>
    %124 = vector.extract_strided_slice %123 {offsets = [0, 0], sizes = [32, 32], strides = [1, 1]} : vector<32x384xf32> to vector<32x32xf32>
    %125 = arith.truncf %124 : vector<32x32xf32> to vector<32x32xbf16>
    %126 = vector.extract_strided_slice %123 {offsets = [0, 128], sizes = [32, 32], strides = [1, 1]} : vector<32x384xf32> to vector<32x32xf32>
    %127 = arith.truncf %126 : vector<32x32xf32> to vector<32x32xbf16>
    %128 = vector.extract_strided_slice %123 {offsets = [0, 256], sizes = [32, 32], strides = [1, 1]} : vector<32x384xf32> to vector<32x32xf32>
    %129 = arith.truncf %128 : vector<32x32xf32> to vector<32x32xbf16>
    "tpu.trace_start"() <{level = 10 : i32, message = "qd,kd->qk"}> : () -> ()
    %cst_39 = arith.constant dense<0.000000e+00> : vector<32x32xf32>
    %130 = tpu.matmul %125, %127, %cst_39 {dimension_numbers = #tpu.dot_dimension_numbers<[1], [1], [0], [0], [0, 0, 1, 0], [], []>} : vector<32x32xbf16>, vector<32x32xbf16>, vector<32x32xf32> -> vector<32x32xf32>
    %cst_40 = arith.constant -1.000000e+30 : f32
    "tpu.trace_stop"() : () -> ()
    %131 = vector.broadcast %cst_40 : f32 to vector<32x32xf32>
    %132 = arith.select %40, %130, %131 : vector<32x32xi1>, vector<32x32xf32>
    %cst_41 = arith.constant dense<0xFF800000> : vector<32xf32>
    %133 = vector.multi_reduction <maximumf>, %132, %cst_41 [1] : vector<32x32xf32> to vector<32xf32>
    %134 = vector.shape_cast %133 : vector<32xf32> to vector<32x1xf32>
    %135 = vector.broadcast %134 : vector<32x1xf32> to vector<32x32xf32>
    %136 = arith.subf %132, %135 : vector<32x32xf32>
    %137 = math.exp %136 : vector<32x32xf32>
    %cst_42 = arith.constant dense<0.000000e+00> : vector<32xf32>
    %138 = vector.multi_reduction <add>, %137, %cst_42 [1] : vector<32x32xf32> to vector<32xf32>
    %139 = vector.shape_cast %138 : vector<32xf32> to vector<32x1xf32>
    %140 = vector.broadcast %139 : vector<32x1xf32> to vector<32x32xf32>
    %141 = arith.divf %137, %140 : vector<32x32xf32>
    %142 = arith.truncf %141 : vector<32x32xf32> to vector<32x32xbf16>
    %cst_43 = arith.constant dense<0.000000e+00> : vector<32x32xf32>
    %143 = tpu.matmul %142, %129, %cst_43 {dimension_numbers = #tpu.dot_dimension_numbers<[1], [0], [0], [1], [0, 0, 1, 1], [], []>} : vector<32x32xbf16>, vector<32x32xbf16>, vector<32x32xf32> -> vector<32x32xf32>
    %144 = vector.extract_strided_slice %123 {offsets = [0, 32], sizes = [32, 32], strides = [1, 1]} : vector<32x384xf32> to vector<32x32xf32>
    %145 = arith.truncf %144 : vector<32x32xf32> to vector<32x32xbf16>
    %146 = vector.extract_strided_slice %123 {offsets = [0, 160], sizes = [32, 32], strides = [1, 1]} : vector<32x384xf32> to vector<32x32xf32>
    %147 = arith.truncf %146 : vector<32x32xf32> to vector<32x32xbf16>
    %148 = vector.extract_strided_slice %123 {offsets = [0, 288], sizes = [32, 32], strides = [1, 1]} : vector<32x384xf32> to vector<32x32xf32>
    %149 = arith.truncf %148 : vector<32x32xf32> to vector<32x32xbf16>
    "tpu.trace_start"() <{level = 10 : i32, message = "qd,kd->qk"}> : () -> ()
    %cst_44 = arith.constant dense<0.000000e+00> : vector<32x32xf32>
    %150 = tpu.matmul %145, %147, %cst_44 {dimension_numbers = #tpu.dot_dimension_numbers<[1], [1], [0], [0], [0, 0, 1, 0], [], []>} : vector<32x32xbf16>, vector<32x32xbf16>, vector<32x32xf32> -> vector<32x32xf32>
    %cst_45 = arith.constant -1.000000e+30 : f32
    "tpu.trace_stop"() : () -> ()
    %151 = vector.broadcast %cst_45 : f32 to vector<32x32xf32>
    %152 = arith.select %40, %150, %151 : vector<32x32xi1>, vector<32x32xf32>
    %cst_46 = arith.constant dense<0xFF800000> : vector<32xf32>
    %153 = vector.multi_reduction <maximumf>, %152, %cst_46 [1] : vector<32x32xf32> to vector<32xf32>
    %154 = vector.shape_cast %153 : vector<32xf32> to vector<32x1xf32>
    %155 = vector.broadcast %154 : vector<32x1xf32> to vector<32x32xf32>
    %156 = arith.subf %152, %155 : vector<32x32xf32>
    %157 = math.exp %156 : vector<32x32xf32>
    %cst_47 = arith.constant dense<0.000000e+00> : vector<32xf32>
    %158 = vector.multi_reduction <add>, %157, %cst_47 [1] : vector<32x32xf32> to vector<32xf32>
    %159 = vector.shape_cast %158 : vector<32xf32> to vector<32x1xf32>
    %160 = vector.broadcast %159 : vector<32x1xf32> to vector<32x32xf32>
    %161 = arith.divf %157, %160 : vector<32x32xf32>
    %162 = arith.truncf %161 : vector<32x32xf32> to vector<32x32xbf16>
    %cst_48 = arith.constant dense<0.000000e+00> : vector<32x32xf32>
    %163 = tpu.matmul %162, %149, %cst_48 {dimension_numbers = #tpu.dot_dimension_numbers<[1], [0], [0], [1], [0, 0, 1, 1], [], []>} : vector<32x32xbf16>, vector<32x32xbf16>, vector<32x32xf32> -> vector<32x32xf32>
    %164 = vector.extract_strided_slice %123 {offsets = [0, 64], sizes = [32, 32], strides = [1, 1]} : vector<32x384xf32> to vector<32x32xf32>
    %165 = arith.truncf %164 : vector<32x32xf32> to vector<32x32xbf16>
    %166 = vector.extract_strided_slice %123 {offsets = [0, 192], sizes = [32, 32], strides = [1, 1]} : vector<32x384xf32> to vector<32x32xf32>
    %167 = arith.truncf %166 : vector<32x32xf32> to vector<32x32xbf16>
    %168 = vector.extract_strided_slice %123 {offsets = [0, 320], sizes = [32, 32], strides = [1, 1]} : vector<32x384xf32> to vector<32x32xf32>
    %169 = arith.truncf %168 : vector<32x32xf32> to vector<32x32xbf16>
    "tpu.trace_start"() <{level = 10 : i32, message = "qd,kd->qk"}> : () -> ()
    %cst_49 = arith.constant dense<0.000000e+00> : vector<32x32xf32>
    %170 = tpu.matmul %165, %167, %cst_49 {dimension_numbers = #tpu.dot_dimension_numbers<[1], [1], [0], [0], [0, 0, 1, 0], [], []>} : vector<32x32xbf16>, vector<32x32xbf16>, vector<32x32xf32> -> vector<32x32xf32>
    %cst_50 = arith.constant -1.000000e+30 : f32
    "tpu.trace_stop"() : () -> ()
    %171 = vector.broadcast %cst_50 : f32 to vector<32x32xf32>
    %172 = arith.select %40, %170, %171 : vector<32x32xi1>, vector<32x32xf32>
    %cst_51 = arith.constant dense<0xFF800000> : vector<32xf32>
    %173 = vector.multi_reduction <maximumf>, %172, %cst_51 [1] : vector<32x32xf32> to vector<32xf32>
    %174 = vector.shape_cast %173 : vector<32xf32> to vector<32x1xf32>
    %175 = vector.broadcast %174 : vector<32x1xf32> to vector<32x32xf32>
    %176 = arith.subf %172, %175 : vector<32x32xf32>
    %177 = math.exp %176 : vector<32x32xf32>
    %cst_52 = arith.constant dense<0.000000e+00> : vector<32xf32>
    %178 = vector.multi_reduction <add>, %177, %cst_52 [1] : vector<32x32xf32> to vector<32xf32>
    %179 = vector.shape_cast %178 : vector<32xf32> to vector<32x1xf32>
    %180 = vector.broadcast %179 : vector<32x1xf32> to vector<32x32xf32>
    %181 = arith.divf %177, %180 : vector<32x32xf32>
    %182 = arith.truncf %181 : vector<32x32xf32> to vector<32x32xbf16>
    %cst_53 = arith.constant dense<0.000000e+00> : vector<32x32xf32>
    %183 = tpu.matmul %182, %169, %cst_53 {dimension_numbers = #tpu.dot_dimension_numbers<[1], [0], [0], [1], [0, 0, 1, 1], [], []>} : vector<32x32xbf16>, vector<32x32xbf16>, vector<32x32xf32> -> vector<32x32xf32>
    %184 = vector.extract_strided_slice %123 {offsets = [0, 96], sizes = [32, 32], strides = [1, 1]} : vector<32x384xf32> to vector<32x32xf32>
    %185 = arith.truncf %184 : vector<32x32xf32> to vector<32x32xbf16>
    %186 = vector.extract_strided_slice %123 {offsets = [0, 224], sizes = [32, 32], strides = [1, 1]} : vector<32x384xf32> to vector<32x32xf32>
    %187 = arith.truncf %186 : vector<32x32xf32> to vector<32x32xbf16>
    %188 = vector.extract_strided_slice %123 {offsets = [0, 352], sizes = [32, 32], strides = [1, 1]} : vector<32x384xf32> to vector<32x32xf32>
    %189 = arith.truncf %188 : vector<32x32xf32> to vector<32x32xbf16>
    "tpu.trace_start"() <{level = 10 : i32, message = "qd,kd->qk"}> : () -> ()
    %cst_54 = arith.constant dense<0.000000e+00> : vector<32x32xf32>
    %190 = tpu.matmul %185, %187, %cst_54 {dimension_numbers = #tpu.dot_dimension_numbers<[1], [1], [0], [0], [0, 0, 1, 0], [], []>} : vector<32x32xbf16>, vector<32x32xbf16>, vector<32x32xf32> -> vector<32x32xf32>
    %cst_55 = arith.constant -1.000000e+30 : f32
    "tpu.trace_stop"() : () -> ()
    %191 = vector.broadcast %cst_55 : f32 to vector<32x32xf32>
    %192 = arith.select %40, %190, %191 : vector<32x32xi1>, vector<32x32xf32>
    %cst_56 = arith.constant dense<0xFF800000> : vector<32xf32>
    %193 = vector.multi_reduction <maximumf>, %192, %cst_56 [1] : vector<32x32xf32> to vector<32xf32>
    %194 = vector.shape_cast %193 : vector<32xf32> to vector<32x1xf32>
    %195 = vector.broadcast %194 : vector<32x1xf32> to vector<32x32xf32>
    %196 = arith.subf %192, %195 : vector<32x32xf32>
    %197 = math.exp %196 : vector<32x32xf32>
    %cst_57 = arith.constant dense<0.000000e+00> : vector<32xf32>
    %198 = vector.multi_reduction <add>, %197, %cst_57 [1] : vector<32x32xf32> to vector<32xf32>
    %199 = vector.shape_cast %198 : vector<32xf32> to vector<32x1xf32>
    %200 = vector.broadcast %199 : vector<32x1xf32> to vector<32x32xf32>
    %201 = arith.divf %197, %200 : vector<32x32xf32>
    %202 = arith.truncf %201 : vector<32x32xf32> to vector<32x32xbf16>
    %cst_58 = arith.constant dense<0.000000e+00> : vector<32x32xf32>
    %203 = tpu.matmul %202, %189, %cst_58 {dimension_numbers = #tpu.dot_dimension_numbers<[1], [0], [0], [1], [0, 0, 1, 1], [], []>} : vector<32x32xbf16>, vector<32x32xbf16>, vector<32x32xf32> -> vector<32x32xf32>
    %204 = tpu.concatenate %143, %163, %183, %203 in 1 : vector<32x32xf32>, vector<32x32xf32>, vector<32x32xf32>, vector<32x32xf32> -> vector<32x128xf32>
    %205 = tpu.concatenate %122, %204 in 0 : vector<32x128xf32>, vector<32x128xf32> -> vector<64x128xf32>
    %206 = arith.truncf %205 : vector<64x128xf32> to vector<64x128xbf16>
    %c0_59 = arith.constant 0 : index
    %c0_60 = arith.constant 0 : index
    %c0_61 = arith.constant 0 : index
    %207 = vector.load %arg10[%c0_59, %c0_60, %c0_61] : memref<1x128x128xbf16, #tpu.memory_space<vmem>>, vector<1x128x128xbf16>
    %208 = vector.shape_cast %207 : vector<1x128x128xbf16> to vector<128x128xbf16>
    %cst_62 = arith.constant dense<0.000000e+00> : vector<64x128xf32>
    %209 = tpu.matmul %206, %208, %cst_62 {dimension_numbers = #tpu.dot_dimension_numbers<[1], [0], [0], [1], [0, 0, 1, 1], [], []>} : vector<64x128xbf16>, vector<128x128xbf16>, vector<64x128xf32> -> vector<64x128xf32>
    %c0_63 = arith.constant 0 : index
    %c0_64 = arith.constant 0 : index
    %c0_65 = arith.constant 0 : index
    %210 = vector.load %arg11[%c0_63, %c0_64, %c0_65] : memref<1x1x128xf32, #tpu.memory_space<vmem>>, vector<1x1x128xf32>
    %211 = vector.shape_cast %210 : vector<1x1x128xf32> to vector<1x128xf32>
    %212 = vector.broadcast %211 : vector<1x128xf32> to vector<64x128xf32>
    %213 = arith.addf %209, %212 : vector<64x128xf32>
    %214 = arith.addf %3, %213 : vector<64x128xf32>
    %cst_66 = arith.constant dense<0.000000e+00> : vector<64xf32>
    %215 = vector.multi_reduction <add>, %214, %cst_66 [1] : vector<64x128xf32> to vector<64xf32>
    %216 = vector.shape_cast %215 : vector<64xf32> to vector<64x1xf32>
    %cst_67 = arith.constant 1.280000e+02 : f32
    %217 = vector.broadcast %cst_67 : f32 to vector<64x1xf32>
    %218 = arith.divf %216, %217 : vector<64x1xf32>
    %219 = vector.broadcast %218 : vector<64x1xf32> to vector<64x128xf32>
    %220 = arith.subf %214, %219 : vector<64x128xf32>
    %221 = arith.mulf %220, %220 : vector<64x128xf32>
    %cst_68 = arith.constant dense<0.000000e+00> : vector<64xf32>
    %222 = vector.multi_reduction <add>, %221, %cst_68 [1] : vector<64x128xf32> to vector<64xf32>
    %223 = vector.shape_cast %222 : vector<64xf32> to vector<64x1xf32>
    %cst_69 = arith.constant 1.280000e+02 : f32
    %224 = vector.broadcast %cst_69 : f32 to vector<64x1xf32>
    %225 = arith.divf %223, %224 : vector<64x1xf32>
    %226 = vector.broadcast %218 : vector<64x1xf32> to vector<64x128xf32>
    %227 = arith.subf %214, %226 : vector<64x128xf32>
    %cst_70 = arith.constant 9.99999974E-6 : f32
    %228 = vector.broadcast %cst_70 : f32 to vector<64x1xf32>
    %229 = arith.addf %225, %228 : vector<64x1xf32>
    %230 = math.rsqrt %229 : vector<64x1xf32>
    %231 = vector.broadcast %230 : vector<64x1xf32> to vector<64x128xf32>
    %232 = arith.mulf %227, %231 : vector<64x128xf32>
    %c0_71 = arith.constant 0 : index
    %c0_72 = arith.constant 0 : index
    %c0_73 = arith.constant 0 : index
    %233 = vector.load %arg12[%c0_71, %c0_72, %c0_73] : memref<1x1x128xf32, #tpu.memory_space<vmem>>, vector<1x1x128xf32>
    %234 = vector.shape_cast %233 : vector<1x1x128xf32> to vector<1x128xf32>
    %235 = vector.broadcast %234 : vector<1x128xf32> to vector<64x128xf32>
    %236 = arith.mulf %232, %235 : vector<64x128xf32>
    %c0_74 = arith.constant 0 : index
    %c0_75 = arith.constant 0 : index
    %c0_76 = arith.constant 0 : index
    %237 = vector.load %arg13[%c0_74, %c0_75, %c0_76] : memref<1x1x128xf32, #tpu.memory_space<vmem>>, vector<1x1x128xf32>
    %238 = vector.shape_cast %237 : vector<1x1x128xf32> to vector<1x128xf32>
    %239 = vector.broadcast %238 : vector<1x128xf32> to vector<64x128xf32>
    %240 = arith.addf %236, %239 : vector<64x128xf32>
    %241 = arith.truncf %240 : vector<64x128xf32> to vector<64x128xbf16>
    %c0_77 = arith.constant 0 : index
    %c0_78 = arith.constant 0 : index
    %c0_79 = arith.constant 0 : index
    %242 = vector.load %arg14[%c0_77, %c0_78, %c0_79] : memref<1x128x512xbf16, #tpu.memory_space<vmem>>, vector<1x128x512xbf16>
    %243 = vector.shape_cast %242 : vector<1x128x512xbf16> to vector<128x512xbf16>
    %cst_80 = arith.constant dense<0.000000e+00> : vector<64x512xf32>
    %244 = tpu.matmul %241, %243, %cst_80 {dimension_numbers = #tpu.dot_dimension_numbers<[1], [0], [0], [1], [0, 0, 1, 1], [], []>} : vector<64x128xbf16>, vector<128x512xbf16>, vector<64x512xf32> -> vector<64x512xf32>
    %c0_81 = arith.constant 0 : index
    %c0_82 = arith.constant 0 : index
    %c0_83 = arith.constant 0 : index
    %245 = vector.load %arg15[%c0_81, %c0_82, %c0_83] : memref<1x1x512xf32, #tpu.memory_space<vmem>>, vector<1x1x512xf32>
    %246 = vector.shape_cast %245 : vector<1x1x512xf32> to vector<1x512xf32>
    %247 = vector.broadcast %246 : vector<1x512xf32> to vector<64x512xf32>
    %248 = arith.addf %244, %247 : vector<64x512xf32>
    %cst_84 = arith.constant 1.702000e+00 : f32
    %249 = vector.broadcast %cst_84 : f32 to vector<64x512xf32>
    %250 = arith.mulf %249, %248 : vector<64x512xf32>
    %251 = arith.negf %250 : vector<64x512xf32>
    %252 = math.exp %251 : vector<64x512xf32>
    %cst_85 = arith.constant 1.000000e+00 : f32
    %253 = vector.broadcast %cst_85 : f32 to vector<64x512xf32>
    %254 = arith.addf %253, %252 : vector<64x512xf32>
    %255 = arith.divf %253, %254 : vector<64x512xf32>
    %256 = arith.mulf %248, %255 : vector<64x512xf32>
    %257 = arith.truncf %256 : vector<64x512xf32> to vector<64x512xbf16>
    %c0_86 = arith.constant 0 : index
    %c0_87 = arith.constant 0 : index
    %c0_88 = arith.constant 0 : index
    %258 = vector.load %arg16[%c0_86, %c0_87, %c0_88] : memref<1x512x128xbf16, #tpu.memory_space<vmem>>, vector<1x512x128xbf16>
    %259 = vector.shape_cast %258 : vector<1x512x128xbf16> to vector<512x128xbf16>
    %cst_89 = arith.constant dense<0.000000e+00> : vector<64x128xf32>
    %260 = tpu.matmul %257, %259, %cst_89 {dimension_numbers = #tpu.dot_dimension_numbers<[1], [0], [0], [1], [0, 0, 1, 1], [], []>} : vector<64x512xbf16>, vector<512x128xbf16>, vector<64x128xf32> -> vector<64x128xf32>
    %c0_90 = arith.constant 0 : index
    %c0_91 = arith.constant 0 : index
    %c0_92 = arith.constant 0 : index
    %261 = vector.load %arg17[%c0_90, %c0_91, %c0_92] : memref<1x1x128xf32, #tpu.memory_space<vmem>>, vector<1x1x128xf32>
    %262 = vector.shape_cast %261 : vector<1x1x128xf32> to vector<1x128xf32>
    %263 = vector.broadcast %262 : vector<1x128xf32> to vector<64x128xf32>
    %264 = arith.addf %260, %263 : vector<64x128xf32>
    %265 = arith.addf %214, %264 : vector<64x128xf32>
    %c0_93 = arith.constant 0 : index
    %c0_94 = arith.constant 0 : index
    %266 = vector.load %arg23[%c0_93, %c0_94] : memref<64x128xf32, #tpu.memory_space<vmem>>, vector<64x128xf32>
    tpu.vector_store %arg23[%c0_93, %c0_94], %265 {strides = array<i32>} : memref<64x128xf32, #tpu.memory_space<vmem>>, vector<64x128xf32>,
    %c1_i32 = arith.constant 1 : i32
    %267 = arith.cmpi eq, %arg0, %c1_i32 : i32
    %268 = arith.extui %267 : i1 to i32
    %c0_i32_95 = arith.constant 0 : i32
    %269 = arith.cmpi ne, %268, %c0_i32_95 : i32
    scf.if %269 {
      %270 = vector.extract_strided_slice %265 {offsets = [0, 0], sizes = [1, 128], strides = [1, 1]} : vector<64x128xf32> to vector<1x128xf32>
      %271 = vector.extract_strided_slice %265 {offsets = [32, 0], sizes = [1, 128], strides = [1, 1]} : vector<64x128xf32> to vector<1x128xf32>
      %272 = tpu.concatenate %270, %271 in 0 : vector<1x128xf32>, vector<1x128xf32> -> vector<2x128xf32>
      %cst_96 = arith.constant dense<0.000000e+00> : vector<2xf32>
      %273 = vector.multi_reduction <add>, %272, %cst_96 [1] : vector<2x128xf32> to vector<2xf32>
      %274 = vector.shape_cast %273 : vector<2xf32> to vector<2x1xf32>
      %cst_97 = arith.constant 1.280000e+02 : f32
      %275 = vector.broadcast %cst_97 : f32 to vector<2x1xf32>
      %276 = arith.divf %274, %275 : vector<2x1xf32>
      %277 = vector.broadcast %276 : vector<2x1xf32> to vector<2x128xf32>
      %278 = arith.subf %272, %277 : vector<2x128xf32>
      %279 = arith.mulf %278, %278 : vector<2x128xf32>
      %cst_98 = arith.constant dense<0.000000e+00> : vector<2xf32>
      %280 = vector.multi_reduction <add>, %279, %cst_98 [1] : vector<2x128xf32> to vector<2xf32>
      %281 = vector.shape_cast %280 : vector<2xf32> to vector<2x1xf32>
      %cst_99 = arith.constant 1.280000e+02 : f32
      %282 = vector.broadcast %cst_99 : f32 to vector<2x1xf32>
      %283 = arith.divf %281, %282 : vector<2x1xf32>
      %284 = vector.broadcast %276 : vector<2x1xf32> to vector<2x128xf32>
      %285 = arith.subf %272, %284 : vector<2x128xf32>
      %cst_100 = arith.constant 9.99999974E-6 : f32
      %286 = vector.broadcast %cst_100 : f32 to vector<2x1xf32>
      %287 = arith.addf %283, %286 : vector<2x1xf32>
      %288 = math.rsqrt %287 : vector<2x1xf32>
      %289 = vector.broadcast %288 : vector<2x1xf32> to vector<2x128xf32>
      %290 = arith.mulf %285, %289 : vector<2x128xf32>
      %c0_101 = arith.constant 0 : index
      %c0_102 = arith.constant 0 : index
      %291 = vector.load %arg18[%c0_101, %c0_102] : memref<1x128xf32, #tpu.memory_space<vmem>>, vector<1x128xf32>
      %292 = vector.broadcast %291 : vector<1x128xf32> to vector<2x128xf32>
      %293 = arith.mulf %290, %292 : vector<2x128xf32>
      %c0_103 = arith.constant 0 : index
      %c0_104 = arith.constant 0 : index
      %294 = vector.load %arg19[%c0_103, %c0_104] : memref<1x128xf32, #tpu.memory_space<vmem>>, vector<1x128xf32>
      %295 = vector.broadcast %294 : vector<1x128xf32> to vector<2x128xf32>
      %296 = arith.addf %293, %295 : vector<2x128xf32>
      %297 = arith.truncf %296 : vector<2x128xf32> to vector<2x128xbf16>
      %c0_105 = arith.constant 0 : index
      %c0_106 = arith.constant 0 : index
      %298 = vector.load %arg20[%c0_105, %c0_106] : memref<128x128xbf16, #tpu.memory_space<vmem>>, vector<128x128xbf16>
      %cst_107 = arith.constant dense<0.000000e+00> : vector<2x128xf32>
      %299 = tpu.matmul %297, %298, %cst_107 {dimension_numbers = #tpu.dot_dimension_numbers<[1], [0], [0], [1], [0, 0, 1, 1], [], []>} : vector<2x128xbf16>, vector<128x128xbf16>, vector<2x128xf32> -> vector<2x128xf32>
      %c0_108 = arith.constant 0 : index
      %c0_109 = arith.constant 0 : index
      %300 = vector.load %arg21[%c0_108, %c0_109] : memref<1x128xf32, #tpu.memory_space<vmem>>, vector<1x128xf32>
      %301 = vector.broadcast %300 : vector<1x128xf32> to vector<2x128xf32>
      %302 = arith.addf %299, %301 : vector<2x128xf32>
      %c0_110 = arith.constant 0 : index
      %c0_111 = arith.constant 0 : index
      %303 = vector.load %arg22[%c0_110, %c0_111] : memref<2x128xf32, #tpu.memory_space<vmem>>, vector<2x128xf32>
      tpu.vector_store %arg22[%c0_110, %c0_111], %302 {strides = array<i32>} : memref<2x128xf32, #tpu.memory_space<vmem>>, vector<2x128xf32>,
    } else {
    }
    return
  }
  func.func @transform_0(%arg0: i32) -> (i32, i32) {
    %c0_i32 = arith.constant 0 : i32
    %c0_i32_0 = arith.constant 0 : i32
    %c0_i32_1 = arith.constant 0 : i32
    return %c0_i32, %c0_i32_0 : i32, i32
  }
  func.func @transform_1(%arg0: i32) -> (i32, i32) {
    %c0_i32 = arith.constant 0 : i32
    %c0_i32_0 = arith.constant 0 : i32
    %c0_i32_1 = arith.constant 0 : i32
    return %c0_i32, %c0_i32_0 : i32, i32
  }
  func.func @transform_2(%arg0: i32) -> (i32, i32) {
    %c0_i32 = arith.constant 0 : i32
    %c0_i32_0 = arith.constant 0 : i32
    %c0_i32_1 = arith.constant 0 : i32
    return %c0_i32, %c0_i32_0 : i32, i32
  }
  func.func @transform_3(%arg0: i32) -> (i32, i32) {
    %c0_i32 = arith.constant 0 : i32
    %c0_i32_0 = arith.constant 0 : i32
    %c0_i32_1 = arith.constant 0 : i32
    return %c0_i32, %c0_i32_0 : i32, i32
  }
  func.func @transform_4(%arg0: i32) -> (i32, i32) {
    %c0_i32 = arith.constant 0 : i32
    %c0_i32_0 = arith.constant 0 : i32
    %c0_i32_1 = arith.constant 0 : i32
    return %c0_i32, %c0_i32_0 : i32, i32
  }
  func.func @transform_5(%arg0: i32) -> (i32, i32, i32) {
    %c0_i32 = arith.constant 0 : i32
    %c0_i32_0 = arith.constant 0 : i32
    %c0_i32_1 = arith.constant 0 : i32
    return %arg0, %c0_i32, %c0_i32_0 : i32, i32, i32
  }
  func.func @transform_6(%arg0: i32) -> (i32, i32, i32) {
    %c0_i32 = arith.constant 0 : i32
    %c0_i32_0 = arith.constant 0 : i32
    %c0_i32_1 = arith.constant 0 : i32
    return %arg0, %c0_i32, %c0_i32_0 : i32, i32, i32
  }
  func.func @transform_7(%arg0: i32) -> (i32, i32, i32) {
    %c0_i32 = arith.constant 0 : i32
    %c0_i32_0 = arith.constant 0 : i32
    %c0_i32_1 = arith.constant 0 : i32
    return %arg0, %c0_i32, %c0_i32_0 : i32, i32, i32
  }
  func.func @transform_8(%arg0: i32) -> (i32, i32, i32) {
    %c0_i32 = arith.constant 0 : i32
    %c0_i32_0 = arith.constant 0 : i32
    %c0_i32_1 = arith.constant 0 : i32
    return %arg0, %c0_i32, %c0_i32_0 : i32, i32, i32
  }
  func.func @transform_9(%arg0: i32) -> (i32, i32, i32) {
    %c0_i32 = arith.constant 0 : i32
    %c0_i32_0 = arith.constant 0 : i32
    %c0_i32_1 = arith.constant 0 : i32
    return %arg0, %c0_i32, %c0_i32_0 : i32, i32, i32
  }
  func.func @transform_10(%arg0: i32) -> (i32, i32, i32) {
    %c0_i32 = arith.constant 0 : i32
    %c0_i32_0 = arith.constant 0 : i32
    %c0_i32_1 = arith.constant 0 : i32
    return %arg0, %c0_i32, %c0_i32_0 : i32, i32, i32
  }
  func.func @transform_11(%arg0: i32) -> (i32, i32, i32) {
    %c0_i32 = arith.constant 0 : i32
    %c0_i32_0 = arith.constant 0 : i32
    %c0_i32_1 = arith.constant 0 : i32
    return %arg0, %c0_i32, %c0_i32_0 : i32, i32, i32
  }
  func.func @transform_12(%arg0: i32) -> (i32, i32, i32) {
    %c0_i32 = arith.constant 0 : i32
    %c0_i32_0 = arith.constant 0 : i32
    %c0_i32_1 = arith.constant 0 : i32
    return %arg0, %c0_i32, %c0_i32_0 : i32, i32, i32
  }
  func.func @transform_13(%arg0: i32) -> (i32, i32, i32) {
    %c0_i32 = arith.constant 0 : i32
    %c0_i32_0 = arith.constant 0 : i32
    %c0_i32_1 = arith.constant 0 : i32
    return %arg0, %c0_i32, %c0_i32_0 : i32, i32, i32
  }
  func.func @transform_14(%arg0: i32) -> (i32, i32, i32) {
    %c0_i32 = arith.constant 0 : i32
    %c0_i32_0 = arith.constant 0 : i32
    %c0_i32_1 = arith.constant 0 : i32
    return %arg0, %c0_i32, %c0_i32_0 : i32, i32, i32
  }
  func.func @transform_15(%arg0: i32) -> (i32, i32, i32) {
    %c0_i32 = arith.constant 0 : i32
    %c0_i32_0 = arith.constant 0 : i32
    %c0_i32_1 = arith.constant 0 : i32
    return %arg0, %c0_i32, %c0_i32_0 : i32, i32, i32
  }
  func.func @transform_16(%arg0: i32) -> (i32, i32, i32) {
    %c0_i32 = arith.constant 0 : i32
    %c0_i32_0 = arith.constant 0 : i32
    %c0_i32_1 = arith.constant 0 : i32
    return %arg0, %c0_i32, %c0_i32_0 : i32, i32, i32
  }
  func.func @transform_17(%arg0: i32) -> (i32, i32) {
    %c0_i32 = arith.constant 0 : i32
    %c0_i32_0 = arith.constant 0 : i32
    %c0_i32_1 = arith.constant 0 : i32
    return %c0_i32, %c0_i32_0 : i32, i32
  }
  func.func @transform_18(%arg0: i32) -> (i32, i32) {
    %c0_i32 = arith.constant 0 : i32
    %c0_i32_0 = arith.constant 0 : i32
    %c0_i32_1 = arith.constant 0 : i32
    return %c0_i32, %c0_i32_0 : i32, i32
  }
  func.func @transform_19(%arg0: i32) -> (i32, i32) {
    %c0_i32 = arith.constant 0 : i32
    %c0_i32_0 = arith.constant 0 : i32
    %c0_i32_1 = arith.constant 0 : i32
    return %c0_i32, %c0_i32_0 : i32, i32
  }
  func.func @transform_20(%arg0: i32) -> (i32, i32) {
    %c0_i32 = arith.constant 0 : i32
    %c0_i32_0 = arith.constant 0 : i32
    %c0_i32_1 = arith.constant 0 : i32
    return %c0_i32, %c0_i32_0 : i32, i32
  }
  func.func @transform_21(%arg0: i32) -> (i32, i32) {
    %c0_i32 = arith.constant 0 : i32
    %c0_i32_0 = arith.constant 0 : i32
    %c0_i32_1 = arith.constant 0 : i32
    return %c0_i32, %c0_i32_0 : i32, i32
  }
}

</mosaic_0001>

<bundles_post_ra>
// kernel: a_call__.1
= control target key start
LH: loop header
LB: loop body
LE: loop exit
PB: predicated region body
PF: predicated region fallthrough
CT: control target
= control target key end

     0   :  { %s7292_s0 = inlined_call_operand.vmem [shape: f32[64,128], index: 0, kind: input, shape index: {}]   ;;  %s7293_s1 = inlined_call_operand.vmem [shape: bf16[128,128], index: 1, kind: input, shape index: {}]   ;;  %s7294_s2 = inlined_call_operand.vmem [shape: f32[64,128], index: 2, kind: input, shape index: {}]   ;;  %s7295_s3 = inlined_call_operand.vmem [shape: f32[1,128], index: 3, kind: input, shape index: {}, may-alias: {3,17}]   ;;  %s7296_s4 = inlined_call_operand.vmem [shape: f32[1,128], index: 4, kind: input, shape index: {}, may-alias: {4,18,20}]   ;;  %s7297_s5 = inlined_call_operand.vmem [shape: f32[2,1,128], index: 5, kind: input, shape index: {}, may-alias: {5,11}]   ;;  %s7298_s6 = inlined_call_operand.vmem [shape: f32[2,1,128], index: 6, kind: input, shape index: {}, may-alias: {6,10,12,16}]   ;;  %s7299_s7 = inlined_call_operand.vmem [shape: bf16[2,128,384], index: 7, kind: input, shape index: {}]   ;;  %s7300_s8 = inlined_call_operand.vmem [shape: f32[2,1,384], index: 8, kind: input, shape index: {}]   ;;  %s7301_s9 = inlined_call_operand.vmem [shape: bf16[2,128,128], index: 9, kind: input, shape index: {}]   ;;  %s7302_s10 = inlined_call_operand.vmem [shape: f32[2,1,128], index: 10, kind: input, shape index: {}, may-alias: {6,10,12,16}]   ;;  %s7303_s11 = inlined_call_operand.vmem [shape: f32[2,1,128], index: 11, kind: input, shape index: {}, may-alias: {5,11}]   ;;  %s7304_s12 = inlined_call_operand.vmem [shape: f32[2,1,128], index: 12, kind: input, shape index: {}, may-alias: {6,10,12,16}]   ;;  %s7305_s13 = inlined_call_operand.vmem [shape: bf16[2,128,512], index: 13, kind: input, shape index: {}]   ;;  %s7306_s14 = inlined_call_operand.vmem [shape: f32[2,1,512], index: 14, kind: input, shape index: {}]   ;;  %s7307_s15 = inlined_call_operand.vmem [shape: bf16[2,512,128], index: 15, kind: input, shape index: {}]   ;;  %s7308_s16 = inlined_call_operand.vmem [shape: f32[2,1,128], index: 16, kind: input, shape index: {}, may-alias: {6,10,12,16}]   ;;  %s7309_s17 = inlined_call_operand.vmem [shape: f32[1,128], index: 17, kind: input, shape index: {}, may-alias: {3,17}]   ;;  %s7310_s18 = inlined_call_operand.vmem [shape: f32[1,128], index: 18, kind: input, shape index: {}, may-alias: {4,18,20}]   ;;  %s7311_s19 = inlined_call_operand.vmem [shape: bf16[128,128], index: 19, kind: input, shape index: {}]   ;;  %s7312_s20 = inlined_call_operand.vmem [shape: f32[1,128], index: 20, kind: input, shape index: {}, may-alias: {4,18,20}]   ;;  %s7313_s21 = inlined_call_operand.hbm [shape: f32[2,128], index: 21, kind: output, shape index: {}]  }
   0x1   :  { %7318 = sst [smem:[#allocation7_spill]] %s7292_s0 }
   0x2   :  { %7319 = sst [smem:[#allocation8_spill]] %s7293_s1 }
   0x3   :  { %7320 = sst [smem:[#allocation9_spill]] %s7294_s2 }
   0x4   :  { %7321 = sst [smem:[#allocation10_spill]] %s7295_s3 }
   0x5   :  { %7322 = sst [smem:[#allocation11_spill]] %s7296_s4 }
   0x6   :  { %7323 = sst [smem:[#allocation12_spill]] %s7297_s5 }
   0x7   :  { %7324 = sst [smem:[#allocation13_spill]] %s7299_s7 }
   0x8   :  { %7325 = sst [smem:[#allocation14_spill]] %s7301_s9 }
   0x9   :  { %7326 = sst [smem:[#allocation15_spill]] %s7309_s17 }
   0xa   :  { %7327 = sst [smem:[#allocation16_spill]] %s7310_s18 }
   0xb   :  { %7328 = sst [smem:[#allocation17_spill]] %s7312_s20 }
   0xc   :  { %7329 = sst [smem:[#allocation18_spill]] %s7313_s21 }
   0xd   :  { %26 = vsyncpa [#allocation4], 0  ;;  %s6068_s2 = smov 0  }
   0xe LB: > { %7330 = sst [smem:[#allocation6_spill]] %s5949_s2  ;;  %s6074_s25 = sadd.s32 4294967295, %s5949_s2   ;;  %s5949_s2 = sphi %s6068_s2, %s32_s2  }
   0xf   : > { %p4736_p0 = scmp.ge.s32.totalorder %s5949_s2, 1  ;;  %p679_p1 = scmp.lt.s32.totalorder %s5949_s2, 3 }
  0x11   : > { %p680_p2 = pnand %p4736_p0, %p679_p1 }
  0x12   : > { %p775_p3 = scmp.lt.s32.totalorder (!%p680_p2), %s6074_s25, 1  ;;  %s7332_s9 = sld [smem:[#allocation14_spill]] (!%p680_p2) }
  0x13   : > { %683 = sbr.rel (%p680_p2) target bundleno = 6780 (0x1a7c), region = 104  ;;  %s7333_s7 = sld [smem:[#allocation13_spill]] (!%p680_p2) }
  0x14   : > { %p4745_p4 = scmp.ne.s32.totalorder (!%p680_p2), %s6074_s25, 0 }
  0x18   : > { %s6080_s26 = scalar_select %p775_p3, %s6074_s25, 1 }
  0x19   : > { %s7335_s18 = sld [smem:[#allocation7_spill]] (!%p4745_p4) }
  0x1a   : > { %s5382_s5 = smul.u32 192, %s6080_s26  ;;  %s4938_s22 = sshll.u32 %s6080_s26, 6 }
  0x1b   : > { %s5383_s23 = smul.u32 3, %s6080_s26  ;;  %s6096_s27 = scalar_lea.vmem %s7332_s9, %s4938_s22 }
  0x1c   : > { %s6101_s21 = scalar_lea.vmem %s7333_s7, %s5382_s5  ;;  %s4939_s2 = sshll.u32 %s6080_s26, 8 }
  0x1d   : > { %s6110_s30 = scalar_lea.vmem %s7300_s8, %s5383_s23  ;;  %s6124_s7 = scalar_lea.vmem %s7305_s13, %s4939_s2 }
  0x1e   : > { %s4742_s20 = sshll.u32 %s6080_s26, 2  ;;  %s6135_s17 = scalar_lea.vmem %s7307_s15, %s4939_s2 }
  0x1f   : > { %s6130_s23 = scalar_lea.vmem %s7306_s14, %s4742_s20  ;;  %s820_s24 = scalar_lea.vmem %s7308_s16, %s6080_s26 }
  0x20   : > { %825 = sbr.rel (%p4745_p4) target bundleno = 591 (0x24f), region = 108  ;;  %s7334_s9 = sld [smem:[#allocation8_spill]] (!%p4745_p4) }
  0x21   : > { %s7336_s2 = sld [smem:[#allocation9_spill]] (!%p4745_p4) }
  0x22   : > { %s7338_s29 = sld [smem:[#allocation10_spill]] (!%p4745_p4) }
  0x23   : > { %s7339_s0 = sld [smem:[#allocation11_spill]] (!%p4745_p4) }
  0x25   : > { %v826_v4 = vld [vmem:[%s7335_s18] sm:$0xff]  ;;  %v827_v5 = vld [vmem:[%s7335_s18 + $0x8] sm:$0xff]  ;;  %v828_v14 = vld [vmem:[%s7335_s18 + $0x10] sm:$0xff] }
  0x26   : > { %v5405_v0 = vld [vmem:[%s7334_s9 + $0x38] sm:$0xff]   ;;  %v5406_v1 = vld [vmem:[%s7334_s9 + $0x30] sm:$0xff]   ;;  %v5407_v2 = vld [vmem:[%s7334_s9 + $0x28] sm:$0xff]   ;;  %v834_v7 = vpack.c.bf16 %v827_v5, %v826_v4 }
  0x27   : > { %5130 = vmatprep.subr.bf16.mxu0 %v5405_v0  ;;  %5350 = vmatprep.subr.bf16.mxu1 %v5405_v0  ;;  %v5408_v3 = vld [vmem:[%s7334_s9 + $0x20] sm:$0xff]   ;;  %v831_v8 = vld [vmem:[%s7335_s18 + $0x28] sm:$0xff]  ;;  %v5409_v10 = vld [vmem:[%s7334_s9 + $0x18] sm:$0xff]   ;;  %s7337_s20 = smov %s7336_s2 }
  0x28   : > { %5131 = vmatpush3.bf16.msra.mxu0 %v5405_v0  ;;  %5358 = vmatpush3.bf16.msra.mxu1 %v5405_v0  ;;  %v830_v6 = vld [vmem:[%s7335_s18 + $0x20] sm:$0xff]  ;;  %v5410_v11 = vld [vmem:[%s7334_s9 + $0x10] sm:$0xff]   ;;  %v5411_v12 = vld [vmem:[%s7334_s9 + $0x8] sm:$0xff]  }
  0x29   : > { %5132 = vmatprep.subr.bf16.mxu0 %v5406_v1  ;;  %5351 = vmatprep.subr.bf16.mxu1 %v5406_v1  ;;  %v836_v9 = vpack.c.bf16 %v831_v8, %v830_v6  ;;  %v5412_v13 = vld [vmem:[%s7334_s9] sm:$0xff]   ;;  %v829_v15 = vld [vmem:[%s7335_s18 + $0x18] sm:$0xff]  ;;  %v832_v16 = vld [vmem:[%s7335_s18 + $0x30] sm:$0xff] }
  0x2a   : > { %5146 = vmatprep.mubr.bf16.mxu0 %v834_v7  ;;  %v833_v17 = vld [vmem:[%s7335_s18 + $0x38] sm:$0xff]  ;;  %v835_v18 = vpack.c.bf16 %v829_v15, %v828_v14  ;;  %v856_v20 = vld [vmem:[%s7336_s2 + $0x10] sm:$0xff]  ;;  %v854_v23 = vld [vmem:[%s7337_s20] sm:$0xff] }
  0x2b   : > { %5150 = vmatprep.mubr.bf16.mxu1 %v836_v9  ;;  %v837_v19 = vpack.c.bf16 %v833_v17, %v832_v16  ;;  %v857_v27 = vld [vmem:[%s7337_s20 + $0x18] sm:$0xff]  ;;  %v858_v29 = vld [vmem:[%s7337_s20 + $0x20] sm:$0xff]  ;;  %v859_v34 = vld [vmem:[%s7337_s20 + $0x28] sm:$0xff] }
  0x2c   : > { %5133 = vmatpush3.bf16.msra.mxu0 %v5406_v1  ;;  %5359 = vmatpush3.bf16.msra.mxu1 %v5406_v1  ;;  %v855_v37 = vld [vmem:[%s7337_s20 + $0x8] sm:$0xff]  ;;  %v861_v39 = vld [vmem:[%s7337_s20 + $0x38] sm:$0xff]  ;;  %v860_v41 = vld [vmem:[%s7337_s20 + $0x30] sm:$0xff] }
  0x2d   : > { %5134 = vmatprep.subr.bf16.mxu0 %v5407_v2  ;;  %5352 = vmatprep.subr.bf16.mxu1 %v5407_v2 }
  0x30   : > { %5135 = vmatpush3.bf16.msra.mxu0 %v5407_v2  ;;  %5360 = vmatpush3.bf16.msra.mxu1 %v5407_v2 }
  0x31   : > { %5136 = vmatprep.subr.bf16.mxu0 %v5408_v3  ;;  %5353 = vmatprep.subr.bf16.mxu1 %v5408_v3 }
  0x34   : > { %5137 = vmatpush3.bf16.msra.mxu0 %v5408_v3  ;;  %5361 = vmatpush3.bf16.msra.mxu1 %v5408_v3 }
  0x35   : > { %5138 = vmatprep.subr.bf16.mxu0 %v5409_v10  ;;  %5354 = vmatprep.subr.bf16.mxu1 %v5409_v10 }
  0x38   : > { %5139 = vmatpush3.bf16.msra.mxu0 %v5409_v10  ;;  %5362 = vmatpush3.bf16.msra.mxu1 %v5409_v10 }
  0x39   : > { %5140 = vmatprep.subr.bf16.mxu0 %v5410_v11  ;;  %5355 = vmatprep.subr.bf16.mxu1 %v5410_v11 }
  0x3c   : > { %5141 = vmatpush3.bf16.msra.mxu0 %v5410_v11  ;;  %5363 = vmatpush3.bf16.msra.mxu1 %v5410_v11 }
  0x3d   : > { %5142 = vmatprep.subr.bf16.mxu0 %v5411_v12  ;;  %5356 = vmatprep.subr.bf16.mxu1 %v5411_v12 }
  0x40   : > { %5143 = vmatpush3.bf16.msra.mxu0 %v5411_v12  ;;  %5364 = vmatpush3.bf16.msra.mxu1 %v5411_v12 }
  0x41   : > { %5144 = vmatprep.subr.bf16.mxu0 %v5412_v13  ;;  %5357 = vmatprep.subr.bf16.mxu1 %v5412_v13 }
  0x44   : > { %5145 = vmatpush3.bf16.msra.mxu0 %v5412_v13  ;;  %5365 = vmatpush3.bf16.msra.mxu1 %v5412_v13 }
  0x47   : > { %5147 = vmatmul.mubr.bf16.vlgmr.msra.gmra.mxu0 %v835_v18  ;;  %5151 = vmatmul.mubr.bf16.vlgmr.msra.gmra.mxu1 %v837_v19 }
 0x107   : > { %v5148_v21 = vpop.f32.mrf.mxu0  ;;  %v5152_v22 = vpop.f32.mrf.mxu1 }
 0x108   : > { %v953_v24 = vadd.f32 %v5148_v21, %v856_v20  ;;  %v969_v43 = vadd.f32 %v5152_v22, %v860_v41 }
 0x109   : > { %v944_v25 = vpop.f32.mrf.mxu0  ;;  %v960_v26 = vpop.f32.mrf.mxu1 }
 0x10a   : > { %v945_v28 = vadd.f32 %v944_v25, %v854_v23  ;;  %979 = vadd.xlane.f32.xlu1 %v953_v24  ;;  %v961_v35 = vadd.f32 %v960_v26, %v858_v29 }
 0x10b   : > { %v5149_v30 = vpop.f32.mrf.mxu0  ;;  %v5153_v31 = vpop.f32.mrf.mxu1 }
 0x10c   : > { %v956_v32 = vadd.f32 %v5149_v30, %v857_v27  ;;  %975 = vadd.xlane.f32.xlu0 %v945_v28  ;;  %v972_v42 = vadd.f32 %v5153_v31, %v861_v39 }
 0x10d   : > { %v963_v33 = vpop.f32.mrf.mxu1  ;;  %v947_v36 = vpop.f32.mrf.mxu0 }
 0x10e   : > { %981 = vadd.xlane.f32.xlu1 %v956_v32  ;;  %v964_v38 = vadd.f32 %v963_v33, %v859_v34  ;;  %v948_v40 = vadd.f32 %v947_v36, %v855_v37  ;;  %v4754_v34 = vld [vmem:[%s7338_s29] ss:$0 sm:$0xff] }
 0x110   : > { %983 = vadd.xlane.f32.xlu0 %v961_v35 }
 0x112   : > { %985 = vadd.xlane.f32.xlu1 %v964_v38 }
 0x114   : > { %977 = vadd.xlane.f32.xlu0 %v948_v40 }
 0x116   : > { %989 = vadd.xlane.f32.xlu1 %v972_v42 }
 0x118   : > { %987 = vadd.xlane.f32.xlu0 %v969_v43 }
 0x193   : > { %v980_v44 = vpop.xlane.xlu1 %979 }
 0x194   : > { %v994_v45 = vmul.f32 0.0078125, %v980_v44 }
 0x195   : > { %v976_v46 = vpop.xlane.xlu0 %975 }
 0x196   : > { %v6214_v47 = vsub.f32 %v953_v24, %v994_v45  ;;  %v992_v48 = vmul.f32 0.0078125, %v976_v46 }
 0x197   : > { %v982_v49 = vpop.xlane.xlu1 %981 }
 0x198   : > { %v6216_v50 = vsub.f32 %v945_v28, %v992_v48  ;;  %v995_v51 = vmul.f32 0.0078125, %v982_v49  ;;  %v1010_v52 = vmul.f32 %v6214_v47, %v6214_v47 }
 0x199   : > { %v984_v53 = vpop.xlane.xlu0 %983 }
 0x19a   : > { %v6220_v54 = vsub.f32 %v956_v32, %v995_v51  ;;  %v996_v55 = vmul.f32 0.0078125, %v984_v53  ;;  %1020 = vadd.xlane.f32.xlu0 %v1010_v52  ;;  %v1008_v59 = vmul.f32 %v6216_v50, %v6216_v50 }
 0x19b   : > { %v986_v56 = vpop.xlane.xlu1 %985 }
 0x19c   : > { %v6222_v57 = vsub.f32 %v961_v35, %v996_v55  ;;  %v1011_v58 = vmul.f32 %v6220_v54, %v6220_v54  ;;  %v997_v61 = vmul.f32 0.0078125, %v986_v56 }
 0x19d   : > { %v978_v60 = vpop.xlane.xlu0 %977 }
 0x19e   : > { %v993_v62 = vmul.f32 0.0078125, %v978_v60  ;;  %1022 = vadd.xlane.f32.xlu1 %v1011_v58  ;;  %1016 = vadd.xlane.f32.xlu0 %v1008_v59  ;;  %v1012_v1 = vmul.f32 %v6222_v57, %v6222_v57  ;;  %v6232_v3 = vsub.f32 %v964_v38, %v997_v61  ;;  %v4755_v38 = vld [vmem:[%s7339_s0] ss:$0 sm:$0xff] }
 0x19f   : > { %v990_v63 = vpop.xlane.xlu1 %989 }
 0x1a0   : > { %v6228_v0 = vsub.f32 %v948_v40, %v993_v62  ;;  %v999_v4 = vmul.f32 0.0078125, %v990_v63  ;;  %v1013_v9 = vmul.f32 %v6232_v3, %v6232_v3 }
 0x1a1   : > { %v988_v2 = vpop.xlane.xlu0 %987 }
 0x1a2   : > { %v998_v5 = vmul.f32 0.0078125, %v988_v2  ;;  %1024 = vadd.xlane.f32.xlu0 %v1012_v1  ;;  %v1009_v6 = vmul.f32 %v6228_v0, %v6228_v0  ;;  %v6238_v8 = vsub.f32 %v972_v42, %v999_v4 }
 0x1a4   : > { %v6236_v7 = vsub.f32 %v969_v43, %v998_v5  ;;  %1018 = vadd.xlane.f32.xlu1 %v1009_v6  ;;  %v1015_v11 = vmul.f32 %v6238_v8, %v6238_v8 }
 0x1a6   : > { %v1014_v10 = vmul.f32 %v6236_v7, %v6236_v7 }
 0x1a8   : > { %1026 = vadd.xlane.f32.xlu1 %v1013_v9  ;;  %1028 = vadd.xlane.f32.xlu0 %v1014_v10 }
 0x1ac   : > { %1030 = vadd.xlane.f32.xlu1 %v1015_v11 }
 0x223   : > { %v1021_v12 = vpop.xlane.xlu0 %1020 }
 0x224   : > { %v1034_v13 = vmul.f32 0.0078125, %v1021_v12 }
 0x226   : > { %v1042_v14 = vadd.f32 1e-05, %v1034_v13 }
 0x227   : > { %v1023_v15 = vpop.xlane.xlu1 %1022  ;;  %v1017_v16 = vpop.xlane.xlu0 %1016 }
 0x228   : > { %5413 = vrsqrt.f32 %v1042_v14  ;;  %v1035_v17 = vmul.f32 0.0078125, %v1023_v15  ;;  %v1032_v18 = vmul.f32 0.0078125, %v1017_v16 }
 0x22a   : > { %v1043_v19 = vadd.f32 1e-05, %v1035_v17  ;;  %v1040_v20 = vadd.f32 1e-05, %v1032_v18 }
 0x22b   : > { %v1025_v21 = vpop.xlane.xlu0 %1024 }
 0x22c   : > { %5415 = vrsqrt.f32 %v1043_v19  ;;  %v1036_v22 = vmul.f32 0.0078125, %v1025_v21 }
 0x22d   : > { %5417 = vrsqrt.f32 %v1040_v20  ;;  %v1019_v23 = vpop.xlane.xlu1 %1018 }
 0x22e   : > { %v1044_v24 = vadd.f32 1e-05, %v1036_v22  ;;  %v1033_v25 = vmul.f32 0.0078125, %v1019_v23 }
 0x230   : > { %5419 = vrsqrt.f32 %v1044_v24  ;;  %v1041_v26 = vadd.f32 1e-05, %v1033_v25 }
 0x231   : > { %v1027_v27 = vpop.xlane.xlu1 %1026  ;;  %v1029_v28 = vpop.xlane.xlu0 %1028 }
 0x232   : > { %5421 = vrsqrt.f32 %v1041_v26  ;;  %v1037_v29 = vmul.f32 0.0078125, %v1027_v27  ;;  %v1038_v30 = vmul.f32 0.0078125, %v1029_v28 }
 0x234   : > { %v1045_v31 = vadd.f32 1e-05, %v1037_v29  ;;  %v1046_v32 = vadd.f32 1e-05, %v1038_v30 }
 0x235   : > { %v5414_v33 = vpop.eup %5413  ;;  %v1031_v35 = vpop.xlane.xlu1 %1030 }
 0x236   : > { %v1058_v36 = vmul.f32 %v5414_v33, %v6214_v47  ;;  %5423 = vrsqrt.f32 %v1045_v31  ;;  %v1039_v37 = vmul.f32 0.0078125, %v1031_v35 }
 0x237   : > { %5425 = vrsqrt.f32 %v1046_v32 }
 0x238   : > { %v1073_v39 = vmul.f32 %v4754_v34, %v1058_v36  ;;  %v1047_v40 = vadd.f32 1e-05, %v1039_v37 }
 0x239   : > { %v5416_v41 = vpop.eup %5415 }
 0x23a   : > { %v5418_v42 = vpop.eup %5417  ;;  %v1088_v43 = vadd.f32 %v4755_v38, %v1073_v39  ;;  %v1059_v44 = vmul.f32 %v5416_v41, %v6220_v54  ;;  %5427 = vrsqrt.f32 %v1047_v40 }
 0x23b   : > { %v1056_v45 = vmul.f32 %v5418_v42, %v6216_v50 }
 0x23c   : > { %1096 = vst [vmem:[#allocation2 + $0x18] sm:$0xff] %v1088_v43  ;;  %v1074_v46 = vmul.f32 %v4754_v34, %v1059_v44 }
 0x23d   : > { %v5420_v47 = vpop.eup %5419  ;;  %v1071_v48 = vmul.f32 %v4754_v34, %v1056_v45 }
 0x23e   : > { %v1089_v49 = vadd.f32 %v4755_v38, %v1074_v46  ;;  %v1060_v51 = vmul.f32 %v5420_v47, %v6222_v57 }
 0x23f   : > { %v5422_v52 = vpop.eup %5421  ;;  %v1086_v53 = vadd.f32 %v4755_v38, %v1071_v48 }
 0x240   : > { %1097 = vst [vmem:[#allocation2 + $0x10] sm:$0xff] %v1089_v49  ;;  %v1075_v55 = vmul.f32 %v4754_v34, %v1060_v51  ;;  %v1057_v56 = vmul.f32 %v5422_v52, %v6228_v0 }
 0x241   : > { %1094 = vst [vmem:[#allocation2 + $0x30] sm:$0xff] %v1086_v53 }
 0x242   : > { %v1090_v58 = vadd.f32 %v4755_v38, %v1075_v55  ;;  %v1072_v59 = vmul.f32 %v4754_v34, %v1057_v56 }
 0x243   : > { %v5424_v54 = vpop.eup %5423 }
 0x244   : > { %v5426_v60 = vpop.eup %5425  ;;  %1098 = vst [vmem:[#allocation2 + $0x8] sm:$0xff] %v1090_v58  ;;  %v1087_v50 = vadd.f32 %v4755_v38, %v1072_v59  ;;  %v1061_v61 = vmul.f32 %v5424_v54, %v6232_v3 }
 0x245   : > { %v1062_v62 = vmul.f32 %v5426_v60, %v6236_v7 }
 0x246   : > { %1095 = vst [vmem:[#allocation2] sm:$0xff] %v1087_v50  ;;  %v1076_v63 = vmul.f32 %v4754_v34, %v1061_v61 }
 0x247   : > { %v5428_v57 = vpop.eup %5427  ;;  %v1077_v1 = vmul.f32 %v4754_v34, %v1062_v62 }
 0x248   : > { %v1091_v2 = vadd.f32 %v4755_v38, %v1076_v63  ;;  %v1063_v4 = vmul.f32 %v5428_v57, %v6238_v8 }
 0x249   : > { %v1092_v5 = vadd.f32 %v4755_v38, %v1077_v1 }
 0x24a   : > { %1099 = vst [vmem:[#allocation2 + $0x20] sm:$0xff] %v1091_v2  ;;  %v1078_v0 = vmul.f32 %v4754_v34, %v1063_v4 }
 0x24b   : > { %1100 = vst [vmem:[#allocation2 + $0x28] sm:$0xff] %v1092_v5 }
 0x24c   : > { %v1093_v6 = vadd.f32 %v4755_v38, %v1078_v0 }
 0x24e   : > { %1101 = vst [vmem:[#allocation2 + $0x38] sm:$0xff] %v1093_v6 }
 0x24f PF: > { %v1102_v9 = vld [vmem:[#allocation2 + $0x30] sm:$0xff]  ;;  %v1104_v3 = vld [vmem:[#allocation2 + $0x18] sm:$0xff]  ;;  %v1103_v10 = vld [vmem:[#allocation2] sm:$0xff]  ;;  %v5951_v55 = vmov 0   ;;  %s7340_s4 = sld [smem:[#allocation12_spill]]  ;;  %s7342_s29 = scalar_lea.vmem %s7298_s6, %s6080_s26  ;;  %vm1557_vm0 = vcmask 261120  }
 0x250   : > { %1110 = vadd.xlane.f32.xlu0 %v1102_v9  ;;  %1114 = vadd.xlane.f32.xlu1 %v1104_v3  ;;  %v1105_v7 = vld [vmem:[#allocation2 + $0x10] sm:$0xff]  ;;  %v5489_v11 = vld [vmem:[%s6101_s21 + $0xac] ss:$12 sps:$4 sm:$0xff]   ;;  %v5496_v35 = vld [vmem:[%s6101_s21 + $0x7c] ss:$12 sps:$4 sm:$0xff]   ;;  %s5953_s2 = smov 64   ;;  %s7345_s3 = scalar_lea.vmem %s7304_s12, %s6080_s26 }
 0x251   : > { %v5491_v12 = vld [vmem:[%s6101_s21 + $0xa8] ss:$12 sps:$4 sm:$0xff]   ;;  %1410 = vmatprep.subr.bf16.mxu0 %v5489_v11  ;;  %v6283_v30 = vld [vmem:[#allocation2 + $0x20] sm:$0xff]  ;;  %v5494_v32 = vld [vmem:[%s6101_s21 + $0xb0] ss:$12 sps:$4 sm:$0xff]   ;;  %1442 = vmatprep.mubr.bf16.mxu0 %v5951_v55  ;;  %s5954_s28 = smov 32  }
 0x252   : > { %1411 = vmatpush1.bf16.msra.mxu0 %v5491_v12  ;;  %v6278_v28 = vld [vmem:[#allocation2 + $0x8] sm:$0xff]  ;;  %v5492_v31 = vld [vmem:[%s6101_s21 + $0x94] ss:$12 sps:$4 sm:$0xff]   ;;  %v5495_v33 = vld [vmem:[%s6101_s21 + $0x90] ss:$12 sps:$4 sm:$0xff]   ;;  %5154 = vmatprep.subr.bf16.mxu1 %v5494_v32  ;;  %vm2322_vm2 = vcmask 523264  }
 0x253   : > { %v6281_v29 = vld [vmem:[#allocation2 + $0x28] sm:$0xff]  ;;  %1412 = vmatprep.subr.bf16.mxu0 %v5492_v31  ;;  %5155 = vmatpush3.bf16.msra.mxu1 %v5494_v32  ;;  %v5498_v36 = vld [vmem:[%s6101_s21 + $0x98] ss:$12 sps:$4 sm:$0xff]   ;;  %v5508_v44 = vld [vmem:[%s6101_s21 + $0x34] ss:$12 sps:$4 sm:$0xff]   ;;  %vm2327_vm3 = vcmask 785408  }
 0x254   : > { %1112 = vadd.xlane.f32.xlu0 %v1103_v10  ;;  %1116 = vadd.xlane.f32.xlu1 %v1105_v7  ;;  %v5499_v37 = vld [vmem:[%s6101_s21 + $0x78] ss:$12 sps:$4 sm:$0xff]   ;;  %v5502_v39 = vld [vmem:[%s6101_s21 + $0x80] ss:$12 sps:$4 sm:$0xff]   ;;  %v5506_v42 = vld [vmem:[%s6101_s21 + $0x68] ss:$12 sps:$4 sm:$0xff]  }
 0x255   : > { %v6290_v34 = vld [vmem:[#allocation2 + $0x38] sm:$0xff]  ;;  %5156 = vmatprep.subr.bf16.mxu1 %v5498_v36  ;;  %v5500_v38 = vld [vmem:[%s6101_s21 + $0x64] ss:$12 sps:$4 sm:$0xff]   ;;  %v5503_v40 = vld [vmem:[%s6101_s21 + $0x60] ss:$12 sps:$4 sm:$0xff]   ;;  %s7341_s22 = scalar_lea.vmem %s7340_s4, %s6080_s26  ;;  %s7344_s4 = scalar_lea.vmem %s7303_s11, %s6080_s26 }
 0x256   : > { %1413 = vmatpush1.bf16.msra.mxu0 %v5495_v33  ;;  %v5504_v41 = vld [vmem:[%s6101_s21 + $0x4c] ss:$12 sps:$4 sm:$0xff]   ;;  %v5507_v43 = vld [vmem:[%s6101_s21 + $0x48] ss:$12 sps:$4 sm:$0xff]   ;;  %v5510_v45 = vld [vmem:[%s6101_s21 + $0x50] ss:$12 sps:$4 sm:$0xff]  }
 0x257   : > { %1414 = vmatprep.subr.bf16.mxu0 %v5496_v35  ;;  %5157 = vmatpush3.bf16.msra.mxu1 %v5498_v36  ;;  %v5511_v46 = vld [vmem:[%s6101_s21 + $0x30] ss:$12 sps:$4 sm:$0xff]   ;;  %v5514_v48 = vld [vmem:[%s6101_s21 + $0x38] ss:$12 sps:$4 sm:$0xff]   ;;  %v5518_v52 = vld [vmem:[%s6101_s21 + $0x20] ss:$12 sps:$4 sm:$0xff]  }
 0x258   : > { %5158 = vmatprep.subr.bf16.mxu1 %v5502_v39  ;;  %v5512_v47 = vld [vmem:[%s6101_s21 + $0x1c] ss:$12 sps:$4 sm:$0xff]   ;;  %v5515_v49 = vld [vmem:[%s6101_s21 + $0x18] ss:$12 sps:$4 sm:$0xff]   ;;  %v5519_v53 = vld [vmem:[%s6101_s21] ss:$12 sps:$4 sm:$0xff]  }
 0x259   : > { %v5516_v51 = vld [vmem:[%s6101_s21 + $0x4] ss:$12 sps:$4 sm:$0xff]   ;;  %v5520_v56 = vld [vmem:[%s6101_s21 + $0x8] ss:$12 sps:$4 sm:$0xff]   ;;  %s7343_s21 = scalar_lea.vmem %s7302_s10, %s6080_s26  ;;  %p4922_p5 = scmp.ne.s32.totalorder %s6074_s25, 1 }
 0x25a   : > { %1415 = vmatpush1.bf16.msra.mxu0 %v5499_v37  ;;  %s7348_s0 = sld [smem:[#allocation17_spill]] (!%p4922_p5) }
 0x25b   : > { %1416 = vmatprep.subr.bf16.mxu0 %v5500_v38  ;;  %5159 = vmatpush3.bf16.msra.mxu1 %v5502_v39 }
 0x25c   : > { %5160 = vmatprep.subr.bf16.mxu1 %v5506_v42 }
 0x25e   : > { %1417 = vmatpush1.bf16.msra.mxu0 %v5503_v40 }
 0x25f   : > { %1418 = vmatprep.subr.bf16.mxu0 %v5504_v41  ;;  %5161 = vmatpush3.bf16.msra.mxu1 %v5506_v42 }
 0x260   : > { %5162 = vmatprep.subr.bf16.mxu1 %v5510_v45 }
 0x262   : > { %1419 = vmatpush1.bf16.msra.mxu0 %v5507_v43 }
 0x263   : > { %1420 = vmatprep.subr.bf16.mxu0 %v5508_v44  ;;  %5163 = vmatpush3.bf16.msra.mxu1 %v5510_v45 }
 0x264   : > { %5164 = vmatprep.subr.bf16.mxu1 %v5514_v48 }
 0x266   : > { %1421 = vmatpush1.bf16.msra.mxu0 %v5511_v46 }
 0x267   : > { %1422 = vmatprep.subr.bf16.mxu0 %v5512_v47  ;;  %5165 = vmatpush3.bf16.msra.mxu1 %v5514_v48 }
 0x268   : > { %5166 = vmatprep.subr.bf16.mxu1 %v5518_v52 }
 0x26a   : > { %1423 = vmatpush1.bf16.msra.mxu0 %v5515_v49 }
 0x26b   : > { %1424 = vmatprep.subr.bf16.mxu0 %v5516_v51  ;;  %5167 = vmatpush3.bf16.msra.mxu1 %v5518_v52 }
 0x26c   : > { %5168 = vmatprep.subr.bf16.mxu1 %v5520_v56 }
 0x26e   : > { %1425 = vmatpush1.bf16.msra.mxu0 %v5519_v53 }
 0x26f   : > { %5169 = vmatpush3.bf16.msra.mxu1 %v5520_v56 }
 0x2d9   : > { %v1111_v8 = vpop.xlane.xlu0 %1110  ;;  %v1115_v13 = vpop.xlane.xlu1 %1114 }
 0x2da   : > { %v1127_v14 = vmul.f32 0.0078125, %v1111_v8  ;;  %v1129_v15 = vmul.f32 0.0078125, %v1115_v13 }
 0x2dc   : > { %v6262_v16 = vsub.f32 %v1102_v9, %v1127_v14  ;;  %v6264_v17 = vsub.f32 %v1104_v3, %v1129_v15 }
 0x2dd   : > { %v1113_v18 = vpop.xlane.xlu0 %1112  ;;  %v1117_v19 = vpop.xlane.xlu1 %1116 }
 0x2de   : > { %v1128_v20 = vmul.f32 0.0078125, %v1113_v18  ;;  %v1143_v21 = vmul.f32 %v6262_v16, %v6262_v16  ;;  %v1130_v22 = vmul.f32 0.0078125, %v1117_v19  ;;  %v1145_v23 = vmul.f32 %v6264_v17, %v6264_v17 }
 0x2e0   : > { %1151 = vadd.xlane.f32.xlu0 %v1143_v21  ;;  %v6270_v24 = vsub.f32 %v1103_v10, %v1128_v20  ;;  %v6272_v25 = vsub.f32 %v1105_v7, %v1130_v22  ;;  %v4756_v22 = vld [vmem:[%s7341_s22] ss:$0 sm:$0xff] }
 0x2e2   : > { %v1144_v26 = vmul.f32 %v6270_v24, %v6270_v24  ;;  %v1146_v27 = vmul.f32 %v6272_v25, %v6272_v25 }
 0x2e4   : > { %1155 = vadd.xlane.f32.xlu0 %v1145_v23  ;;  %1153 = vadd.xlane.f32.xlu1 %v1144_v26 }
 0x2e8   : > { %1118 = vadd.xlane.f32.xlu0 %v6278_v28  ;;  %1157 = vadd.xlane.f32.xlu1 %v1146_v27 }
 0x2ec   : > { %1122 = vadd.xlane.f32.xlu0 %v6281_v29  ;;  %1120 = vadd.xlane.f32.xlu1 %v6283_v30 }
 0x2f0   : > { %1124 = vadd.xlane.f32.xlu1 %v6290_v34 }
 0x369   : > { %v1152_v58 = vpop.xlane.xlu0 %1151 }
 0x36a   : > { %v1167_v59 = vmul.f32 0.0078125, %v1152_v58 }
 0x36c   : > { %v1175_v54 = vadd.f32 1e-05, %v1167_v59 }
 0x36d   : > { %v1154_v60 = vpop.xlane.xlu1 %1153  ;;  %v1156_v50 = vpop.xlane.xlu0 %1155 }
 0x36e   : > { %5609 = vrsqrt.f32 %v1175_v54  ;;  %v1168_v61 = vmul.f32 0.0078125, %v1154_v60  ;;  %v1169_v62 = vmul.f32 0.0078125, %v1156_v50 }
 0x370   : > { %v1176_v63 = vadd.f32 1e-05, %v1168_v61  ;;  %v1177_v57 = vadd.f32 1e-05, %v1169_v62 }
 0x371   : > { %v1158_v1 = vpop.xlane.xlu1 %1157  ;;  %v1119_v2 = vpop.xlane.xlu0 %1118 }
 0x372   : > { %5611 = vrsqrt.f32 %v1176_v63  ;;  %v1170_v4 = vmul.f32 0.0078125, %v1158_v1  ;;  %v1131_v5 = vmul.f32 0.0078125, %v1119_v2 }
 0x373   : > { %5613 = vrsqrt.f32 %v1177_v57 }
 0x374   : > { %v1178_v0 = vadd.f32 1e-05, %v1170_v4  ;;  %v1139_v6 = vsub.f32 %v6278_v28, %v1131_v5 }
 0x375   : > { %v1121_v9 = vpop.xlane.xlu1 %1120  ;;  %v1123_v3 = vpop.xlane.xlu0 %1122 }
 0x376   : > { %5615 = vrsqrt.f32 %v1178_v0  ;;  %v1132_v10 = vmul.f32 0.0078125, %v1121_v9  ;;  %v1133_v7 = vmul.f32 0.0078125, %v1123_v3  ;;  %v1147_v11 = vmul.f32 %v1139_v6, %v1139_v6 }
 0x377   : > { %v1267_v9 = vlaneseq }
 0x378   : > { %1159 = vadd.xlane.f32.xlu0 %v1147_v11  ;;  %v1140_v12 = vsub.f32 %v6283_v30, %v1132_v10  ;;  %v1141_v8 = vsub.f32 %v6281_v29, %v1133_v7  ;;  %v4757_v30 = vld [vmem:[%s7342_s29] ss:$0 sm:$0xff] }
 0x379   : > { %v1125_v13 = vpop.xlane.xlu1 %1124  ;;  %v6335_v3 = vshrl.u32 %v1267_v9, 7  ;;  %v1265_v7 = vld [vmem:[%s6110_s30] sm:$0x7]  ;;  %s5952_s30 = smov 96  }
 0x37a   : > { %v1134_v14 = vmul.f32 0.0078125, %v1125_v13  ;;  %v1148_v15 = vmul.f32 %v1140_v12, %v1140_v12  ;;  %v1149_v18 = vmul.f32 %v1141_v8, %v1141_v8 }
 0x37b   : > { %v5610_v19 = vpop.eup %5609  ;;  %v1269_v10 = vsub.s32 0, %v6335_v3 }
 0x37c   : > { %1161 = vadd.xlane.f32.xlu1 %v1148_v15  ;;  %1163 = vadd.xlane.f32.xlu0 %v1149_v18  ;;  %v1142_v20 = vsub.f32 %v6290_v34, %v1134_v14  ;;  %v1191_v21 = vmul.f32 %v5610_v19, %v6262_v16 }
 0x37e   : > { %v1150_v23 = vmul.f32 %v1142_v20, %v1142_v20  ;;  %v1206_v29 = vmul.f32 %v4756_v22, %v1191_v21  ;;  %v1273_v21 = vsub.s32 1, %v6335_v3 }
 0x37f   : > { %v5612_v26 = vpop.eup %5611 }
 0x380   : > { %v5614_v27 = vpop.eup %5613  ;;  %1165 = vadd.xlane.f32.xlu1 %v1150_v23  ;;  %v1192_v28 = vmul.f32 %v5612_v26, %v6270_v24  ;;  %v1221_v33 = vadd.f32 %v4757_v30, %v1206_v29 }
 0x381   : > { %v1193_v31 = vmul.f32 %v5614_v27, %v6264_v17  ;;  %v6352_v27 = vrot.slane %v1265_v7, %v1273_v21 }
 0x382   : > { %v1207_v16 = vmul.f32 %v4756_v22, %v1192_v28 }
 0x383   : > { %v5616_v32 = vpop.eup %5615  ;;  %v1208_v36 = vmul.f32 %v4756_v22, %v1193_v31 }
 0x384   : > { %v1222_v34 = vadd.f32 %v4757_v30, %v1207_v16  ;;  %v1194_v35 = vmul.f32 %v5616_v32, %v6272_v25 }
 0x385   : > { %v1223_v24 = vadd.f32 %v4757_v30, %v1208_v36 }
 0x386   : > { %v1229_v37 = vpack.c.bf16 %v1222_v34, %v1221_v33  ;;  %v1209_v38 = vmul.f32 %v4756_v22, %v1194_v35  ;;  %v1277_v33 = vsub.s32 2, %v6335_v3 }
 0x388   : > { %1443 = vmatmul.mubr.bf16.vlgmr.msra.gmra.mxu0 %v1229_v37  ;;  %5170 = vmatprep.mubr.bf16.mxu1 %v1229_v37  ;;  %v1224_v39 = vadd.f32 %v4757_v30, %v1209_v38  ;;  %v1278_v38 = vrot.slane %v1265_v7, %v1277_v33 }
 0x389   : > { %1452 = vmatprep.mubr.bf16.mxu0 %v5951_v55 }
 0x38a   : > { %v1230_v40 = vpack.c.bf16 %v1224_v39, %v1223_v24 }
 0x38c   : > { %5171 = vmatmul.mubr.bf16.vlgmr.msra.gmra.mxu1 %v1230_v40 }
 0x390   : > { %1453 = vmatmul.mubr.bf16.gmra.mxu0 %v1230_v40 }
 0x391   : > { %1462 = vmatprep.mubr.bf16.mxu0 %v5951_v55 }
 0x401   : > { %v1160_v17 = vpop.xlane.xlu0 %1159 }
 0x402   : > { %v1171_v41 = vmul.f32 0.0078125, %v1160_v17 }
 0x404   : > { %v1179_v42 = vadd.f32 1e-05, %v1171_v41 }
 0x405   : > { %v1162_v43 = vpop.xlane.xlu1 %1161  ;;  %v1164_v44 = vpop.xlane.xlu0 %1163 }
 0x406   : > { %5617 = vrsqrt.f32 %v1179_v42  ;;  %v1172_v25 = vmul.f32 0.0078125, %v1162_v43  ;;  %v1173_v45 = vmul.f32 0.0078125, %v1164_v44 }
 0x408   : > { %v1180_v46 = vadd.f32 1e-05, %v1172_v25  ;;  %v1181_v47 = vadd.f32 1e-05, %v1173_v45 }
 0x409   : > { %v1166_v48 = vpop.xlane.xlu1 %1165 }
 0x40a   : > { %5619 = vrsqrt.f32 %v1180_v46  ;;  %v1174_v49 = vmul.f32 0.0078125, %v1166_v48 }
 0x40b   : > { %5621 = vrsqrt.f32 %v1181_v47 }
 0x40c   : > { %v1182_v51 = vadd.f32 1e-05, %v1174_v49 }
 0x40e   : > { %5623 = vrsqrt.f32 %v1182_v51 }
 0x413   : > { %v5618_v52 = vpop.eup %5617 }
 0x414   : > { %v1195_v53 = vmul.f32 %v5618_v52, %v1139_v6 }
 0x416   : > { %v1210_v54 = vmul.f32 %v4756_v22, %v1195_v53 }
 0x417   : > { %v5620_v56 = vpop.eup %5619 }
 0x418   : > { %v5622_v58 = vpop.eup %5621  ;;  %v1196_v59 = vmul.f32 %v5620_v56, %v1140_v12  ;;  %v1225_v62 = vadd.f32 %v4757_v30, %v1210_v54  ;;  %v6341_v12 = vrot.slane %v1265_v7, %v1269_v10 }
 0x419   : > { %v1197_v60 = vmul.f32 %v5622_v58, %v1141_v8 }
 0x41a   : > { %v1211_v50 = vmul.f32 %v4756_v22, %v1196_v59 }
 0x41b   : > { %v5624_v61 = vpop.eup %5623  ;;  %v1212_v1 = vmul.f32 %v4756_v22, %v1197_v60 }
 0x41c   : > { %v1226_v63 = vadd.f32 %v4757_v30, %v1211_v50  ;;  %v1198_v57 = vmul.f32 %v5624_v61, %v1142_v20 }
 0x41d   : > { %v1227_v5 = vadd.f32 %v4757_v30, %v1212_v1 }
 0x41e   : > { %v1231_v2 = vpack.c.bf16 %v1226_v63, %v1225_v62  ;;  %v1213_v4 = vmul.f32 %v4756_v22, %v1198_v57 }
 0x420   : > { %1463 = vmatmul.mubr.bf16.gmra.mxu0 %v1231_v2  ;;  %5174 = vmatprep.mubr.bf16.mxu1 %v1231_v2  ;;  %v1228_v0 = vadd.f32 %v4757_v30, %v1213_v4 }
 0x421   : > { %1472 = vmatprep.mubr.bf16.mxu0 %v5951_v55 }
 0x422   : > { %v1232_v6 = vpack.c.bf16 %v1228_v0, %v1227_v5 }
 0x424   : > { %5175 = vmatmul.mubr.bf16.gmra.mxu1 %v1232_v6 }
 0x428   : > { %1473 = vmatmul.mubr.bf16.gmra.mxu0 %v1232_v6 }
 0x448   : > { %v1444_v11 = vpop.f32.mrf.mxu0 }
 0x449   : > { %v1445_v14 = vadd.f32 %v1444_v11, %v6341_v12 }
 0x44a   : > { %v1446_v8 = vpop.f32.mrf.mxu0 }
 0x44b   : > { %v1447_v32 = vadd.f32 %v1446_v8, %v6352_v27 }
 0x44c   : > { %v1448_v13 = vpop.f32.mrf.mxu0  ;;  %v5172_v23 = vpop.f32.mrf.mxu1 }
 0x44d   : > { %v1449_v15 = vadd.f32 %v1448_v13, %v6341_v12  ;;  %v1526_v39 = vadd.f32 %v5172_v23, %v1278_v38 }
 0x44e   : > { %v1450_v18 = vpop.f32.mrf.mxu0  ;;  %v1517_v16 = vpop.f32.mrf.mxu1 }
 0x44f   : > { %v6345_v19 = vpack.c.bf16 %v1449_v15, %v1445_v14  ;;  %v1451_v29 = vadd.f32 %v1450_v18, %v6352_v27  ;;  %v1518_v25 = vadd.f32 %v1517_v16, %v1278_v38  ;;  %v6406_v14 = vand.u32 127, %v1267_v9 }
 0x450   : > { %v1454_v20 = vpop.f32.mrf.mxu0  ;;  %v5173_v37 = vpop.f32.mrf.mxu1 }
 0x451   : > { %5182 = vmatprep.mubr.msk.bf16.mxu1 %vm1557_vm0, %v6345_v19  ;;  %v6361_v35 = vpack.c.bf16 %v1451_v29, %v1447_v32  ;;  %v1529_v24 = vadd.f32 %v5173_v37, %v1278_v38  ;;  %v1455_v43 = vadd.f32 %v1454_v20, %v6341_v12  ;;  %vm1550_vm1 = vcmp.lt.s32.totalorder %v6406_v14, 17 }
 0x452   : > { %v1456_v22 = vpop.f32.mrf.mxu0  ;;  %v1520_v41 = vpop.f32.mrf.mxu1 }
 0x453   : > { %v1457_v30 = vadd.f32 %v1456_v22, %v6352_v27  ;;  %v6371_v40 = vpack.c.bf16 %v1529_v24, %v1526_v39  ;;  %v1565_v17 = vsel %vm1557_vm0, %v6361_v35, 0  ;;  %v1521_v44 = vadd.f32 %v1520_v41, %v1278_v38 }
 0x454   : > { %v1458_v26 = vpop.f32.mrf.mxu0 }
 0x455   : > { %v1459_v42 = vadd.f32 %v1458_v26, %v6341_v12  ;;  %v6380_v46 = vpack.c.bf16 %v1521_v44, %v1518_v25 }
 0x456   : > { %v1460_v28 = vpop.f32.mrf.mxu0 }
 0x457   : > { %v1461_v31 = vadd.f32 %v1460_v28, %v6352_v27  ;;  %v6378_v45 = vpack.c.bf16 %v1459_v42, %v1455_v43 }
 0x459   : > { %v6359_v34 = vpack.c.bf16 %v1461_v31, %v1457_v30 }
 0x45b   : > { %5366 = vmatprep.subr.msk.bf16.mxu1 %vm1557_vm0, %v6359_v34  ;;  %v1568_v36 = vsel %vm1557_vm0, %v6359_v34, 0 }
 0x45c   : > { %5179 = vmatpush3.bf16.xpose.msra.mxu1 %v1568_v36 }
 0x45d   : > { %5367 = vmatprep.subr.msk.bf16.mxu1 %vm1557_vm0, %v6361_v35 }
 0x464   : > { %5181 = vmatpush3.bf16.xpose.msra.mxu1 %v1565_v17 }
 0x465   : > { %5186 = vmatprep.subr.bf16.mxu1 %v6371_v40 }
 0x46b   : > { %5183 = vmatmul.mubr.msk.bf16.vlgmr.msra.gmra.mxu1 %vm1557_vm0, %v6378_v45 }
 0x46c   : > { %5187 = vmatpush3.bf16.msra.mxu1 %v6371_v40 }
 0x46d   : > { %5188 = vmatprep.subr.bf16.mxu1 %v6380_v46 }
 0x470   : > { %5189 = vmatpush3.bf16.msra.mxu1 %v6380_v46 }
 0x4e0   : > { %v1464_v47 = vpop.f32.mrf.mxu0 }
 0x4e1   : > { %v1465_v52 = vadd.f32 %v1464_v47, %v6341_v12 }
 0x4e2   : > { %v1466_v48 = vpop.f32.mrf.mxu0 }
 0x4e3   : > { %v1467_v59 = vadd.f32 %v1466_v48, %v6352_v27 }
 0x4e4   : > { %v1468_v49 = vpop.f32.mrf.mxu0  ;;  %v5176_v51 = vpop.f32.mrf.mxu1 }
 0x4e5   : > { %v1469_v53 = vadd.f32 %v1468_v49, %v6341_v12  ;;  %v1542_v62 = vadd.f32 %v5176_v51, %v1278_v38 }
 0x4e6   : > { %v1470_v56 = vpop.f32.mrf.mxu0  ;;  %v1533_v58 = vpop.f32.mrf.mxu1 }
 0x4e7   : > { %v6390_v54 = vpack.c.bf16 %v1469_v53, %v1465_v52  ;;  %v1471_v60 = vadd.f32 %v1470_v56, %v6352_v27  ;;  %v1534_v4 = vadd.f32 %v1533_v58, %v1278_v38 }
 0x4e8   : > { %v1474_v50 = vpop.f32.mrf.mxu0  ;;  %v5177_v61 = vpop.f32.mrf.mxu1 }
 0x4e9   : > { %v6393_v63 = vpack.c.bf16 %v1471_v60, %v1467_v59  ;;  %v1545_v57 = vadd.f32 %v5177_v61, %v1278_v38  ;;  %v1475_v7 = vadd.f32 %v1474_v50, %v6341_v12 }
 0x4ea   : > { %v6395_v1 = vpop.f32.mrf.mxu0  ;;  %v1536_v2 = vpop.f32.mrf.mxu1 }
 0x4eb   : > { %v6397_v5 = vpack.c.bf16 %v1545_v57, %v1542_v62  ;;  %v1537_v0 = vadd.f32 %v1536_v2, %v1278_v38 }
 0x4ec   : > { %v1478_v6 = vpop.f32.mrf.mxu0 }
 0x4ed   : > { %v6400_v11 = vpack.c.bf16 %v1537_v0, %v1534_v4  ;;  %v1479_v8 = vadd.f32 %v1478_v6, %v6341_v12 }
 0x4ef   : > { %v6403_v13 = vpack.c.bf16 %v1479_v8, %v1475_v7 }
 0x52b   : > { %v5184_v15 = vpop.f32.mrf.mxu1 }
 0x52c   : > { %v1621_v26 = vsel %vm1550_vm1, %v5184_v15, -1e+30 }
 0x52d   : > { %v1604_v18 = vpop.f32.mrf.mxu1  ;;  %v1629_v9 = vsel %vm1557_vm0, %v1621_v26, -inf }
 0x52e   : > { %v1619_v20 = vsel %vm1550_vm1, %v1604_v18, -1e+30 }
 0x52f   : > { %v5185_v22 = vpop.f32.mrf.mxu1  ;;  %v1623_v23 = vsel %vm1557_vm0, %v1619_v20, -inf }
 0x530   : > { %1624 = vmax.xlane.f32.xlu0 %v1623_v23  ;;  %v1622_v30 = vsel %vm1550_vm1, %v5185_v22, -1e+30 }
 0x531   : > { %v1607_v12 = vpop.f32.mrf.mxu1  ;;  %v1632_v31 = vsel %vm1557_vm0, %v1622_v30, -inf }
 0x532   : > { %v1620_v28 = vsel %vm1550_vm1, %v1607_v12, -1e+30 }
 0x533   : > { %v1626_v29 = vsel %vm1557_vm0, %v1620_v28, -inf }
 0x534   : > { %1630 = vmax.xlane.f32.xlu0 %v1629_v9  ;;  %1627 = vmax.xlane.f32.xlu1 %v1626_v29 }
 0x538   : > { %1633 = vmax.xlane.f32.xlu1 %v1632_v31 }
 0x5b9   : > { %v1625_v16 = vpop.xlane.xlu0 %1624 }
 0x5ba   : > { %v1635_v32 = vsub.f32 %v1619_v20, %v1625_v16 }
 0x5bc   : > { %v1639_v24 = vmul.f32 1.442695, %v1635_v32 }
 0x5bd   : > { %v1631_v36 = vpop.xlane.xlu0 %1630  ;;  %v1628_v37 = vpop.xlane.xlu1 %1627 }
 0x5be   : > { %v1637_v38 = vsub.f32 %v1621_v26, %v1631_v36  ;;  %v1636_v17 = vsub.f32 %v1620_v28, %v1628_v37  ;;  %v6459_v37 = vpop.f32.mrf.mxu0 }
 0x5c0   : > { %v1643_v39 = vmul.f32 1.442695, %v1637_v38  ;;  %v1641_v43 = vmul.f32 1.442695, %v1636_v17 }
 0x5c1   : > { %v1634_v41 = vpop.xlane.xlu1 %1633 }
 0x5c2   : > { %5625 = vpow2.f32 %v1643_v39  ;;  %v1638_v42 = vsub.f32 %v1622_v30, %v1634_v41 }
 0x5c3   : > { %5627 = vpow2.f32 %v1639_v24 }
 0x5c4   : > { %v1645_v44 = vmul.f32 1.442695, %v1638_v42 }
 0x5c6   : > { %5629 = vpow2.f32 %v1645_v44 }
 0x5c7   : > { %5631 = vpow2.f32 %v1641_v43 }
 0x5cf   : > { %v5626_v25 = vpop.eup %5625 }
 0x5d0   : > { %v1653_v47 = vsel %vm1557_vm0, %v5626_v25, 0.0  ;;  %v5628_v48 = vpop.eup %5627 }
 0x5d1   : > { %1654 = vadd.xlane.f32.xlu0 %v1653_v47  ;;  %v1647_v51 = vsel %vm1557_vm0, %v5628_v48, 0.0 }
 0x5d3   : > { %v5630_v49 = vpop.eup %5629 }
 0x5d4   : > { %v1656_v52 = vsel %vm1557_vm0, %v5630_v49, 0.0  ;;  %v5632_v53 = vpop.eup %5631 }
 0x5d5   : > { %1648 = vadd.xlane.f32.xlu0 %v1647_v51  ;;  %1657 = vadd.xlane.f32.xlu1 %v1656_v52  ;;  %v1650_v56 = vsel %vm1557_vm0, %v5632_v53, 0.0 }
 0x5d9   : > { %1651 = vadd.xlane.f32.xlu1 %v1650_v56 }
 0x5ea   : > { %1732 = vrot.lane.b32.xlu1 %v6361_v35, %s5952_s30 }
 0x5eb   : > { %1734 = vrot.lane.b32.xlu0 %v6359_v34, %s5952_s30 }
 0x5ee   : > { %1916 = vrot.lane.b32.xlu1 %v6359_v34, %s5953_s2 }
 0x5ef   : > { %1728 = vrot.lane.b32.xlu0 %v6378_v45, %s5952_s30 }
 0x5f2   : > { %1726 = vrot.lane.b32.xlu1 %v6345_v19, %s5952_s30 }
 0x5f3   : > { %1910 = vrot.lane.b32.xlu0 %v6345_v19, %s5953_s2 }
 0x5f6   : > { %1914 = vrot.lane.b32.xlu1 %v6361_v35, %s5953_s2 }
 0x5fa   : > { %1912 = vrot.lane.b32.xlu1 %v6378_v45, %s5953_s2 }
 0x65a   : > { %v1655_v58 = vpop.xlane.xlu0 %1654 }
 0x65e   : > { %v1649_v59 = vpop.xlane.xlu0 %1648  ;;  %v1658_v60 = vpop.xlane.xlu1 %1657 }
 0x65f   : > { %5633 = vrcp.f32 %v1658_v60 }
 0x660   : > { %5635 = vrcp.f32 %v1649_v59 }
 0x661   : > { %5637 = vrcp.f32 %v1655_v58 }
 0x662   : > { %v1735_v50 = vpop.permute.xlu0 %1734  ;;  %v1652_v61 = vpop.xlane.xlu1 %1651 }
 0x663   : > { %5639 = vrcp.f32 %v1652_v61  ;;  %5368 = vmatprep.subr.msk.bf16.mxu1 %vm1557_vm0, %v1735_v50  ;;  %v1746_v30 = vsel %vm1557_vm0, %v1735_v50, 0 }
 0x666   : > { %v1729_v62 = vpop.permute.xlu0 %1728  ;;  %v1733_v57 = vpop.permute.xlu1 %1732 }
 0x667   : > { %v1743_v16 = vsel %vm1557_vm0, %v1733_v57, 0 }
 0x66a   : > { %v1911_v2 = vpop.permute.xlu0 %1910  ;;  %v1917_v4 = vpop.permute.xlu1 %1916 }
 0x66b   : > { %5370 = vmatprep.subr.msk.bf16.mxu0 %vm1557_vm0, %v1917_v4  ;;  %5214 = vmatprep.mubr.msk.bf16.mxu0 %vm1557_vm0, %v1911_v2  ;;  %v1928_v0 = vsel %vm1557_vm0, %v1917_v4, 0 }
 0x66c   : > { %5211 = vmatpush3.bf16.xpose.msra.mxu0 %v1928_v0  ;;  %v5634_v6 = vpop.eup %5633 }
 0x66d   : > { %v5636_v7 = vpop.eup %5635  ;;  %v1666_v20 = vmul.f32 %v5634_v6, %v5630_v49 }
 0x66e   : > { %v1727_v8 = vpop.permute.xlu1 %1726  ;;  %v5638_v15 = vpop.eup %5637  ;;  %v1660_v22 = vmul.f32 %v5636_v7, %v5628_v48 }
 0x66f   : > { %v1664_v12 = vmul.f32 %v5638_v15, %v5626_v25 }
 0x670   : > { %v5640_v18 = vpop.eup %5639 }
 0x671   : > { %v1662_v23 = vmul.f32 %v5640_v18, %v5632_v53  ;;  %v1668_v29 = vpack.c.bf16 %v1666_v20, %v1664_v12 }
 0x672   : > { %v1915_v26 = vpop.permute.xlu1 %1914 }
 0x673   : > { %5371 = vmatprep.subr.msk.bf16.mxu0 %vm1557_vm0, %v1915_v26  ;;  %v1925_v28 = vsel %vm1557_vm0, %v1915_v26, 0  ;;  %v1667_v9 = vpack.c.bf16 %v1662_v23, %v1660_v22 }
 0x674   : > { %5213 = vmatpush3.bf16.xpose.msra.mxu0 %v1925_v28 }
 0x675   : > { %5190 = vmatprep.mubr.msk.bf16.mxu1 %vm1557_vm0, %v1667_v9 }
 0x676   : > { %5191 = vmatmul.mubr.msk.bf16.vlgmr.msra.gmra.mxu1 %vm1557_vm0, %v1668_v29  ;;  %v1913_v31 = vpop.permute.xlu1 %1912 }
 0x677   : > { %5195 = vmatpush3.bf16.xpose.msra.mxu1 %v1746_v30  ;;  %5198 = vmatprep.mubr.msk.bf16.mxu1 %vm1557_vm0, %v1727_v8 }
 0x678   : > { %5369 = vmatprep.subr.msk.bf16.mxu1 %vm1557_vm0, %v1733_v57 }
 0x67b   : > { %5215 = vmatmul.mubr.msk.bf16.vlgmr.msra.gmra.mxu0 %vm1557_vm0, %v1913_v31 }
 0x67f   : > { %5197 = vmatpush3.bf16.xpose.msra.mxu1 %v1743_v16 }
 0x686   : > { %5199 = vmatmul.mubr.msk.bf16.vlgmr.msra.gmra.mxu1 %vm1557_vm0, %v1729_v62 }
 0x736   : > { %v6455_v32 = vpop.f32.mrf.mxu1 }
 0x738   : > { %v6457_v36 = vpop.f32.mrf.mxu1 }
 0x73a   : > { %v6461_v38 = vpop.f32.mrf.mxu1 }
 0x73b   : > { %v5216_v24 = vpop.f32.mrf.mxu0 }
 0x73c   : > { %v6463_v39 = vpop.f32.mrf.mxu1  ;;  %v1981_v4 = vsel %vm1550_vm1, %v5216_v24, -1e+30 }
 0x73d   : > { %v1964_v17 = vpop.f32.mrf.mxu0  ;;  %v1989_v0 = vsel %vm1557_vm0, %v1981_v4, -inf }
 0x73e   : > { %v1979_v61 = vsel %vm1550_vm1, %v1964_v17, -1e+30 }
 0x73f   : > { %v5217_v42 = vpop.f32.mrf.mxu0  ;;  %v1983_v57 = vsel %vm1557_vm0, %v1979_v61, -inf }
 0x740   : > { %v1982_v62 = vsel %vm1550_vm1, %v5217_v42, -1e+30 }
 0x741   : > { %v1967_v49 = vpop.f32.mrf.mxu0  ;;  %v1992_v2 = vsel %vm1557_vm0, %v1982_v62, -inf }
 0x742   : > { %v1980_v58 = vsel %vm1550_vm1, %v1967_v49, -1e+30 }
 0x743   : > { %v1986_v50 = vsel %vm1557_vm0, %v1980_v58, -inf }
 0x746   : > { %v5200_v41 = vpop.f32.mrf.mxu1 }
 0x747   : > { %v1799_v48 = vsel %vm1550_vm1, %v5200_v41, -1e+30 }
 0x748   : > { %v1782_v43 = vpop.f32.mrf.mxu1  ;;  %v1807_v53 = vsel %vm1557_vm0, %v1799_v48, -inf }
 0x749   : > { %v1797_v44 = vsel %vm1550_vm1, %v1782_v43, -1e+30 }
 0x74a   : > { %v5201_v25 = vpop.f32.mrf.mxu1  ;;  %v1801_v47 = vsel %vm1557_vm0, %v1797_v44, -inf }
 0x74b   : > { %1802 = vmax.xlane.f32.xlu0 %v1801_v47  ;;  %v6481_v59 = vsel %vm1550_vm1, %v5201_v25, -1e+30 }
 0x74c   : > { %v1785_v51 = vpop.f32.mrf.mxu1  ;;  %v1810_v60 = vsel %vm1557_vm0, %v6481_v59, -inf }
 0x74d   : > { %v6472_v52 = vsel %vm1550_vm1, %v1785_v51, -1e+30 }
 0x74e   : > { %v1804_v56 = vsel %vm1557_vm0, %v6472_v52, -inf }
 0x74f   : > { %1808 = vmax.xlane.f32.xlu0 %v1807_v53  ;;  %1805 = vmax.xlane.f32.xlu1 %v1804_v56 }
 0x753   : > { %1811 = vmax.xlane.f32.xlu0 %v1810_v60  ;;  %1987 = vmax.xlane.f32.xlu1 %v1986_v50 }
 0x757   : > { %1984 = vmax.xlane.f32.xlu0 %v1983_v57  ;;  %1993 = vmax.xlane.f32.xlu1 %v1992_v2 }
 0x75b   : > { %1990 = vmax.xlane.f32.xlu0 %v1989_v0 }
 0x7d4   : > { %v1803_v6 = vpop.xlane.xlu0 %1802 }
 0x7d5   : > { %v1813_v24 = vsub.f32 %v1797_v44, %v1803_v6 }
 0x7d7   : > { %v1817_v42 = vmul.f32 1.442695, %v1813_v24 }
 0x7d8   : > { %v1809_v7 = vpop.xlane.xlu0 %1808  ;;  %v1806_v8 = vpop.xlane.xlu1 %1805 }
 0x7d9   : > { %v1815_v9 = vsub.f32 %v1799_v48, %v1809_v7 }
 0x7db   : > { %v1821_v17 = vmul.f32 1.442695, %v1815_v9 }
 0x7dc   : > { %v1812_v15 = vpop.xlane.xlu0 %1811  ;;  %v1988_v18 = vpop.xlane.xlu1 %1987 }
 0x7dd   : > { %v1996_v20 = vsub.f32 %v1980_v58, %v1988_v18 }
 0x7df   : > { %v2001_v22 = vmul.f32 1.442695, %v1996_v20 }
 0x7e0   : > { %v1985_v23 = vpop.xlane.xlu0 %1984  ;;  %v1994_v26 = vpop.xlane.xlu1 %1993 }
 0x7e1   : > { %v1995_v12 = vsub.f32 %v1979_v61, %v1985_v23  ;;  %v1998_v28 = vsub.f32 %v1982_v62, %v1994_v26  ;;  %5641 = vpow2.f32 %v2001_v22  ;;  %v1816_v61 = vsub.f32 %v6481_v59, %v1812_v15 }
 0x7e2   : > { %v1814_v62 = vsub.f32 %v6472_v52, %v1806_v8 }
 0x7e3   : > { %v1999_v29 = vmul.f32 1.442695, %v1995_v12  ;;  %v2005_v30 = vmul.f32 1.442695, %v1998_v28  ;;  %v1823_v57 = vmul.f32 1.442695, %v1816_v61 }
 0x7e4   : > { %v1991_v31 = vpop.xlane.xlu0 %1990  ;;  %v1819_v2 = vmul.f32 1.442695, %v1814_v62 }
 0x7e5   : > { %5643 = vpow2.f32 %v1999_v29  ;;  %v1997_v16 = vsub.f32 %v1981_v4, %v1991_v31 }
 0x7e6   : > { %5645 = vpow2.f32 %v2005_v30 }
 0x7e7   : > { %v2003_v41 = vmul.f32 1.442695, %v1997_v16 }
 0x7e9   : > { %5647 = vpow2.f32 %v2003_v41 }
 0x7ea   : > { %5649 = vpow2.f32 %v1821_v17 }
 0x7eb   : > { %5651 = vpow2.f32 %v1817_v42 }
 0x7ec   : > { %5653 = vpow2.f32 %v1823_v57 }
 0x7ed   : > { %5655 = vpow2.f32 %v1819_v2 }
 0x7ee   : > { %v6495_v43 = vpop.eup %5641 }
 0x7ef   : > { %v2010_v25 = vsel %vm1557_vm0, %v6495_v43, 0.0 }
 0x7f0   : > { %2011 = vadd.xlane.f32.xlu1 %v2010_v25 }
 0x7f2   : > { %v6499_v47 = vpop.eup %5643 }
 0x7f3   : > { %v6501_v48 = vpop.eup %5645  ;;  %v2007_v49 = vsel %vm1557_vm0, %v6499_v47, 0.0 }
 0x7f4   : > { %2008 = vadd.xlane.f32.xlu0 %v2007_v49  ;;  %v2016_v44 = vsel %vm1557_vm0, %v6501_v48, 0.0 }
 0x7f5   : > { %2017 = vadd.xlane.f32.xlu1 %v2016_v44 }
 0x7f6   : > { %v6507_v51 = vpop.eup %5647 }
 0x7f7   : > { %v2013_v53 = vsel %vm1557_vm0, %v6507_v51, 0.0  ;;  %v5650_v56 = vpop.eup %5649 }
 0x7f8   : > { %2014 = vadd.xlane.f32.xlu0 %v2013_v53  ;;  %v1831_v58 = vsel %vm1557_vm0, %v5650_v56, 0.0  ;;  %v5652_v60 = vpop.eup %5651 }
 0x7f9   : > { %v1825_v50 = vsel %vm1557_vm0, %v5652_v60, 0.0  ;;  %v5654_v4 = vpop.eup %5653 }
 0x7fa   : > { %v1834_v0 = vsel %vm1557_vm0, %v5654_v4, 0.0  ;;  %v5656_v59 = vpop.eup %5655 }
 0x7fb   : > { %v1828_v6 = vsel %vm1557_vm0, %v5656_v59, 0.0 }
 0x7fc   : > { %1832 = vadd.xlane.f32.xlu0 %v1831_v58 }
 0x800   : > { %1826 = vadd.xlane.f32.xlu0 %v1825_v50 }
 0x806   : > { %1849 = vrot.lane.b32.xlu1 %v6380_v46, %s5952_s30 }
 0x80a   : > { %2031 = vrot.lane.b32.xlu1 %v6371_v40, %s5953_s2 }
 0x816   : > { %1851 = vrot.lane.b32.xlu0 %v6371_v40, %s5952_s30 }
 0x81a   : > { %2096 = vrot.lane.b32.xlu0 %v6359_v34, %s5954_s28 }
 0x81e   : > { %2090 = vrot.lane.b32.xlu0 %v6345_v19, %s5954_s28 }
 0x82e   : > { %1835 = vadd.xlane.f32.xlu1 %v1834_v0 }
 0x832   : > { %1829 = vadd.xlane.f32.xlu1 %v1828_v6 }
 0x843   : > { %2029 = vrot.lane.b32.xlu1 %v6380_v46, %s5953_s2 }
 0x847   : > { %2094 = vrot.lane.b32.xlu1 %v6361_v35, %s5954_s28 }
 0x84b   : > { %2092 = vrot.lane.b32.xlu1 %v6378_v45, %s5954_s28 }
 0x879   : > { %v2012_v19 = vpop.xlane.xlu1 %2011 }
 0x87a   : > { %5657 = vrcp.f32 %v2012_v19 }
 0x87d   : > { %v2009_v34 = vpop.xlane.xlu0 %2008 }
 0x87e   : > { %v2018_v8 = vpop.xlane.xlu1 %2017  ;;  %5659 = vrcp.f32 %v2009_v34 }
 0x881   : > { %v2015_v52 = vpop.xlane.xlu0 %2014 }
 0x882   : > { %v1850_v18 = vpop.permute.xlu1 %1849 }
 0x885   : > { %v1833_v7 = vpop.xlane.xlu0 %1832 }
 0x886   : > { %v2032_v22 = vpop.permute.xlu1 %2031 }
 0x887   : > { %v5658_v45 = vpop.eup %5657 }
 0x888   : > { %v2022_v42 = vmul.f32 %v5658_v45, %v6495_v43 }
 0x889   : > { %v1827_v15 = vpop.xlane.xlu0 %1826 }
 0x88b   : > { %v5660_v26 = vpop.eup %5659 }
 0x88c   : > { %v2020_v24 = vmul.f32 %v5660_v26, %v6499_v47 }
 0x88d   : > { %v1852_v20 = vpop.permute.xlu0 %1851 }
 0x88e   : > { %5202 = vmatprep.subr.bf16.mxu1 %v1852_v20  ;;  %v2027_v44 = vpack.c.bf16 %v2022_v42, %v2020_v24 }
 0x88f   : > { %5203 = vmatpush3.bf16.msra.mxu1 %v1852_v20 }
 0x890   : > { %5204 = vmatprep.subr.bf16.mxu1 %v1850_v18 }
 0x893   : > { %5205 = vmatpush3.bf16.msra.mxu1 %v1850_v18 }
 0x894   : > { %5218 = vmatprep.subr.bf16.mxu1 %v2032_v22 }
 0x8b7   : > { %v1836_v23 = vpop.xlane.xlu1 %1835 }
 0x8b8   : > { %5661 = vrcp.f32 %v1836_v23 }
 0x8b9   : > { %5663 = vrcp.f32 %v1827_v15 }
 0x8ba   : > { %5665 = vrcp.f32 %v1833_v7 }
 0x8bb   : > { %v1830_v35 = vpop.xlane.xlu1 %1829 }
 0x8bc   : > { %5667 = vrcp.f32 %v1830_v35 }
 0x8bd   : > { %5669 = vrcp.f32 %v2015_v52 }
 0x8be   : > { %5671 = vrcp.f32 %v2018_v8 }
 0x8bf   : > { %v2030_v58 = vpop.permute.xlu1 %2029 }
 0x8c3   : > { %v2095_v62 = vpop.permute.xlu1 %2094 }
 0x8c4   : > { %v2105_v57 = vsel %vm1557_vm0, %v2095_v62, 0 }
 0x8c5   : > { %v5662_v12 = vpop.eup %5661 }
 0x8c6   : > { %v5664_v28 = vpop.eup %5663  ;;  %v1844_v30 = vmul.f32 %v5662_v12, %v5654_v4 }
 0x8c7   : > { %v5666_v9 = vpop.eup %5665  ;;  %v1838_v31 = vmul.f32 %v5664_v28, %v5652_v60  ;;  %v2097_v60 = vpop.permute.xlu0 %2096 }
 0x8c8   : > { %v1842_v17 = vmul.f32 %v5666_v9, %v5650_v56  ;;  %v2108_v50 = vsel %vm1557_vm0, %v2097_v60, 0 }
 0x8c9   : > { %v5668_v29 = vpop.eup %5667 }
 0x8ca   : > { %v1840_v16 = vmul.f32 %v5668_v29, %v5656_v59  ;;  %v1846_v25 = vpack.c.bf16 %v1844_v30, %v1842_v17  ;;  %v5670_v49 = vpop.eup %5669 }
 0x8cb   : > { %v5672_v53 = vpop.eup %5671  ;;  %v2024_v47 = vmul.f32 %v5670_v49, %v6507_v51  ;;  %v2091_v61 = vpop.permute.xlu0 %2090 }
 0x8cc   : > { %v1845_v41 = vpack.c.bf16 %v1840_v16, %v1838_v31  ;;  %v2026_v56 = vmul.f32 %v5672_v53, %v6501_v48  ;;  %v2093_v48 = vpop.permute.xlu1 %2092 }
 0x8ce   : > { %5206 = vmatprep.mubr.msk.bf16.mxu1 %vm1557_vm0, %v1845_v41  ;;  %v2028_v43 = vpack.c.bf16 %v2026_v56, %v2024_v47 }
 0x8cf   : > { %5207 = vmatmul.mubr.msk.bf16.vlgmr.msra.gmra.mxu1 %vm1557_vm0, %v1846_v25 }
 0x8d0   : > { %5219 = vmatpush3.bf16.msra.mxu1 %v2032_v22  ;;  %5222 = vmatprep.mubr.msk.bf16.mxu1 %vm1557_vm0, %v2027_v44 }
 0x8d1   : > { %5220 = vmatprep.subr.bf16.mxu1 %v2030_v58 }
 0x8d4   : > { %5221 = vmatpush3.bf16.msra.mxu1 %v2030_v58 }
 0x8d5   : > { %5372 = vmatprep.subr.msk.bf16.mxu1 %vm1557_vm0, %v2097_v60 }
 0x8d7   : > { %5223 = vmatmul.mubr.msk.bf16.vlgmr.msra.gmra.mxu1 %vm1557_vm0, %v2028_v43 }
 0x8d8   : > { %5227 = vmatpush3.bf16.xpose.msra.mxu1 %v2108_v50  ;;  %5230 = vmatprep.mubr.msk.bf16.mxu1 %vm1557_vm0, %v2091_v61 }
 0x8d9   : > { %5373 = vmatprep.subr.msk.bf16.mxu1 %vm1557_vm0, %v2095_v62 }
 0x8e0   : > { %5229 = vmatpush3.bf16.xpose.msra.mxu1 %v2105_v57 }
 0x8e1   : > { %5250 = vmatprep.subr.bf16.mxu1 %v6397_v5 }
 0x8e7   : > { %5231 = vmatmul.mubr.msk.bf16.vlgmr.msra.gmra.mxu1 %vm1557_vm0, %v2093_v48 }
 0x8e8   : > { %5251 = vmatpush3.bf16.msra.mxu1 %v6397_v5 }
 0x8e9   : > { %5252 = vmatprep.subr.bf16.mxu1 %v6400_v11 }
 0x8ec   : > { %5253 = vmatpush3.bf16.msra.mxu1 %v6400_v11 }
 0x98f   : > { %v6551_v51 = vpop.f32.mrf.mxu1 }
 0x991   : > { %v6553_v2 = vpop.f32.mrf.mxu1 }
 0x993   : > { %v6555_v4 = vpop.f32.mrf.mxu1 }
 0x994   : > { %v5434_v0 = vpack.i.bf16 %v6555_v4, %v6551_v51 }
 0x995   : > { %v6559_v59 = vpop.f32.mrf.mxu1 }
 0x996   : > { %v5429_v6 = vpack.i.bf16 %v6559_v59, %v6553_v2 }
 0x997   : > { %v6563_v34 = vpop.f32.mrf.mxu1 }
 0x999   : > { %v6565_v19 = vpop.f32.mrf.mxu1 }
 0x99b   : > { %v6567_v52 = vpop.f32.mrf.mxu1 }
 0x99c   : > { %v5444_v7 = vpack.i.bf16 %v6567_v52, %v6563_v34 }
 0x99d   : > { %v6571_v8 = vpop.f32.mrf.mxu1 }
 0x99e   : > { %v5439_v15 = vpack.i.bf16 %v6571_v8, %v6565_v19 }
 0x9a7   : > { %v5232_v18 = vpop.f32.mrf.mxu1 }
 0x9a8   : > { %v2161_v45 = vsel %vm1550_vm1, %v5232_v18, -1e+30 }
 0x9a9   : > { %v2144_v20 = vpop.f32.mrf.mxu1  ;;  %v2169_v28 = vsel %vm1557_vm0, %v2161_v45, -inf }
 0x9aa   : > { %v2159_v22 = vsel %vm1550_vm1, %v2144_v20, -1e+30 }
 0x9ab   : > { %v5233_v23 = vpop.f32.mrf.mxu1  ;;  %v2163_v35 = vsel %vm1557_vm0, %v2159_v22, -inf }
 0x9ac   : > { %2164 = vmax.xlane.f32.xlu0 %v2163_v35  ;;  %v2162_v29 = vsel %vm1550_vm1, %v5233_v23, -1e+30 }
 0x9ad   : > { %v2147_v26 = vpop.f32.mrf.mxu1  ;;  %v2172_v30 = vsel %vm1557_vm0, %v2162_v29, -inf }
 0x9ae   : > { %v2160_v12 = vsel %vm1550_vm1, %v2147_v26, -1e+30 }
 0x9af   : > { %v2166_v9 = vsel %vm1557_vm0, %v2160_v12, -inf }
 0x9b0   : > { %2170 = vmax.xlane.f32.xlu0 %v2169_v28  ;;  %2167 = vmax.xlane.f32.xlu1 %v2166_v9 }
 0x9b4   : > { %2173 = vmax.xlane.f32.xlu0 %v2172_v30 }
 0xa35   : > { %v2165_v31 = vpop.xlane.xlu0 %2164 }
 0xa36   : > { %v2175_v16 = vsub.f32 %v2159_v22, %v2165_v31 }
 0xa38   : > { %v2179_v42 = vmul.f32 1.442695, %v2175_v16 }
 0xa39   : > { %v2171_v24 = vpop.xlane.xlu0 %2170  ;;  %v2168_v17 = vpop.xlane.xlu1 %2167 }
 0xa3a   : > { %v2177_v41 = vsub.f32 %v2161_v45, %v2171_v24  ;;  %v2176_v49 = vsub.f32 %v2160_v12, %v2168_v17  ;;  %v1481_v45 = vadd.f32 %v6459_v37, %v6352_v27 }
 0xa3c   : > { %v2183_v25 = vmul.f32 1.442695, %v2177_v41  ;;  %v2181_v58 = vmul.f32 1.442695, %v2176_v49 }
 0xa3d   : > { %v2174_v44 = vpop.xlane.xlu0 %2173 }
 0xa3e   : > { %5673 = vpow2.f32 %v2183_v25  ;;  %v2178_v53 = vsub.f32 %v2162_v29, %v2174_v44 }
 0xa3f   : > { %5675 = vpow2.f32 %v2179_v42 }
 0xa40   : > { %v2185_v60 = vmul.f32 1.442695, %v2178_v53 }
 0xa42   : > { %5677 = vpow2.f32 %v2185_v60 }
 0xa43   : > { %5679 = vpow2.f32 %v2181_v58 }
 0xa4b   : > { %v5674_v47 = vpop.eup %5673 }
 0xa4c   : > { %v2193_v56 = vsel %vm1557_vm0, %v5674_v47, 0.0  ;;  %v5676_v43 = vpop.eup %5675 }
 0xa4d   : > { %2194 = vadd.xlane.f32.xlu0 %v2193_v56  ;;  %v2187_v61 = vsel %vm1557_vm0, %v5676_v43, 0.0 }
 0xa4f   : > { %v5678_v50 = vpop.eup %5677 }
 0xa50   : > { %v2196_v62 = vsel %vm1557_vm0, %v5678_v50, 0.0  ;;  %v5680_v57 = vpop.eup %5679 }
 0xa51   : > { %2188 = vadd.xlane.f32.xlu0 %v2187_v61  ;;  %2197 = vadd.xlane.f32.xlu1 %v2196_v62  ;;  %v2190_v48 = vsel %vm1557_vm0, %v5680_v57, 0.0 }
 0xa55   : > { %2191 = vadd.xlane.f32.xlu1 %v2190_v48 }
 0xa66   : > { %2209 = vrot.lane.b32.xlu1 %v6380_v46, %s5954_s28  ;;  %v1477_v46 = vadd.f32 %v6395_v1, %v6352_v27  ;;  %v2345_v1 = vsel %vm1557_vm0, %v6393_v63, 0 }
 0xa67   : > { %2211 = vrot.lane.b32.xlu0 %v6371_v40, %s5954_s28 }
 0xa68   : > { %v6599_v12 = vpack.c.bf16 %v1481_v45, %v1477_v46 }
 0xa6a   : > { %v2348_v27 = vsel %vm1557_vm0, %v6599_v12, 0 }
 0xad6   : > { %v2195_v18 = vpop.xlane.xlu0 %2194 }
 0xada   : > { %v2189_v20 = vpop.xlane.xlu0 %2188  ;;  %v2198_v22 = vpop.xlane.xlu1 %2197 }
 0xadb   : > { %5681 = vrcp.f32 %v2198_v22 }
 0xadc   : > { %5683 = vrcp.f32 %v2189_v20 }
 0xadd   : > { %5685 = vrcp.f32 %v2195_v18 }
 0xade   : > { %v2212_v23 = vpop.permute.xlu0 %2211  ;;  %v2192_v35 = vpop.xlane.xlu1 %2191 }
 0xadf   : > { %5687 = vrcp.f32 %v2192_v35  ;;  %5234 = vmatprep.subr.bf16.mxu0 %v2212_v23 }
 0xae0   : > { %5235 = vmatpush3.bf16.msra.mxu0 %v2212_v23 }
 0xae2   : > { %v2210_v26 = vpop.permute.xlu1 %2209 }
 0xae3   : > { %5236 = vmatprep.subr.bf16.mxu0 %v2210_v26 }
 0xae4   : > { %5237 = vmatpush3.bf16.msra.mxu0 %v2210_v26 }
 0xae5   : > { %5374 = vmatprep.subr.msk.bf16.mxu0 %vm1557_vm0, %v6599_v12 }
 0xae8   : > { %v5682_v40 = vpop.eup %5681 }
 0xae9   : > { %v5684_v28 = vpop.eup %5683  ;;  %v2206_v30 = vmul.f32 %v5682_v40, %v5678_v50 }
 0xaea   : > { %v5686_v9 = vpop.eup %5685  ;;  %v2200_v37 = vmul.f32 %v5684_v28, %v5676_v43 }
 0xaeb   : > { %v2204_v16 = vmul.f32 %v5686_v9, %v5674_v47 }
 0xaec   : > { %v5688_v29 = vpop.eup %5687 }
 0xaed   : > { %v2202_v31 = vmul.f32 %v5688_v29, %v5680_v57  ;;  %v2208_v17 = vpack.c.bf16 %v2206_v30, %v2204_v16 }
 0xaef   : > { %v2207_v24 = vpack.c.bf16 %v2202_v31, %v2200_v37 }
 0xaf1   : > { %5238 = vmatprep.mubr.msk.bf16.mxu0 %vm1557_vm0, %v2207_v24 }
 0xaf2   : > { %5239 = vmatmul.mubr.msk.bf16.vlgmr.msra.gmra.mxu0 %vm1557_vm0, %v2208_v17 }
 0xaf3   : > { %5243 = vmatpush3.bf16.xpose.msra.mxu0 %v2348_v27  ;;  %5246 = vmatprep.mubr.msk.bf16.mxu0 %vm1557_vm0, %v6390_v54 }
 0xaf4   : > { %5375 = vmatprep.subr.msk.bf16.mxu0 %vm1557_vm0, %v6393_v63 }
 0xafb   : > { %5245 = vmatpush3.bf16.xpose.msra.mxu0 %v2345_v1 }
 0xb02   : > { %5247 = vmatmul.mubr.msk.bf16.vlgmr.msra.gmra.mxu0 %vm1557_vm0, %v6403_v13 }
 0xbb2   : > { %v6615_v41 = vpop.f32.mrf.mxu0 }
 0xbb4   : > { %v6617_v42 = vpop.f32.mrf.mxu0 }
 0xbb6   : > { %v6619_v25 = vpop.f32.mrf.mxu0 }
 0xbb7   : > { %v5454_v49 = vpack.i.bf16 %v6619_v25, %v6615_v41 }
 0xbb8   : > { %v6623_v44 = vpop.f32.mrf.mxu0 }
 0xbb9   : > { %v5449_v53 = vpack.i.bf16 %v6623_v44, %v6617_v42 }
 0xbc2   : > { %v5248_v58 = vpop.f32.mrf.mxu0 }
 0xbc3   : > { %v2401_v18 = vsel %vm1550_vm1, %v5248_v58, -1e+30 }
 0xbc4   : > { %v2384_v60 = vpop.f32.mrf.mxu0  ;;  %v2409_v20 = vsel %vm1557_vm0, %v2401_v18, -inf }
 0xbc5   : > { %v2399_v47 = vsel %vm1550_vm1, %v2384_v60, -1e+30 }
 0xbc6   : > { %v5249_v56 = vpop.f32.mrf.mxu0  ;;  %v2403_v43 = vsel %vm1557_vm0, %v2399_v47, -inf }
 0xbc7   : > { %v2402_v50 = vsel %vm1550_vm1, %v5249_v56, -1e+30  ;;  %2404 = vmax.xlane.f32.xlu1 %v2403_v43 }
 0xbc8   : > { %v2387_v61 = vpop.f32.mrf.mxu0  ;;  %v2412_v57 = vsel %vm1557_vm0, %v2402_v50, -inf }
 0xbc9   : > { %v2400_v62 = vsel %vm1550_vm1, %v2387_v61, -1e+30 }
 0xbca   : > { %v2406_v48 = vsel %vm1557_vm0, %v2400_v62, -inf }
 0xbcb   : > { %2413 = vmax.xlane.f32.xlu1 %v2412_v57  ;;  %2407 = vmax.xlane.f32.xlu0 %v2406_v48 }
 0xbcf   : > { %2410 = vmax.xlane.f32.xlu0 %v2409_v20 }
 0xc50   : > { %v2405_v22 = vpop.xlane.xlu1 %2404 }
 0xc51   : > { %v2415_v26 = vsub.f32 %v2399_v47, %v2405_v22 }
 0xc53   : > { %v2419_v30 = vmul.f32 1.442695, %v2415_v26 }
 0xc54   : > { %v2414_v23 = vpop.xlane.xlu1 %2413  ;;  %v2408_v35 = vpop.xlane.xlu0 %2407 }
 0xc55   : > { %v2418_v45 = vsub.f32 %v2402_v50, %v2414_v23  ;;  %v2416_v46 = vsub.f32 %v2400_v62, %v2408_v35 }
 0xc57   : > { %v2421_v40 = vmul.f32 1.442695, %v2416_v46  ;;  %v2425_v28 = vmul.f32 1.442695, %v2418_v45 }
 0xc58   : > { %v2411_v9 = vpop.xlane.xlu0 %2410 }
 0xc59   : > { %v2417_v29 = vsub.f32 %v2401_v18, %v2411_v9  ;;  %5689 = vpow2.f32 %v2421_v40 }
 0xc5a   : > { %5691 = vpow2.f32 %v2425_v28 }
 0xc5b   : > { %v2423_v37 = vmul.f32 1.442695, %v2417_v29 }
 0xc5d   : > { %5693 = vpow2.f32 %v2423_v37 }
 0xc5e   : > { %5695 = vpow2.f32 %v2419_v30 }
 0xc66   : > { %v5690_v31 = vpop.eup %5689 }
 0xc67   : > { %v2430_v16 = vsel %vm1557_vm0, %v5690_v31, 0.0  ;;  %v5692_v24 = vpop.eup %5691 }
 0xc68   : > { %2431 = vadd.xlane.f32.xlu1 %v2430_v16  ;;  %v2436_v58 = vsel %vm1557_vm0, %v5692_v24, 0.0 }
 0xc6a   : > { %v5694_v17 = vpop.eup %5693 }
 0xc6b   : > { %v2433_v27 = vsel %vm1557_vm0, %v5694_v17, 0.0  ;;  %v5696_v1 = vpop.eup %5695 }
 0xc6c   : > { %2434 = vadd.xlane.f32.xlu0 %v2433_v27  ;;  %2437 = vadd.xlane.f32.xlu1 %v2436_v58  ;;  %v2427_v60 = vsel %vm1557_vm0, %v5696_v1, 0.0 }
 0xc70   : > { %2428 = vadd.xlane.f32.xlu0 %v2427_v60 }
 0xc7d   : > { %2512 = vrot.lane.b32.xlu1 %v6393_v63, %s5952_s30 }
 0xc81   : > { %2506 = vrot.lane.b32.xlu1 %v6390_v54, %s5952_s30 }
 0xc85   : > { %2508 = vrot.lane.b32.xlu1 %v6403_v13, %s5952_s30 }
 0xc86   : > { %2514 = vrot.lane.b32.xlu0 %v6599_v12, %s5952_s30 }
 0xcf1   : > { %v2432_v47 = vpop.xlane.xlu1 %2431 }
 0xcf5   : > { %v2435_v56 = vpop.xlane.xlu0 %2434  ;;  %v2438_v43 = vpop.xlane.xlu1 %2437 }
 0xcf6   : > { %5697 = vrcp.f32 %v2435_v56 }
 0xcf7   : > { %5699 = vrcp.f32 %v2438_v43 }
 0xcf8   : > { %5701 = vrcp.f32 %v2432_v47 }
 0xcf9   : > { %v2429_v50 = vpop.xlane.xlu0 %2428  ;;  %v2513_v20 = vpop.permute.xlu1 %2512 }
 0xcfa   : > { %5703 = vrcp.f32 %v2429_v50  ;;  %v2523_v9 = vsel %vm1557_vm0, %v2513_v20, 0 }
 0xcfd   : > { %v2515_v61 = vpop.permute.xlu0 %2514  ;;  %v2507_v40 = vpop.permute.xlu1 %2506 }
 0xcfe   : > { %5376 = vmatprep.subr.msk.bf16.mxu1 %vm1557_vm0, %v2515_v61  ;;  %v2526_v28 = vsel %vm1557_vm0, %v2515_v61, 0 }
 0xd01   : > { %v2509_v29 = vpop.permute.xlu1 %2508 }
 0xd03   : > { %v5698_v62 = vpop.eup %5697 }
 0xd04   : > { %v5700_v57 = vpop.eup %5699  ;;  %v2444_v22 = vmul.f32 %v5698_v62, %v5694_v17 }
 0xd05   : > { %v5702_v48 = vpop.eup %5701  ;;  %v2446_v23 = vmul.f32 %v5700_v57, %v5692_v24 }
 0xd06   : > { %v2442_v45 = vmul.f32 %v5702_v48, %v5690_v31 }
 0xd07   : > { %v5704_v18 = vpop.eup %5703  ;;  %v2448_v26 = vpack.c.bf16 %v2446_v23, %v2444_v22 }
 0xd08   : > { %v2440_v35 = vmul.f32 %v5704_v18, %v5696_v1 }
 0xd0a   : > { %v2447_v46 = vpack.c.bf16 %v2442_v45, %v2440_v35 }
 0xd0c   : > { %5254 = vmatprep.mubr.msk.bf16.mxu1 %vm1557_vm0, %v2447_v46 }
 0xd0d   : > { %5255 = vmatmul.mubr.msk.bf16.vlgmr.msra.gmra.mxu1 %vm1557_vm0, %v2448_v26 }
 0xd0e   : > { %5259 = vmatpush3.bf16.xpose.msra.mxu1 %v2526_v28  ;;  %5262 = vmatprep.mubr.msk.bf16.mxu1 %vm1557_vm0, %v2507_v40 }
 0xd0f   : > { %5377 = vmatprep.subr.msk.bf16.mxu1 %vm1557_vm0, %v2513_v20 }
 0xd16   : > { %5261 = vmatpush3.bf16.xpose.msra.mxu1 %v2523_v9 }
 0xd1d   : > { %5263 = vmatmul.mubr.msk.bf16.vlgmr.msra.gmra.mxu1 %vm1557_vm0, %v2509_v29 }
 0xdcd   : > { %v6659_v30 = vpop.f32.mrf.mxu1 }
 0xdcf   : > { %v6661_v37 = vpop.f32.mrf.mxu1 }
 0xdd1   : > { %v6663_v31 = vpop.f32.mrf.mxu1 }
 0xdd3   : > { %v6665_v16 = vpop.f32.mrf.mxu1 }
 0xddd   : > { %v5264_v24 = vpop.f32.mrf.mxu1 }
 0xdde   : > { %v2579_v60 = vsel %vm1550_vm1, %v5264_v24, -1e+30 }
 0xddf   : > { %v2562_v17 = vpop.f32.mrf.mxu1  ;;  %v2587_v43 = vsel %vm1557_vm0, %v2579_v60, -inf }
 0xde0   : > { %v2577_v27 = vsel %vm1550_vm1, %v2562_v17, -1e+30 }
 0xde1   : > { %v5265_v1 = vpop.f32.mrf.mxu1  ;;  %v2581_v58 = vsel %vm1557_vm0, %v2577_v27, -inf }
 0xde2   : > { %2582 = vmax.xlane.f32.xlu0 %v2581_v58  ;;  %v2580_v61 = vsel %vm1550_vm1, %v5265_v1, -1e+30 }
 0xde3   : > { %v2565_v47 = vpop.f32.mrf.mxu1  ;;  %v2590_v62 = vsel %vm1557_vm0, %v2580_v61, -inf }
 0xde4   : > { %v2578_v56 = vsel %vm1550_vm1, %v2565_v47, -1e+30 }
 0xde5   : > { %v2584_v50 = vsel %vm1557_vm0, %v2578_v56, -inf }
 0xde6   : > { %2588 = vmax.xlane.f32.xlu0 %v2587_v43  ;;  %2585 = vmax.xlane.f32.xlu1 %v2584_v50 }
 0xdea   : > { %2591 = vmax.xlane.f32.xlu0 %v2590_v62 }
 0xdf7   : > { %2629 = vrot.lane.b32.xlu1 %v6400_v11, %s5952_s30 }
 0xe6b   : > { %v2583_v57 = vpop.xlane.xlu0 %2582 }
 0xe6c   : > { %v2593_v48 = vsub.f32 %v2577_v27, %v2583_v57 }
 0xe6e   : > { %v2597_v23 = vmul.f32 1.442695, %v2593_v48 }
 0xe6f   : > { %v2589_v18 = vpop.xlane.xlu0 %2588  ;;  %v2586_v20 = vpop.xlane.xlu1 %2585 }
 0xe70   : > { %v2595_v22 = vsub.f32 %v2579_v60, %v2589_v18  ;;  %v2594_v45 = vsub.f32 %v2578_v56, %v2586_v20 }
 0xe72   : > { %v2601_v35 = vmul.f32 1.442695, %v2595_v22  ;;  %v2599_v40 = vmul.f32 1.442695, %v2594_v45 }
 0xe73   : > { %v2592_v46 = vpop.xlane.xlu0 %2591  ;;  %v2630_v47 = vpop.permute.xlu1 %2629 }
 0xe74   : > { %5705 = vpow2.f32 %v2601_v35  ;;  %v2596_v26 = vsub.f32 %v2580_v61, %v2592_v46 }
 0xe75   : > { %5707 = vpow2.f32 %v2597_v23 }
 0xe76   : > { %v2603_v28 = vmul.f32 1.442695, %v2596_v26 }
 0xe78   : > { %5709 = vpow2.f32 %v2603_v28 }
 0xe79   : > { %5711 = vpow2.f32 %v2599_v40 }
 0xe81   : > { %v5706_v9 = vpop.eup %5705 }
 0xe82   : > { %v2611_v29 = vsel %vm1557_vm0, %v5706_v9, 0.0  ;;  %v5708_v24 = vpop.eup %5707 }
 0xe83   : > { %2612 = vadd.xlane.f32.xlu0 %v2611_v29  ;;  %v2605_v27 = vsel %vm1557_vm0, %v5708_v24, 0.0 }
 0xe85   : > { %v5710_v17 = vpop.eup %5709 }
 0xe86   : > { %v2614_v1 = vsel %vm1557_vm0, %v5710_v17, 0.0  ;;  %v5712_v58 = vpop.eup %5711 }
 0xe87   : > { %2606 = vadd.xlane.f32.xlu0 %v2605_v27  ;;  %2615 = vadd.xlane.f32.xlu1 %v2614_v1  ;;  %v2608_v60 = vsel %vm1557_vm0, %v5712_v58, 0.0 }
 0xe8b   : > { %2609 = vadd.xlane.f32.xlu1 %v2608_v60 }
 0xe9c   : > { %2696 = vrot.lane.b32.xlu1 %v6599_v12, %s5953_s2 }
 0xe9d   : > { %2631 = vrot.lane.b32.xlu0 %v6397_v5, %s5952_s30 }
 0xea0   : > { %2694 = vrot.lane.b32.xlu1 %v6393_v63, %s5953_s2 }
 0xea1   : > { %2690 = vrot.lane.b32.xlu0 %v6390_v54, %s5953_s2 }
 0xea4   : > { %2692 = vrot.lane.b32.xlu1 %v6403_v13, %s5953_s2 }
 0xf0c   : > { %v2613_v56 = vpop.xlane.xlu0 %2612 }
 0xf10   : > { %v2607_v43 = vpop.xlane.xlu0 %2606  ;;  %v2616_v50 = vpop.xlane.xlu1 %2615 }
 0xf11   : > { %5713 = vrcp.f32 %v2616_v50 }
 0xf12   : > { %5715 = vrcp.f32 %v2607_v43 }
 0xf13   : > { %5717 = vrcp.f32 %v2613_v56 }
 0xf14   : > { %v2632_v61 = vpop.permute.xlu0 %2631  ;;  %v2610_v62 = vpop.xlane.xlu1 %2609 }
 0xf15   : > { %5719 = vrcp.f32 %v2610_v62  ;;  %5266 = vmatprep.subr.bf16.mxu0 %v2632_v61 }
 0xf16   : > { %5267 = vmatpush3.bf16.msra.mxu0 %v2632_v61 }
 0xf17   : > { %5268 = vmatprep.subr.bf16.mxu0 %v2630_v47 }
 0xf18   : > { %v2697_v57 = vpop.permute.xlu1 %2696  ;;  %v2691_v28 = vpop.permute.xlu0 %2690 }
 0xf19   : > { %v2708_v29 = vsel %vm1557_vm0, %v2697_v57, 0 }
 0xf1a   : > { %5269 = vmatpush3.bf16.msra.mxu0 %v2630_v47 }
 0xf1b   : > { %5378 = vmatprep.subr.msk.bf16.mxu0 %vm1557_vm0, %v2697_v57 }
 0xf1c   : > { %v2695_v27 = vpop.permute.xlu1 %2694 }
 0xf1e   : > { %v5714_v48 = vpop.eup %5713 }
 0xf1f   : > { %v5716_v18 = vpop.eup %5715  ;;  %v2624_v23 = vmul.f32 %v5714_v48, %v5710_v17  ;;  %v2705_v17 = vsel %vm1557_vm0, %v2695_v27, 0 }
 0xf20   : > { %v5718_v20 = vpop.eup %5717  ;;  %v2618_v35 = vmul.f32 %v5716_v18, %v5708_v24  ;;  %v2693_v24 = vpop.permute.xlu1 %2692 }
 0xf21   : > { %v2622_v46 = vmul.f32 %v5718_v20, %v5706_v9 }
 0xf22   : > { %v5720_v22 = vpop.eup %5719 }
 0xf23   : > { %v2620_v45 = vmul.f32 %v5720_v22, %v5712_v58  ;;  %v2626_v40 = vpack.c.bf16 %v2624_v23, %v2622_v46 }
 0xf25   : > { %v2625_v26 = vpack.c.bf16 %v2620_v45, %v2618_v35 }
 0xf27   : > { %5270 = vmatprep.mubr.msk.bf16.mxu0 %vm1557_vm0, %v2625_v26 }
 0xf28   : > { %5271 = vmatmul.mubr.msk.bf16.vlgmr.msra.gmra.mxu0 %vm1557_vm0, %v2626_v40 }
 0xf29   : > { %5275 = vmatpush3.bf16.xpose.msra.mxu0 %v2708_v29  ;;  %5278 = vmatprep.mubr.msk.bf16.mxu0 %vm1557_vm0, %v2691_v28 }
 0xf2a   : > { %5379 = vmatprep.subr.msk.bf16.mxu0 %vm1557_vm0, %v2695_v27 }
 0xf31   : > { %5277 = vmatpush3.bf16.xpose.msra.mxu0 %v2705_v17 }
 0xf38   : > { %5279 = vmatmul.mubr.msk.bf16.vlgmr.msra.gmra.mxu0 %vm1557_vm0, %v2693_v24 }
 0xfe8   : > { %v6703_v9 = vpop.f32.mrf.mxu0 }
 0xfea   : > { %v6705_v1 = vpop.f32.mrf.mxu0 }
 0xfec   : > { %v6707_v58 = vpop.f32.mrf.mxu0 }
 0xfed   : > { %v5464_v60 = vpack.i.bf16 %v6707_v58, %v6703_v9 }
 0xfee   : > { %v6711_v47 = vpop.f32.mrf.mxu0 }
 0xfef   : > { %v5459_v56 = vpack.i.bf16 %v6711_v47, %v6705_v1 }
 0xff8   : > { %v5280_v43 = vpop.f32.mrf.mxu0 }
 0xff9   : > { %v2761_v48 = vsel %vm1550_vm1, %v5280_v43, -1e+30 }
 0xffa   : > { %v2744_v50 = vpop.f32.mrf.mxu0  ;;  %v2769_v22 = vsel %vm1557_vm0, %v2761_v48, -inf }
 0xffb   : > { %v2759_v61 = vsel %vm1550_vm1, %v2744_v50, -1e+30 }
 0xffc   : > { %v5281_v62 = vpop.f32.mrf.mxu0  ;;  %v2763_v57 = vsel %vm1557_vm0, %v2759_v61, -inf }
 0xffd   : > { %2764 = vmax.xlane.f32.xlu0 %v2763_v57  ;;  %v2762_v35 = vsel %vm1550_vm1, %v5281_v62, -1e+30 }
 0xffe   : > { %v2747_v18 = vpop.f32.mrf.mxu0  ;;  %v2772_v45 = vsel %vm1557_vm0, %v2762_v35, -inf }
 0xfff   : > { %v2760_v20 = vsel %vm1550_vm1, %v2747_v18, -1e+30 }
0x1000   : > { %v2766_v23 = vsel %vm1557_vm0, %v2760_v20, -inf }
0x1001   : > { %2770 = vmax.xlane.f32.xlu0 %v2769_v22  ;;  %2767 = vmax.xlane.f32.xlu1 %v2766_v23 }
0x1005   : > { %2773 = vmax.xlane.f32.xlu0 %v2772_v45 }
0x1012   : > { %2809 = vrot.lane.b32.xlu1 %v6400_v11, %s5953_s2 }
0x1086   : > { %v2765_v46 = vpop.xlane.xlu0 %2764 }
0x1087   : > { %v2775_v26 = vsub.f32 %v2759_v61, %v2765_v46 }
0x1089   : > { %v2779_v27 = vmul.f32 1.442695, %v2775_v26 }
0x108a   : > { %v2771_v40 = vpop.xlane.xlu0 %2770  ;;  %v2768_v28 = vpop.xlane.xlu1 %2767 }
0x108b   : > { %v2777_v29 = vsub.f32 %v2761_v48, %v2771_v40  ;;  %v2776_v24 = vsub.f32 %v2760_v20, %v2768_v28 }
0x108d   : > { %v2783_v17 = vmul.f32 1.442695, %v2777_v29  ;;  %v2781_v62 = vmul.f32 1.442695, %v2776_v24 }
0x108e   : > { %v2774_v43 = vpop.xlane.xlu0 %2773 }
0x108f   : > { %5721 = vpow2.f32 %v2783_v17  ;;  %v2778_v50 = vsub.f32 %v2762_v35, %v2774_v43  ;;  %v2810_v35 = vpop.permute.xlu1 %2809 }
0x1090   : > { %5723 = vpow2.f32 %v2779_v27 }
0x1091   : > { %v2785_v57 = vmul.f32 1.442695, %v2778_v50 }
0x1093   : > { %5725 = vpow2.f32 %v2785_v57 }
0x1094   : > { %5727 = vpow2.f32 %v2781_v62 }
0x109c   : > { %v5722_v18 = vpop.eup %5721 }
0x109d   : > { %v2793_v22 = vsel %vm1557_vm0, %v5722_v18, 0.0  ;;  %v5724_v23 = vpop.eup %5723 }
0x109e   : > { %2794 = vadd.xlane.f32.xlu0 %v2793_v22  ;;  %v2787_v45 = vsel %vm1557_vm0, %v5724_v23, 0.0 }
0x10a0   : > { %v5726_v61 = vpop.eup %5725 }
0x10a1   : > { %v2796_v48 = vsel %vm1557_vm0, %v5726_v61, 0.0  ;;  %v5728_v46 = vpop.eup %5727 }
0x10a2   : > { %2788 = vadd.xlane.f32.xlu0 %v2787_v45  ;;  %2797 = vadd.xlane.f32.xlu1 %v2796_v48  ;;  %v2790_v20 = vsel %vm1557_vm0, %v5728_v46, 0.0 }
0x10a6   : > { %2791 = vadd.xlane.f32.xlu1 %v2790_v20 }
0x10b7   : > { %2876 = vrot.lane.b32.xlu1 %v6599_v12, %s5954_s28 }
0x10b8   : > { %2811 = vrot.lane.b32.xlu0 %v6397_v5, %s5953_s2 }
0x10bb   : > { %2874 = vrot.lane.b32.xlu1 %v6393_v63, %s5954_s28 }
0x10bc   : > { %2870 = vrot.lane.b32.xlu0 %v6390_v54, %s5954_s28 }
0x10bf   : > { %2872 = vrot.lane.b32.xlu1 %v6403_v13, %s5954_s28 }
0x1127   : > { %v2795_v26 = vpop.xlane.xlu0 %2794 }
0x112b   : > { %v2789_v40 = vpop.xlane.xlu0 %2788  ;;  %v2798_v28 = vpop.xlane.xlu1 %2797 }
0x112c   : > { %5729 = vrcp.f32 %v2798_v28 }
0x112d   : > { %5731 = vrcp.f32 %v2789_v40 }
0x112e   : > { %5733 = vrcp.f32 %v2795_v26 }
0x112f   : > { %v2812_v12 = vpop.permute.xlu0 %2811  ;;  %v2792_v29 = vpop.xlane.xlu1 %2791 }
0x1130   : > { %5735 = vrcp.f32 %v2792_v29  ;;  %5282 = vmatprep.subr.bf16.mxu1 %v2812_v12 }
0x1131   : > { %5283 = vmatpush3.bf16.msra.mxu1 %v2812_v12 }
0x1132   : > { %5284 = vmatprep.subr.bf16.mxu1 %v2810_v35 }
0x1133   : > { %v2877_v63 = vpop.permute.xlu1 %2876  ;;  %v2871_v45 = vpop.permute.xlu0 %2870 }
0x1134   : > { %v2888_v48 = vsel %vm1557_vm0, %v2877_v63, 0 }
0x1135   : > { %5285 = vmatpush3.bf16.msra.mxu1 %v2810_v35 }
0x1136   : > { %5380 = vmatprep.subr.msk.bf16.mxu1 %vm1557_vm0, %v2877_v63 }
0x1137   : > { %v2875_v20 = vpop.permute.xlu1 %2874 }
0x1139   : > { %v5730_v54 = vpop.eup %5729 }
0x113a   : > { %v5732_v27 = vpop.eup %5731  ;;  %v2806_v24 = vmul.f32 %v5730_v54, %v5726_v61  ;;  %v2885_v61 = vsel %vm1557_vm0, %v2875_v20, 0 }
0x113b   : > { %v5734_v13 = vpop.eup %5733  ;;  %v2800_v43 = vmul.f32 %v5732_v27, %v5724_v23  ;;  %v2873_v23 = vpop.permute.xlu1 %2872 }
0x113c   : > { %v2804_v62 = vmul.f32 %v5734_v13, %v5722_v18 }
0x113d   : > { %v5736_v17 = vpop.eup %5735 }
0x113e   : > { %v2802_v50 = vmul.f32 %v5736_v17, %v5728_v46  ;;  %v2808_v22 = vpack.c.bf16 %v2806_v24, %v2804_v62 }
0x1140   : > { %v2807_v57 = vpack.c.bf16 %v2802_v50, %v2800_v43 }
0x1142   : > { %5286 = vmatprep.mubr.msk.bf16.mxu1 %vm1557_vm0, %v2807_v57 }
0x1143   : > { %5287 = vmatmul.mubr.msk.bf16.vlgmr.msra.gmra.mxu1 %vm1557_vm0, %v2808_v22 }
0x1144   : > { %5291 = vmatpush3.bf16.xpose.msra.mxu1 %v2888_v48  ;;  %5294 = vmatprep.mubr.msk.bf16.mxu1 %vm1557_vm0, %v2871_v45 }
0x1145   : > { %5381 = vmatprep.subr.msk.bf16.mxu1 %vm1557_vm0, %v2875_v20 }
0x114c   : > { %5293 = vmatpush3.bf16.xpose.msra.mxu1 %v2885_v61 }
0x1153   : > { %5295 = vmatmul.mubr.msk.bf16.vlgmr.msra.gmra.mxu1 %vm1557_vm0, %v2873_v23 }
0x1154   : > { %3626 = vmatprep.mubr.bf16.mxu1 %v5951_v55 }
0x1203   : > { %v5288_v18 = vpop.f32.mrf.mxu1 }
0x1205   : > { %v2855_v46 = vpop.f32.mrf.mxu1 }
0x1207   : > { %v5289_v35 = vpop.f32.mrf.mxu1 }
0x1208   : > { %v5474_v26 = vpack.i.bf16 %v5289_v35, %v5288_v18 }
0x1209   : > { %v2858_v40 = vpop.f32.mrf.mxu1 }
0x120a   : > { %v5469_v28 = vpack.i.bf16 %v2858_v40, %v2855_v46 }
0x1213   : > { %v5296_v12 = vpop.f32.mrf.mxu1 }
0x1214   : > { %v2941_v13 = vsel %vm1550_vm1, %v5296_v12, -1e+30 }
0x1215   : > { %v2924_v29 = vpop.f32.mrf.mxu1  ;;  %v2949_v43 = vsel %vm1557_vm0, %v2941_v13, -inf }
0x1216   : > { %v2939_v63 = vsel %vm1550_vm1, %v2924_v29, -1e+30 }
0x1217   : > { %v2943_v54 = vsel %vm1557_vm0, %v2939_v63, -inf  ;;  %v5297_v27 = vpop.f32.mrf.mxu1 }
0x1218   : > { %2944 = vmax.xlane.f32.xlu0 %v2943_v54  ;;  %v2942_v62 = vsel %vm1550_vm1, %v5297_v27, -1e+30 }
0x1219   : > { %v2927_v17 = vpop.f32.mrf.mxu1  ;;  %v2952_v57 = vsel %vm1557_vm0, %v2942_v62, -inf }
0x121a   : > { %v2940_v24 = vsel %vm1550_vm1, %v2927_v17, -1e+30 }
0x121b   : > { %v2946_v50 = vsel %vm1557_vm0, %v2940_v24, -inf }
0x121c   : > { %2950 = vmax.xlane.f32.xlu0 %v2949_v43  ;;  %2947 = vmax.xlane.f32.xlu1 %v2946_v50 }
0x1220   : > { %2953 = vmax.xlane.f32.xlu0 %v2952_v57  ;;  %v5522_v57 = vld [vmem:[%s6096_s27 + $0x30] sm:$0xff]  }
0x12a1   : > { %v2945_v22 = vpop.xlane.xlu0 %2944 }
0x12a2   : > { %v2955_v45 = vsub.f32 %v2939_v63, %v2945_v22 }
0x12a4   : > { %v2959_v23 = vmul.f32 1.442695, %v2955_v45  ;;  %v5523_v45 = vld [vmem:[%s6096_s27 + $0x28] sm:$0xff]  }
0x12a5   : > { %v2951_v48 = vpop.xlane.xlu0 %2950  ;;  %v2948_v20 = vpop.xlane.xlu1 %2947 }
0x12a6   : > { %v2957_v61 = vsub.f32 %v2941_v13, %v2951_v48  ;;  %v2956_v46 = vsub.f32 %v2940_v24, %v2948_v20  ;;  %v5524_v48 = vld [vmem:[%s6096_s27 + $0x20] sm:$0xff]  }
0x12a8   : > { %v2963_v18 = vmul.f32 1.442695, %v2957_v61  ;;  %v2961_v12 = vmul.f32 1.442695, %v2956_v46  ;;  %v5525_v61 = vld [vmem:[%s6096_s27 + $0x18] sm:$0xff]   ;;  %v5527_v46 = vld [vmem:[%s6096_s27 + $0x8] sm:$0xff]  }
0x12a9   : > { %v2954_v35 = vpop.xlane.xlu0 %2953 }
0x12aa   : > { %5737 = vpow2.f32 %v2963_v18  ;;  %v2958_v40 = vsub.f32 %v2942_v62, %v2954_v35  ;;  %v5526_v18 = vld [vmem:[%s6096_s27 + $0x10] sm:$0xff]  }
0x12ab   : > { %5739 = vpow2.f32 %v2959_v23 }
0x12ac   : > { %v2965_v14 = vmul.f32 1.442695, %v2958_v40 }
0x12ae   : > { %5741 = vpow2.f32 %v2965_v14 }
0x12af   : > { %5743 = vpow2.f32 %v2961_v12 }
0x12b7   : > { %v5738_v29 = vpop.eup %5737 }
0x12b8   : > { %v2973_v54 = vsel %vm1557_vm0, %v5738_v29, 0.0  ;;  %v5740_v27 = vpop.eup %5739 }
0x12b9   : > { %2974 = vadd.xlane.f32.xlu0 %v2973_v54  ;;  %v2967_v17 = vsel %vm1557_vm0, %v5740_v27, 0.0  ;;  %v5528_v54 = vld [vmem:[%s6096_s27] sm:$0xff]  }
0x12bb   : > { %v5742_v63 = vpop.eup %5741 }
0x12bc   : > { %v2976_v13 = vsel %vm1557_vm0, %v5742_v63, 0.0  ;;  %v5744_v43 = vpop.eup %5743 }
0x12bd   : > { %2968 = vadd.xlane.f32.xlu0 %v2967_v17  ;;  %2977 = vadd.xlane.f32.xlu1 %v2976_v13  ;;  %v2970_v24 = vsel %vm1557_vm0, %v5744_v43, 0.0 }
0x12c1   : > { %2971 = vadd.xlane.f32.xlu1 %v2970_v24 }
0x12d2   : > { %2989 = vrot.lane.b32.xlu1 %v6400_v11, %s5954_s28 }
0x12d3   : > { %2991 = vrot.lane.b32.xlu0 %v6397_v5, %s5954_s28 }
0x12d6   : > { %5430 = vrot.lane.b32.xlu1 %v5429_v6, %s5954_s28 }
0x12d7   : > { %5440 = vrot.lane.b32.xlu0 %v5439_v15, %s5953_s2 }
0x12da   : > { %5435 = vrot.lane.b32.xlu1 %v5434_v0, %s5954_s28  ;;  %v5521_v0 = vld [vmem:[%s6096_s27 + $0x38] sm:$0xff]  }
0x12db   : > { %5450 = vrot.lane.b32.xlu0 %v5449_v53, %s5952_s30 }
0x12de   : > { %5445 = vrot.lane.b32.xlu1 %v5444_v7, %s5953_s2 }
0x12df   : > { %5460 = vrot.lane.b32.xlu0 %v5459_v56, %s5954_s28 }
0x12e2   : > { %5455 = vrot.lane.b32.xlu1 %v5454_v49, %s5952_s30 }
0x12e3   : > { %5470 = vrot.lane.b32.xlu0 %v5469_v28, %s5953_s2 }
0x12e6   : > { %5465 = vrot.lane.b32.xlu1 %v5464_v60, %s5954_s28 }
0x12ea   : > { %5475 = vrot.lane.b32.xlu1 %v5474_v26, %s5953_s2  ;;  %s7347_s2 = sld [smem:[#allocation16_spill]] (!%p4922_p5) }
0x1342   : > { %v2975_v5 = vpop.xlane.xlu0 %2974 }
0x1343   : > { %5745 = vrcp.f32 %v2975_v5 }
0x1346   : > { %v2969_v11 = vpop.xlane.xlu0 %2968  ;;  %v2978_v51 = vpop.xlane.xlu1 %2977 }
0x1347   : > { %5747 = vrcp.f32 %v2978_v51 }
0x1348   : > { %5749 = vrcp.f32 %v2969_v11 }
0x134a   : > { %v2992_v2 = vpop.permute.xlu0 %2991  ;;  %v2972_v4 = vpop.xlane.xlu1 %2971 }
0x134b   : > { %5751 = vrcp.f32 %v2972_v4  ;;  %5298 = vmatprep.subr.bf16.mxu0 %v2992_v2 }
0x134c   : > { %5299 = vmatpush3.bf16.msra.mxu0 %v2992_v2 }
0x134e   : > { %v2990_v59 = vpop.permute.xlu1 %2989  ;;  %v5441_v6 = vpop.permute.xlu0 %5440 }
0x134f   : > { %5300 = vmatprep.subr.bf16.mxu0 %v2990_v59  ;;  %v5443_v42 = vunpack.i.h.bf16 %v5441_v6  ;;  %v5442_v25 = vunpack.i.l.bf16 %v5441_v6 }
0x1350   : > { %5301 = vmatpush3.bf16.msra.mxu0 %v2990_v59  ;;  %v5746_v7 = vpop.eup %5745 }
0x1351   : > { %5306 = vmatprep.subr.bf16.mxu0 %v5521_v0 }
0x1352   : > { %v5431_v34 = vpop.permute.xlu1 %5430  ;;  %v5451_v49 = vpop.permute.xlu0 %5450 }
0x1353   : > { %v5433_v19 = vunpack.i.h.bf16 %v5431_v34  ;;  %v5432_v52 = vunpack.i.l.bf16 %v5431_v34  ;;  %v5453_v58 = vunpack.i.h.bf16 %v5451_v49  ;;  %v5452_v60 = vunpack.i.l.bf16 %v5451_v49  ;;  %v6839_v34 = vld [vmem:[%s7343_s21] ss:$0 sm:$0xff] }
0x1354   : > { %v5748_v41 = vpop.eup %5747  ;;  %v5898_v49 = vld [vmem:[#allocation2] sm:$0xff] }
0x1355   : > { %v2319_v8 = vsel %vm1557_vm0, %v6463_v39, %v5433_v19  ;;  %v2318_v15 = vsel %vm1557_vm0, %v6457_v36, %v5432_v52  ;;  %v5750_v44 = vpop.eup %5749  ;;  %v2986_v39 = vmul.f32 %v5748_v41, %v5742_v63  ;;  %v2984_v36 = vmul.f32 %v5746_v7, %v5738_v29 }
0x1356   : > { %v2323_v9 = vsel %vm2322_vm2, %v2318_v15, %v5442_v25  ;;  %v2324_v1 = vsel %vm2322_vm2, %v2319_v8, %v5443_v42  ;;  %v2980_v47 = vmul.f32 %v5750_v44, %v5740_v27  ;;  %v5436_v20 = vpop.permute.xlu1 %5435  ;;  %v5897_v15 = vld [vmem:[#allocation2 + $0x30] sm:$0xff] }
0x1357   : > { %v2328_v26 = vsel %vm2327_vm3, %v2323_v9, %v5452_v60  ;;  %v2329_v28 = vsel %vm2327_vm3, %v2324_v1, %v5453_v58  ;;  %v2988_v62 = vpack.c.bf16 %v2986_v39, %v2984_v36  ;;  %v5438_v40 = vunpack.i.h.bf16 %v5436_v20  ;;  %v5900_v58 = vld [vmem:[#allocation2 + $0x10] sm:$0xff] }
0x1358   : > { %v5752_v53 = vpop.eup %5751  ;;  %v3110_v22 = vpack.c.bf16 %v2329_v28, %v2328_v26  ;;  %v5437_v12 = vunpack.i.l.bf16 %v5436_v20 }
0x1359   : > { %v2982_v56 = vmul.f32 %v5752_v53, %v5744_v43  ;;  %v2321_v17 = vsel %vm1557_vm0, %v6461_v38, %v5438_v40  ;;  %v5899_v53 = vld [vmem:[#allocation2 + $0x18] sm:$0xff] }
0x135a   : > { %v5446_v23 = vpop.permute.xlu1 %5445  ;;  %v2320_v13 = vsel %vm1557_vm0, %v6455_v32, %v5437_v12 }
0x135b   : > { %v2987_v50 = vpack.c.bf16 %v2982_v56, %v2980_v47  ;;  %v5448_v14 = vunpack.i.h.bf16 %v5446_v23  ;;  %v5447_v29 = vunpack.i.l.bf16 %v5446_v23  ;;  %v5461_v47 = vpop.permute.xlu0 %5460 }
0x135c   : > { %v5463_v26 = vunpack.i.h.bf16 %v5461_v47  ;;  %v5462_v28 = vunpack.i.l.bf16 %v5461_v47 }
0x135d   : > { %5302 = vmatprep.mubr.msk.bf16.mxu0 %vm1557_vm0, %v2987_v50  ;;  %v2325_v43 = vsel %vm2322_vm2, %v2320_v13, %v5447_v29  ;;  %v2326_v24 = vsel %vm2322_vm2, %v2321_v17, %v5448_v14 }
0x135e   : > { %5303 = vmatmul.mubr.msk.bf16.vlgmr.msra.gmra.mxu0 %vm1557_vm0, %v2988_v62  ;;  %v5456_v35 = vpop.permute.xlu1 %5455 }
0x135f   : > { %5307 = vmatpush3.bf16.msra.mxu0 %v5521_v0  ;;  %5322 = vmatprep.mubr.bf16.mxu0 %v3110_v22  ;;  %v5458_v27 = vunpack.i.h.bf16 %v5456_v35  ;;  %v5457_v63 = vunpack.i.l.bf16 %v5456_v35  ;;  %v5471_v36 = vpop.permute.xlu0 %5470 }
0x1360   : > { %5308 = vmatprep.subr.bf16.mxu0 %v5522_v57 }
0x1361   : > { %v2330_v5 = vsel %vm2327_vm3, %v2325_v43, %v5457_v63  ;;  %v2331_v11 = vsel %vm2327_vm3, %v2326_v24, %v5458_v27 }
0x1362   : > { %v3111_v51 = vpack.c.bf16 %v2331_v11, %v2330_v5  ;;  %v5466_v39 = vpop.permute.xlu1 %5465 }
0x1363   : > { %5309 = vmatpush3.bf16.msra.mxu0 %v5522_v57  ;;  %v5468_v50 = vunpack.i.h.bf16 %v5466_v39  ;;  %v5467_v62 = vunpack.i.l.bf16 %v5466_v39 }
0x1364   : > { %5310 = vmatprep.subr.bf16.mxu0 %v5523_v45 }
0x1365   : > { %v3101_v35 = vsel %vm1557_vm0, %v6663_v31, %v5468_v50  ;;  %v3100_v40 = vsel %vm1557_vm0, %v6659_v30, %v5467_v62 }
0x1366   : > { %v5476_v56 = vpop.permute.xlu1 %5475 }
0x1367   : > { %5311 = vmatpush3.bf16.msra.mxu0 %v5523_v45  ;;  %v5478_v57 = vunpack.i.h.bf16 %v5476_v56  ;;  %v5477_v22 = vunpack.i.l.bf16 %v5476_v56  ;;  %v5473_v45 = vunpack.i.h.bf16 %v5471_v36 }
0x1368   : > { %5312 = vmatprep.subr.bf16.mxu0 %v5524_v48 }
0x1369   : > { %v3104_v14 = vsel %vm2322_vm2, %v3100_v40, %v5477_v22  ;;  %v3105_v29 = vsel %vm2322_vm2, %v3101_v35, %v5478_v57  ;;  %v5531_v22 = vld [vmem:[%s6124_s7 + $0xe4] ss:$16 sps:$4 sm:$0xff]   ;;  %v5546_v40 = vld [vmem:[%s6124_s7 + $0xac] ss:$16 sps:$4 sm:$0xff]  }
0x136a   : > { %3594 = vmatprep.subr.bf16.mxu1 %v5531_v22  ;;  %v5543_v35 = vld [vmem:[%s6124_s7 + $0xa4] ss:$16 sps:$4 sm:$0xff]  }
0x136b   : > { %5313 = vmatpush3.bf16.msra.mxu0 %v5524_v48  ;;  %v5472_v48 = vunpack.i.l.bf16 %v5471_v36  ;;  %v5904_v36 = vld [vmem:[#allocation2 + $0x38] sm:$0xff] }
0x136c   : > { %5314 = vmatprep.subr.bf16.mxu0 %v5525_v61 }
0x136f   : > { %5315 = vmatpush3.bf16.msra.mxu0 %v5525_v61 }
0x1370   : > { %5316 = vmatprep.subr.bf16.mxu0 %v5526_v18 }
0x1373   : > { %5317 = vmatpush3.bf16.msra.mxu0 %v5526_v18  ;;  %v3099_v18 = vsel %vm1557_vm0, %v6665_v16, %v5463_v26 }
0x1374   : > { %5318 = vmatprep.subr.bf16.mxu0 %v5527_v46  ;;  %v3103_v16 = vsel %vm2322_vm2, %v3099_v18, %v5473_v45  ;;  %v5534_v45 = vld [vmem:[%s6124_s7 + $0xec] ss:$16 sps:$4 sm:$0xff]   ;;  %v5535_v18 = vld [vmem:[%s6124_s7 + $0xc0] ss:$16 sps:$4 sm:$0xff]  }
0x1377   : > { %5319 = vmatpush3.bf16.msra.mxu0 %v5527_v46  ;;  %v3098_v46 = vsel %vm1557_vm0, %v6661_v37, %v5462_v28 }
0x1378   : > { %5320 = vmatprep.subr.bf16.mxu0 %v5528_v54  ;;  %v3102_v63 = vsel %vm2322_vm2, %v3098_v46, %v5472_v48  ;;  %v5529_v48 = vld [vmem:[%s6124_s7 + $0xe0] ss:$16 sps:$4 sm:$0xff]   ;;  %v5538_v46 = vld [vmem:[%s6124_s7 + $0xc8] ss:$16 sps:$4 sm:$0xff]  }
0x1379   : > { %3595 = vmatpush1.bf16.msra.mxu1 %v5529_v48 }
0x137b   : > { %5321 = vmatpush3.bf16.msra.mxu0 %v5528_v54 }
0x137c   : > { %3667 = vmatprep.subr.bf16.mxu0 %v5534_v45 }
0x137e   : > { %5323 = vmatmul.mubr.bf16.vlgmr.msra.gmra.mxu0 %v3111_v51 }
0x141e   : > { %v5304_v2 = vpop.f32.mrf.mxu0 }
0x1420   : > { %v3035_v4 = vpop.f32.mrf.mxu0 }
0x1422   : > { %v5305_v38 = vpop.f32.mrf.mxu0 }
0x1423   : > { %v5484_v0 = vpack.i.bf16 %v5305_v38, %v5304_v2 }
0x1424   : > { %v3038_v59 = vpop.f32.mrf.mxu0 }
0x1425   : > { %v5479_v32 = vpack.i.bf16 %v3038_v59, %v3035_v4  ;;  %5485 = vrot.lane.b32.xlu1 %v5484_v0, %s5952_s30 }
0x1427   : > { %5480 = vrot.lane.b32.xlu0 %v5479_v32, %s5952_s30  ;;  %v5901_v32 = vld [vmem:[#allocation2 + $0x8] sm:$0xff] }
0x143e   : > { %v5324_v6 = vpop.f32.mrf.mxu0 }
0x143f   : > { %v3228_v8 = vadd.f32 %v5324_v6, %v6839_v34 }
0x1440   : > { %v3219_v19 = vpop.f32.mrf.mxu0 }
0x1441   : > { %v3220_v52 = vadd.f32 %v6839_v34, %v3219_v19  ;;  %v6849_v9 = vadd.f32 %v5899_v53, %v3228_v8  ;;  %v5903_v53 = vld [vmem:[#allocation2 + $0x20] sm:$0xff] }
0x1442   : > { %v5325_v7 = vpop.f32.mrf.mxu0 }
0x1443   : > { %v6843_v41 = vadd.f32 %v5897_v15, %v3220_v52  ;;  %v3231_v1 = vadd.f32 %v5325_v7, %v6839_v34 }
0x1444   : > { %v3222_v42 = vpop.f32.mrf.mxu0 }
0x1445   : > { %v3223_v25 = vadd.f32 %v6839_v34, %v3222_v42  ;;  %v6854_v60 = vadd.f32 %v5900_v58, %v3231_v1  ;;  %v5902_v42 = vld [vmem:[#allocation2 + $0x28] sm:$0xff] }
0x1446   : > { %3258 = vadd.xlane.f32.xlu0 %v6843_v41 }
0x1447   : > { %v6847_v44 = vadd.f32 %v5898_v49, %v3223_v25 }
0x1449   : > { %3260 = vadd.xlane.f32.xlu1 %v6847_v44 }
0x144a   : > { %3262 = vadd.xlane.f32.xlu0 %v6849_v9 }
0x144e   : > { %3264 = vadd.xlane.f32.xlu0 %v6854_v60 }
0x1497   : > { %v5486_v20 = vpop.permute.xlu1 %5485 }
0x1498   : > { %v5488_v61 = vunpack.i.h.bf16 %v5486_v20  ;;  %v5487_v23 = vunpack.i.l.bf16 %v5486_v20  ;;  %v5532_v20 = vld [vmem:[%s6124_s7 + $0xe8] ss:$16 sps:$4 sm:$0xff]  }
0x1499   : > { %v5481_v12 = vpop.permute.xlu0 %5480  ;;  %3668 = vmatpush1.bf16.msra.mxu0 %v5532_v20 }
0x149a   : > { %v5483_v54 = vunpack.i.h.bf16 %v5481_v12  ;;  %v5482_v27 = vunpack.i.l.bf16 %v5481_v12  ;;  %v3108_v17 = vsel %vm2327_vm3, %v3104_v14, %v5487_v23  ;;  %v3109_v37 = vsel %vm2327_vm3, %v3105_v29, %v5488_v61  ;;  %v5537_v61 = vld [vmem:[%s6124_s7 + $0xc4] ss:$16 sps:$4 sm:$0xff]   ;;  %v5540_v23 = vld [vmem:[%s6124_s7 + $0xcc] ss:$16 sps:$4 sm:$0xff]   ;;  %v5541_v12 = vld [vmem:[%s6124_s7 + $0xa0] ss:$16 sps:$4 sm:$0xff]  }
0x149b   : > { %v3113_v43 = vpack.c.bf16 %v3109_v37, %v3108_v17  ;;  %3596 = vmatprep.subr.bf16.mxu1 %v5537_v61  ;;  %3669 = vmatprep.subr.bf16.mxu0 %v5540_v23  ;;  %v5544_v14 = vld [vmem:[%s6124_s7 + $0xa8] ss:$16 sps:$4 sm:$0xff]   ;;  %v5549_v29 = vld [vmem:[%s6124_s7 + $0x84] ss:$16 sps:$4 sm:$0xff]  }
0x149c   : > { %v3106_v31 = vsel %vm2327_vm3, %v3102_v63, %v5482_v27  ;;  %v3107_v13 = vsel %vm2327_vm3, %v3103_v16, %v5483_v54  ;;  %3597 = vmatpush1.bf16.msra.mxu1 %v5535_v18  ;;  %v5552_v54 = vld [vmem:[%s6124_s7 + $0x8c] ss:$16 sps:$4 sm:$0xff]   ;;  %v5547_v27 = vld [vmem:[%s6124_s7 + $0x80] ss:$16 sps:$4 sm:$0xff]   ;;  %v5550_v63 = vld [vmem:[%s6124_s7 + $0x88] ss:$16 sps:$4 sm:$0xff]  }
0x149d   : > { %v3112_v30 = vpack.c.bf16 %v3107_v13, %v3106_v31  ;;  %3670 = vmatpush1.bf16.msra.mxu0 %v5538_v46  ;;  %3598 = vmatprep.subr.bf16.mxu1 %v5543_v35  ;;  %v5553_v16 = vld [vmem:[%s6124_s7 + $0x60] ss:$16 sps:$4 sm:$0xff]   ;;  %v5555_v17 = vld [vmem:[%s6124_s7 + $0x64] ss:$16 sps:$4 sm:$0xff]   ;;  %v5556_v37 = vld [vmem:[%s6124_s7 + $0x68] ss:$16 sps:$4 sm:$0xff]  }
0x149e   : > { %3671 = vmatprep.subr.bf16.mxu0 %v5546_v40  ;;  %v5558_v31 = vld [vmem:[%s6124_s7 + $0x6c] ss:$16 sps:$4 sm:$0xff]   ;;  %v5561_v13 = vld [vmem:[%s6124_s7 + $0x44] ss:$16 sps:$4 sm:$0xff]  }
0x149f   : > { %5326 = vmatprep.mubr.bf16.mxu0 %v3112_v30  ;;  %v5564_v30 = vld [vmem:[%s6124_s7 + $0x4c] ss:$16 sps:$4 sm:$0xff]  }
0x14a0   : > { %5327 = vmatmul.mubr.bf16.gmra.mxu0 %v3113_v43  ;;  %3599 = vmatpush1.bf16.msra.mxu1 %v5541_v12  ;;  %v5559_v43 = vld [vmem:[%s6124_s7 + $0x40] ss:$16 sps:$4 sm:$0xff]  }
0x14a1   : > { %3699 = vmatprep.mubr.bf16.mxu0 %v5951_v55  ;;  %3672 = vmatpush1.bf16.msra.mxu0 %v5544_v14 }
0x14a2   : > { %3600 = vmatprep.subr.bf16.mxu1 %v5549_v29  ;;  %3673 = vmatprep.subr.bf16.mxu0 %v5552_v54 }
0x14a4   : > { %3601 = vmatpush1.bf16.msra.mxu1 %v5547_v27 }
0x14a5   : > { %3674 = vmatpush1.bf16.msra.mxu0 %v5550_v63  ;;  %3602 = vmatprep.subr.bf16.mxu1 %v5555_v17  ;;  %v6968_v63 = vld [vmem:[%s7344_s4] ss:$0 sm:$0xff] }
0x14a6   : > { %3675 = vmatprep.subr.bf16.mxu0 %v5558_v31 }
0x14a8   : > { %3603 = vmatpush1.bf16.msra.mxu1 %v5553_v16 }
0x14a9   : > { %3676 = vmatpush1.bf16.msra.mxu0 %v5556_v37  ;;  %3604 = vmatprep.subr.bf16.mxu1 %v5561_v13  ;;  %v6977_v13 = vld [vmem:[%s7345_s3] ss:$0 sm:$0xff] }
0x14aa   : > { %3677 = vmatprep.subr.bf16.mxu0 %v5564_v30 }
0x14ac   : > { %3605 = vmatpush1.bf16.msra.mxu1 %v5559_v43 }
0x14cf   : > { %v3259_v24 = vpop.xlane.xlu0 %3258 }
0x14d0   : > { %v3274_v2 = vmul.f32 0.0078125, %v3259_v24  ;;  %v5562_v24 = vld [vmem:[%s6124_s7 + $0x48] ss:$16 sps:$4 sm:$0xff]  }
0x14d1   : > { %3678 = vmatpush1.bf16.msra.mxu0 %v5562_v24 }
0x14d2   : > { %v3261_v0 = vpop.xlane.xlu1 %3260  ;;  %v6881_v7 = vsub.f32 %v6843_v41, %v3274_v2  ;;  %v5568_v2 = vld [vmem:[%s6124_s7 + $0x28] ss:$16 sps:$4 sm:$0xff]  }
0x14d3   : > { %v3263_v4 = vpop.xlane.xlu0 %3262  ;;  %v3275_v8 = vmul.f32 0.0078125, %v3261_v0  ;;  %v5571_v0 = vld [vmem:[%s6124_s7] ss:$16 sps:$4 sm:$0xff]  }
0x14d4   : > { %v3276_v15 = vmul.f32 0.0078125, %v3263_v4  ;;  %v3290_v39 = vmul.f32 %v6881_v7, %v6881_v7  ;;  %v5573_v4 = vld [vmem:[%s6124_s7 + $0x4] ss:$16 sps:$4 sm:$0xff]  }
0x14d5   : > { %v6893_v47 = vsub.f32 %v6847_v44, %v3275_v8 }
0x14d6   : > { %v6896_v56 = vsub.f32 %v6849_v9, %v3276_v15 }
0x14d7   : > { %v3265_v58 = vpop.xlane.xlu0 %3264  ;;  %v3291_v50 = vmul.f32 %v6893_v47, %v6893_v47 }
0x14d8   : > { %v3292_v62 = vmul.f32 %v6896_v56, %v6896_v56 }
0x1560   : > { %v5328_v5 = vpop.f32.mrf.mxu0 }
0x1561   : > { %v3244_v59 = vadd.f32 %v5328_v5, %v6839_v34  ;;  %v5567_v5 = vld [vmem:[%s6124_s7 + $0x24] ss:$16 sps:$4 sm:$0xff]  }
0x1562   : > { %v3235_v11 = vpop.f32.mrf.mxu0  ;;  %3606 = vmatprep.subr.bf16.mxu1 %v5567_v5 }
0x1563   : > { %v3236_v51 = vadd.f32 %v6839_v34, %v3235_v11  ;;  %v6883_v25 = vadd.f32 %v5902_v42, %v3244_v59  ;;  %v5570_v11 = vld [vmem:[%s6124_s7 + $0x2c] ss:$16 sps:$4 sm:$0xff]   ;;  %v5574_v59 = vld [vmem:[%s6124_s7 + $0x8] ss:$16 sps:$4 sm:$0xff]  }
0x1564   : > { %v5329_v38 = vpop.f32.mrf.mxu0  ;;  %3679 = vmatprep.subr.bf16.mxu0 %v5570_v11 }
0x1565   : > { %v6876_v6 = vadd.f32 %v5901_v32, %v3236_v51  ;;  %v3247_v49 = vadd.f32 %v5329_v38, %v6839_v34  ;;  %v5565_v51 = vld [vmem:[%s6124_s7 + $0x20] ss:$16 sps:$4 sm:$0xff]   ;;  %v5576_v38 = vld [vmem:[%s6124_s7 + $0xc] ss:$16 sps:$4 sm:$0xff]   ;;  %3680 = vmatpush1.bf16.msra.mxu0 %v5568_v2 }
0x1566   : > { %v3238_v19 = vpop.f32.mrf.mxu0  ;;  %3607 = vmatpush1.bf16.msra.mxu1 %v5565_v51  ;;  %3681 = vmatprep.subr.bf16.mxu0 %v5576_v38  ;;  %v5577_v38 = vld [vmem:[%s6135_s17 + $0x78] sm:$0xff]  }
0x1567   : > { %v3239_v52 = vadd.f32 %v6839_v34, %v3238_v19  ;;  %3266 = vadd.xlane.f32.xlu0 %v6876_v6  ;;  %v3277_v34 = vmul.f32 0.0078125, %v3265_v58  ;;  %v6898_v26 = vadd.f32 %v5904_v36, %v3247_v49  ;;  %3608 = vmatprep.subr.bf16.mxu1 %v5573_v4 }
0x1569   : > { %v6886_v1 = vadd.f32 %v5903_v53, %v3239_v52  ;;  %v6902_v28 = vsub.f32 %v6854_v60, %v3277_v34  ;;  %3682 = vmatpush1.bf16.msra.mxu0 %v5574_v59  ;;  %v5579_v59 = vld [vmem:[%s6135_s17 + $0x38] sm:$0xff]  }
0x156a   : > { %3609 = vmatpush1.bf16.msra.mxu1 %v5571_v0  ;;  %v5578_v0 = vld [vmem:[%s6135_s17 + $0xf8] sm:$0xff]  }
0x156b   : > { %3268 = vadd.xlane.f32.xlu1 %v6886_v1  ;;  %3270 = vadd.xlane.f32.xlu0 %v6883_v25  ;;  %v3293_v57 = vmul.f32 %v6902_v28, %v6902_v28 }
0x156c   : > { %5041 = vmatprep.subr.bf16.mxu1 %v5577_v38  ;;  %5081 = vmatprep.subr.bf16.mxu0 %v5578_v0 }
0x156f   : > { %3272 = vadd.xlane.f32.xlu1 %v6898_v26  ;;  %3298 = vadd.xlane.f32.xlu0 %v3290_v39 }
0x1573   : > { %3300 = vadd.xlane.f32.xlu1 %v3291_v50  ;;  %3302 = vadd.xlane.f32.xlu0 %v3292_v62 }
0x1577   : > { %3304 = vadd.xlane.f32.xlu1 %v3293_v57 }
0x15f0   : > { %v3267_v32 = vpop.xlane.xlu0 %3266 }
0x15f1   : > { %v3278_v19 = vmul.f32 0.0078125, %v3267_v32  ;;  %v5580_v32 = vld [vmem:[%s6135_s17 + $0xb8] sm:$0xff]  }
0x15f3   : > { %v6943_v52 = vsub.f32 %v6876_v6, %v3278_v19  ;;  %v5581_v19 = vld [vmem:[%s6135_s17 + $0x70] sm:$0xff]  }
0x15f4   : > { %v3269_v8 = vpop.xlane.xlu1 %3268  ;;  %v3271_v15 = vpop.xlane.xlu0 %3270 }
0x15f5   : > { %v3279_v42 = vmul.f32 0.0078125, %v3269_v8  ;;  %v3280_v49 = vmul.f32 0.0078125, %v3271_v15  ;;  %v3294_v53 = vmul.f32 %v6943_v52, %v6943_v52  ;;  %v5582_v8 = vld [vmem:[%s6135_s17 + $0xf0] sm:$0xff]  }
0x15f6   : > { %v5583_v15 = vld [vmem:[%s6135_s17 + $0x30] sm:$0xff]  }
0x15f7   : > { %v6948_v58 = vsub.f32 %v6886_v1, %v3279_v42  ;;  %v6951_v39 = vsub.f32 %v6883_v25, %v3280_v49  ;;  %3306 = vadd.xlane.f32.xlu0 %v3294_v53  ;;  %v5584_v42 = vld [vmem:[%s6135_s17 + $0xb0] sm:$0xff]   ;;  %v5585_v49 = vld [vmem:[%s6135_s17 + $0x68] sm:$0xff]  }
0x15f8   : > { %v3273_v34 = vpop.xlane.xlu1 %3272  ;;  %v3299_v36 = vpop.xlane.xlu0 %3298  ;;  %v5586_v53 = vld [vmem:[%s6135_s17 + $0xe8] sm:$0xff]  }
0x15f9   : > { %v3281_v50 = vmul.f32 0.0078125, %v3273_v34  ;;  %v3314_v62 = vmul.f32 0.0078125, %v3299_v36  ;;  %v3295_v57 = vmul.f32 %v6948_v58, %v6948_v58  ;;  %v3296_v22 = vmul.f32 %v6951_v39, %v6951_v39  ;;  %v5587_v34 = vld [vmem:[%s6135_s17 + $0x28] sm:$0xff]  }
0x15fa   : > { %v5588_v36 = vld [vmem:[%s6135_s17 + $0xa8] sm:$0xff]  }
0x15fb   : > { %v6958_v45 = vsub.f32 %v6898_v26, %v3281_v50  ;;  %v3322_v48 = vadd.f32 1e-05, %v3314_v62  ;;  %3308 = vadd.xlane.f32.xlu1 %v3295_v57  ;;  %3310 = vadd.xlane.f32.xlu0 %v3296_v22  ;;  %v5589_v50 = vld [vmem:[%s6135_s17 + $0x60] sm:$0xff]  }
0x15fc   : > { %v3301_v20 = vpop.xlane.xlu1 %3300  ;;  %v3303_v61 = vpop.xlane.xlu0 %3302  ;;  %v5590_v62 = vld [vmem:[%s6135_s17 + $0xe0] sm:$0xff]  }
0x15fd   : > { %5753 = vrsqrt.f32 %v3322_v48  ;;  %v3315_v23 = vmul.f32 0.0078125, %v3301_v20  ;;  %v3316_v18 = vmul.f32 0.0078125, %v3303_v61  ;;  %v3297_v46 = vmul.f32 %v6958_v45, %v6958_v45  ;;  %v5591_v57 = vld [vmem:[%s6135_s17 + $0x20] sm:$0xff]   ;;  %v5593_v48 = vld [vmem:[%s6135_s17 + $0x58] sm:$0xff]  }
0x15fe   : > { %v5592_v22 = vld [vmem:[%s6135_s17 + $0xa0] sm:$0xff]   ;;  %v5594_v20 = vld [vmem:[%s6135_s17 + $0xd8] sm:$0xff]  }
0x15ff   : > { %v3323_v35 = vadd.f32 1e-05, %v3315_v23  ;;  %v3324_v40 = vadd.f32 1e-05, %v3316_v18  ;;  %3312 = vadd.xlane.f32.xlu1 %v3297_v46  ;;  %v5595_v61 = vld [vmem:[%s6135_s17 + $0x18] sm:$0xff]   ;;  %v5597_v18 = vld [vmem:[%s6135_s17 + $0x50] sm:$0xff]  }
0x1600   : > { %v3305_v12 = vpop.xlane.xlu1 %3304  ;;  %v5596_v23 = vld [vmem:[%s6135_s17 + $0x98] sm:$0xff]   ;;  %v5598_v46 = vld [vmem:[%s6135_s17 + $0xd0] sm:$0xff]  }
0x1601   : > { %5755 = vrsqrt.f32 %v3323_v35  ;;  %v3317_v14 = vmul.f32 0.0078125, %v3305_v12  ;;  %v5599_v35 = vld [vmem:[%s6135_s17 + $0x10] sm:$0xff]   ;;  %v5601_v12 = vld [vmem:[%s6135_s17 + $0x48] sm:$0xff]  }
0x1602   : > { %5757 = vrsqrt.f32 %v3324_v40  ;;  %v5600_v40 = vld [vmem:[%s6135_s17 + $0x90] sm:$0xff]  }
0x1603   : > { %v3325_v29 = vadd.f32 1e-05, %v3317_v14  ;;  %v5602_v14 = vld [vmem:[%s6135_s17 + $0xc8] sm:$0xff]  }
0x1605   : > { %5759 = vrsqrt.f32 %v3325_v29  ;;  %v5603_v29 = vld [vmem:[%s6135_s17 + $0x8] sm:$0xff]  }
0x160a   : > { %v5754_v54 = vpop.eup %5753 }
0x160b   : > { %v3338_v27 = vmul.f32 %v5754_v54, %v6881_v7  ;;  %v5604_v54 = vld [vmem:[%s6135_s17 + $0x88] sm:$0xff]  }
0x160d   : > { %v3353_v37 = vmul.f32 %v6968_v63, %v3338_v27 }
0x160e   : > { %v5756_v16 = vpop.eup %5755 }
0x160f   : > { %v3339_v17 = vmul.f32 %v5756_v16, %v6893_v47  ;;  %v5758_v31 = vpop.eup %5757  ;;  %v3368_v43 = vadd.f32 %v6977_v13, %v3353_v37  ;;  %v5606_v37 = vld [vmem:[%s6135_s17 + $0xc0] sm:$0xff]  }
0x1610   : > { %v3340_v5 = vmul.f32 %v5758_v31, %v6896_v56 }
0x1611   : > { %v3354_v7 = vmul.f32 %v6968_v63, %v3339_v17  ;;  %v5605_v17 = vld [vmem:[%s6135_s17 + $0x40] sm:$0xff]  }
0x1612   : > { %v5760_v30 = vpop.eup %5759  ;;  %v3355_v2 = vmul.f32 %v6968_v63, %v3340_v5 }
0x1613   : > { %v3369_v24 = vadd.f32 %v6977_v13, %v3354_v7  ;;  %v3341_v47 = vmul.f32 %v5760_v30, %v6902_v28  ;;  %v5607_v7 = vld [vmem:[%s6135_s17] sm:$0xff]  }
0x1614   : > { %v3370_v28 = vadd.f32 %v6977_v13, %v3355_v2  ;;  %v5608_v30 = vld [vmem:[%s6135_s17 + $0x80] sm:$0xff]  }
0x1615   : > { %v3376_v11 = vpack.c.bf16 %v3369_v24, %v3368_v43  ;;  %v3356_v51 = vmul.f32 %v6968_v63, %v3341_v47 }
0x1617   : > { %3627 = vmatmul.mubr.bf16.vlgmr.msra.gmra.mxu1 %v3376_v11  ;;  %3700 = vmatmul.mubr.bf16.vlgmr.msra.gmra.mxu0 %v3376_v11  ;;  %v3371_v56 = vadd.f32 %v6977_v13, %v3356_v51 }
0x1618   : > { %3636 = vmatprep.mubr.bf16.mxu1 %v5951_v55  ;;  %3709 = vmatprep.mubr.bf16.mxu0 %v5951_v55 }
0x1619   : > { %v3377_v4 = vpack.c.bf16 %v3371_v56, %v3370_v28  ;;  %5042 = vmatpush3.bf16.msra.mxu1 %v5579_v59  ;;  %5082 = vmatpush3.bf16.msra.mxu0 %v5580_v32 }
0x161a   : > { %5043 = vmatprep.subr.bf16.mxu1 %v5581_v19  ;;  %5083 = vmatprep.subr.bf16.mxu0 %v5582_v8 }
0x161d   : > { %5044 = vmatpush3.bf16.msra.mxu1 %v5583_v15  ;;  %5084 = vmatpush3.bf16.msra.mxu0 %v5584_v42 }
0x161e   : > { %5045 = vmatprep.subr.bf16.mxu1 %v5585_v49  ;;  %5085 = vmatprep.subr.bf16.mxu0 %v5586_v53 }
0x161f   : > { %3637 = vmatmul.mubr.bf16.gmra.mxu1 %v3377_v4  ;;  %3710 = vmatmul.mubr.bf16.gmra.mxu0 %v3377_v4 }
0x1620   : > { %3646 = vmatprep.mubr.bf16.mxu1 %v5951_v55  ;;  %3719 = vmatprep.mubr.bf16.mxu0 %v5951_v55 }
0x1621   : > { %5046 = vmatpush3.bf16.msra.mxu1 %v5587_v34  ;;  %5086 = vmatpush3.bf16.msra.mxu0 %v5588_v36 }
0x1622   : > { %5047 = vmatprep.subr.bf16.mxu1 %v5589_v50  ;;  %5087 = vmatprep.subr.bf16.mxu0 %v5590_v62 }
0x1625   : > { %5048 = vmatpush3.bf16.msra.mxu1 %v5591_v57  ;;  %5088 = vmatpush3.bf16.msra.mxu0 %v5592_v22 }
0x1626   : > { %5049 = vmatprep.subr.bf16.mxu1 %v5593_v48  ;;  %5089 = vmatprep.subr.bf16.mxu0 %v5594_v20 }
0x1629   : > { %5050 = vmatpush3.bf16.msra.mxu1 %v5595_v61  ;;  %5090 = vmatpush3.bf16.msra.mxu0 %v5596_v23 }
0x162a   : > { %5051 = vmatprep.subr.bf16.mxu1 %v5597_v18  ;;  %5091 = vmatprep.subr.bf16.mxu0 %v5598_v46 }
0x162d   : > { %5052 = vmatpush3.bf16.msra.mxu1 %v5599_v35  ;;  %5092 = vmatpush3.bf16.msra.mxu0 %v5600_v40 }
0x162e   : > { %5053 = vmatprep.subr.bf16.mxu1 %v5601_v12  ;;  %5093 = vmatprep.subr.bf16.mxu0 %v5602_v14 }
0x1631   : > { %5054 = vmatpush3.bf16.msra.mxu1 %v5603_v29  ;;  %5094 = vmatpush3.bf16.msra.mxu0 %v5604_v54 }
0x1632   : > { %5055 = vmatprep.subr.bf16.mxu1 %v5605_v17  ;;  %5095 = vmatprep.subr.bf16.mxu0 %v5606_v37 }
0x1635   : > { %5056 = vmatpush3.bf16.msra.mxu1 %v5607_v7  ;;  %5096 = vmatpush3.bf16.msra.mxu0 %v5608_v30 }
0x1680   : > { %v3307_v27 = vpop.xlane.xlu0 %3306 }
0x1681   : > { %v3318_v16 = vmul.f32 0.0078125, %v3307_v27 }
0x1683   : > { %v3326_v31 = vadd.f32 1e-05, %v3318_v16 }
0x1684   : > { %v3309_v43 = vpop.xlane.xlu1 %3308  ;;  %v3311_v24 = vpop.xlane.xlu0 %3310 }
0x1685   : > { %5761 = vrsqrt.f32 %v3326_v31  ;;  %v3319_v5 = vmul.f32 0.0078125, %v3309_v43  ;;  %v3320_v47 = vmul.f32 0.0078125, %v3311_v24 }
0x1687   : > { %v3327_v11 = vadd.f32 1e-05, %v3319_v5  ;;  %v3328_v51 = vadd.f32 1e-05, %v3320_v47 }
0x1688   : > { %v3313_v2 = vpop.xlane.xlu1 %3312 }
0x1689   : > { %5763 = vrsqrt.f32 %v3327_v11  ;;  %v3321_v56 = vmul.f32 0.0078125, %v3313_v2 }
0x168a   : > { %5765 = vrsqrt.f32 %v3328_v51 }
0x168b   : > { %v3329_v28 = vadd.f32 1e-05, %v3321_v56 }
0x168d   : > { %5767 = vrsqrt.f32 %v3329_v28 }
0x1692   : > { %v5762_v4 = vpop.eup %5761 }
0x1693   : > { %v3342_v38 = vmul.f32 %v5762_v4, %v6943_v52 }
0x1695   : > { %v3357_v32 = vmul.f32 %v6968_v63, %v3342_v38 }
0x1696   : > { %v5764_v0 = vpop.eup %5763 }
0x1697   : > { %v3343_v59 = vmul.f32 %v5764_v0, %v6948_v58  ;;  %v5766_v19 = vpop.eup %5765  ;;  %v3372_v42 = vadd.f32 %v6977_v13, %v3357_v32 }
0x1698   : > { %v3344_v53 = vmul.f32 %v5766_v19, %v6951_v39  ;;  %v3412_v39 = vld [vmem:[%s6130_s23] sm:$0xf] }
0x1699   : > { %v3358_v8 = vmul.f32 %v6968_v63, %v3343_v59  ;;  %v7042_v22 = vrot.slane %v3412_v39, %v1269_v10 }
0x169a   : > { %v5768_v15 = vpop.eup %5767  ;;  %v3359_v58 = vmul.f32 %v6968_v63, %v3344_v53 }
0x169b   : > { %v3373_v49 = vadd.f32 %v6977_v13, %v3358_v8  ;;  %v3345_v34 = vmul.f32 %v5768_v15, %v6958_v45  ;;  %v3428_v45 = vsub.s32 3, %v6335_v3 }
0x169c   : > { %v3374_v62 = vadd.f32 %v6977_v13, %v3359_v58 }
0x169d   : > { %v3378_v36 = vpack.c.bf16 %v3373_v49, %v3372_v42  ;;  %v3360_v52 = vmul.f32 %v6968_v63, %v3345_v34  ;;  %v7046_v63 = vrot.slane %v3412_v39, %v1277_v33  ;;  %v7052_v48 = vrot.slane %v3412_v39, %v3428_v45 }
0x169f   : > { %3647 = vmatmul.mubr.bf16.gmra.mxu1 %v3378_v36  ;;  %3720 = vmatmul.mubr.bf16.gmra.mxu0 %v3378_v36  ;;  %v3375_v50 = vadd.f32 %v6977_v13, %v3360_v52 }
0x16a0   : > { %3656 = vmatprep.mubr.bf16.mxu1 %v5951_v55  ;;  %3729 = vmatprep.mubr.bf16.mxu0 %v5951_v55  ;;  %v7050_v55 = vrot.slane %v3412_v39, %v1273_v21 }
0x16a1   : > { %v3379_v57 = vpack.c.bf16 %v3375_v50, %v3374_v62 }
0x16a7   : > { %3657 = vmatmul.mubr.bf16.gmra.mxu1 %v3379_v57  ;;  %3730 = vmatmul.mubr.bf16.gmra.mxu0 %v3379_v57 }
0x16d7   : > { %v3628_v13 = vpop.f32.mrf.mxu1  ;;  %v3701_v20 = vpop.f32.mrf.mxu0 }
0x16d8   : > { %v7055_v61 = vadd.f32 %v3628_v13, %v7042_v22  ;;  %v7058_v23 = vadd.f32 %v3701_v20, %v7046_v63 }
0x16d9   : > { %v3630_v10 = vpop.f32.mrf.mxu1  ;;  %v3703_v18 = vpop.f32.mrf.mxu0 }
0x16da   : > { %v4857_v46 = vmul.f32 -1.702, %v7055_v61  ;;  %v4859_v33 = vmul.f32 -1.702, %v7058_v23  ;;  %v7063_v3 = vadd.f32 %v3630_v10, %v7050_v55  ;;  %v7066_v21 = vadd.f32 %v3703_v18, %v7052_v48 }
0x16db   : > { %v3632_v35 = vpop.f32.mrf.mxu1  ;;  %v3705_v40 = vpop.f32.mrf.mxu0 }
0x16dc   : > { %v3804_v12 = vmul.f32 1.442695, %v4857_v46  ;;  %v3808_v14 = vmul.f32 1.442695, %v4859_v33  ;;  %v4858_v29 = vmul.f32 -1.702, %v7063_v3  ;;  %v7070_v54 = vadd.f32 %v3632_v35, %v7042_v22 }
0x16dd   : > { %v4860_v27 = vmul.f32 -1.702, %v7066_v21  ;;  %v7074_v16 = vadd.f32 %v3705_v40, %v7046_v63  ;;  %v3634_v17 = vpop.f32.mrf.mxu1  ;;  %v3707_v37 = vpop.f32.mrf.mxu0 }
0x16de   : > { %5769 = vpow2.f32 %v3804_v12  ;;  %v3806_v31 = vmul.f32 1.442695, %v4858_v29  ;;  %v4861_v7 = vmul.f32 -1.702, %v7070_v54  ;;  %v7078_v30 = vadd.f32 %v3634_v17, %v7050_v55 }
0x16df   : > { %5771 = vpow2.f32 %v3808_v14  ;;  %v3810_v43 = vmul.f32 1.442695, %v4860_v27  ;;  %v4863_v24 = vmul.f32 -1.702, %v7074_v16  ;;  %v7082_v5 = vadd.f32 %v3707_v37, %v7052_v48  ;;  %v3638_v47 = vpop.f32.mrf.mxu1  ;;  %v3711_v11 = vpop.f32.mrf.mxu0 }
0x16e0   : > { %5773 = vpow2.f32 %v3806_v31  ;;  %v3812_v51 = vmul.f32 1.442695, %v4861_v7  ;;  %v4862_v2 = vmul.f32 -1.702, %v7078_v30  ;;  %v7086_v56 = vadd.f32 %v3638_v47, %v7042_v22 }
0x16e1   : > { %5775 = vpow2.f32 %v3810_v43  ;;  %v3816_v28 = vmul.f32 1.442695, %v4863_v24  ;;  %v4864_v4 = vmul.f32 -1.702, %v7082_v5  ;;  %v7090_v38 = vadd.f32 %v3711_v11, %v7046_v63  ;;  %v3640_v0 = vpop.f32.mrf.mxu1  ;;  %v3713_v59 = vpop.f32.mrf.mxu0 }
0x16e2   : > { %5777 = vpow2.f32 %v3812_v51  ;;  %v3814_v32 = vmul.f32 1.442695, %v4862_v2  ;;  %v4865_v19 = vmul.f32 -1.702, %v7086_v56  ;;  %v7094_v8 = vadd.f32 %v3640_v0, %v7050_v55 }
0x16e3   : > { %5779 = vpow2.f32 %v3816_v28  ;;  %v3818_v15 = vmul.f32 1.442695, %v4864_v4  ;;  %v4867_v42 = vmul.f32 -1.702, %v7090_v38  ;;  %v7098_v49 = vadd.f32 %v3713_v59, %v7052_v48  ;;  %v3642_v53 = vpop.f32.mrf.mxu1  ;;  %v3715_v34 = vpop.f32.mrf.mxu0 }
0x16e4   : > { %5781 = vpow2.f32 %v3814_v32  ;;  %v3820_v36 = vmul.f32 1.442695, %v4865_v19  ;;  %v4866_v52 = vmul.f32 -1.702, %v7094_v8  ;;  %v7102_v58 = vadd.f32 %v3642_v53, %v7042_v22 }
0x16e5   : > { %5783 = vpow2.f32 %v3818_v15  ;;  %v3824_v50 = vmul.f32 1.442695, %v4867_v42  ;;  %v4868_v62 = vmul.f32 -1.702, %v7098_v49  ;;  %v7106_v57 = vadd.f32 %v3715_v34, %v7046_v63  ;;  %v3644_v39 = vpop.f32.mrf.mxu1  ;;  %v3717_v45 = vpop.f32.mrf.mxu0 }
0x16e6   : > { %5785 = vpow2.f32 %v3820_v36  ;;  %v3822_v13 = vmul.f32 1.442695, %v4866_v52  ;;  %v4869_v20 = vmul.f32 -1.702, %v7102_v58  ;;  %v7110_v10 = vadd.f32 %v3644_v39, %v7050_v55 }
0x16e7   : > { %5787 = vpow2.f32 %v3824_v50  ;;  %v3826_v18 = vmul.f32 1.442695, %v4868_v62  ;;  %v4871_v46 = vmul.f32 -1.702, %v7106_v57  ;;  %v7114_v33 = vadd.f32 %v3717_v45, %v7052_v48 }
0x16e8   : > { %5789 = vpow2.f32 %v3822_v13  ;;  %v3828_v35 = vmul.f32 1.442695, %v4869_v20  ;;  %v4870_v40 = vmul.f32 -1.702, %v7110_v10 }
0x16e9   : > { %5791 = vpow2.f32 %v3826_v18  ;;  %v3832_v12 = vmul.f32 1.442695, %v4871_v46  ;;  %v4872_v14 = vmul.f32 -1.702, %v7114_v33 }
0x16ea   : > { %5793 = vpow2.f32 %v3828_v35  ;;  %v3830_v29 = vmul.f32 1.442695, %v4870_v40 }
0x16eb   : > { %v5770_v27 = vpop.eup %5769  ;;  %5795 = vpow2.f32 %v3832_v12  ;;  %v3834_v17 = vmul.f32 1.442695, %v4872_v14 }
0x16ec   : > { %v5772_v37 = vpop.eup %5771  ;;  %v3868_v31 = vadd.f32 1.0, %v5770_v27  ;;  %5797 = vpow2.f32 %v3830_v29 }
0x16ed   : > { %v5774_v7 = vpop.eup %5773  ;;  %v3870_v43 = vadd.f32 1.0, %v5772_v37  ;;  %5799 = vpow2.f32 %v3834_v17 }
0x16ee   : > { %v5776_v24 = vpop.eup %5775  ;;  %5801 = vrcp.f32 %v3868_v31  ;;  %v3869_v47 = vadd.f32 1.0, %v5774_v7 }
0x16ef   : > { %v5778_v11 = vpop.eup %5777  ;;  %5803 = vrcp.f32 %v3870_v43  ;;  %v3871_v51 = vadd.f32 1.0, %v5776_v24 }
0x16f0   : > { %v5780_v2 = vpop.eup %5779  ;;  %5805 = vrcp.f32 %v3869_v47  ;;  %v3872_v28 = vadd.f32 1.0, %v5778_v11 }
0x16f1   : > { %v5782_v4 = vpop.eup %5781  ;;  %5807 = vrcp.f32 %v3871_v51  ;;  %v3874_v0 = vadd.f32 1.0, %v5780_v2 }
0x16f2   : > { %v5784_v59 = vpop.eup %5783  ;;  %5809 = vrcp.f32 %v3872_v28  ;;  %v3873_v32 = vadd.f32 1.0, %v5782_v4 }
0x16f3   : > { %v5786_v19 = vpop.eup %5785  ;;  %5811 = vrcp.f32 %v3874_v0  ;;  %v3875_v15 = vadd.f32 1.0, %v5784_v59 }
0x16f4   : > { %v5788_v42 = vpop.eup %5787  ;;  %5813 = vrcp.f32 %v3873_v32  ;;  %v3876_v53 = vadd.f32 1.0, %v5786_v19 }
0x16f5   : > { %v5790_v34 = vpop.eup %5789  ;;  %5815 = vrcp.f32 %v3875_v15  ;;  %v3878_v36 = vadd.f32 1.0, %v5788_v42 }
0x16f6   : > { %v5792_v52 = vpop.eup %5791  ;;  %5817 = vrcp.f32 %v3876_v53  ;;  %v3877_v50 = vadd.f32 1.0, %v5790_v34 }
0x16f7   : > { %v5794_v62 = vpop.eup %5793  ;;  %5819 = vrcp.f32 %v3878_v36  ;;  %v3879_v39 = vadd.f32 1.0, %v5792_v52 }
0x16f8   : > { %v5796_v45 = vpop.eup %5795  ;;  %5821 = vrcp.f32 %v3877_v50  ;;  %v3880_v13 = vadd.f32 1.0, %v5794_v62 }
0x16f9   : > { %v5798_v20 = vpop.eup %5797  ;;  %5823 = vrcp.f32 %v3879_v39  ;;  %v3882_v18 = vadd.f32 1.0, %v5796_v45 }
0x16fa   : > { %v5800_v46 = vpop.eup %5799  ;;  %5825 = vrcp.f32 %v3880_v13  ;;  %v3881_v35 = vadd.f32 1.0, %v5798_v20 }
0x16fb   : > { %v5802_v40 = vpop.eup %5801  ;;  %5827 = vrcp.f32 %v3882_v18  ;;  %v3883_v12 = vadd.f32 1.0, %v5800_v46 }
0x16fc   : > { %v5804_v14 = vpop.eup %5803  ;;  %5829 = vrcp.f32 %v3881_v35  ;;  %v3964_v2 = vmul.f32 %v5802_v40, %v7055_v61 }
0x16fd   : > { %v5806_v29 = vpop.eup %5805  ;;  %5831 = vrcp.f32 %v3883_v12  ;;  %v3966_v59 = vmul.f32 %v5804_v14, %v7058_v23 }
0x16fe   : > { %v5808_v27 = vpop.eup %5807  ;;  %v3965_v24 = vmul.f32 %v5806_v29, %v7063_v3 }
0x16ff   : > { %v5810_v17 = vpop.eup %5809  ;;  %v3967_v28 = vmul.f32 %v5808_v27, %v7066_v21 }
0x1700   : > { %v5812_v37 = vpop.eup %5811  ;;  %v3968_v7 = vmul.f32 %v5810_v17, %v7070_v54 }
0x1701   : > { %v5814_v31 = vpop.eup %5813  ;;  %v3970_v47 = vmul.f32 %v5812_v37, %v7074_v16 }
0x1702   : > { %v5816_v43 = vpop.eup %5815  ;;  %v3969_v11 = vmul.f32 %v5814_v31, %v7078_v30  ;;  %v3996_v54 = vpack.c.bf16 %v3968_v7, %v3964_v2 }
0x1703   : > { %v5818_v51 = vpop.eup %5817  ;;  %v3971_v4 = vmul.f32 %v5816_v43, %v7082_v5  ;;  %v3998_v3 = vpack.c.bf16 %v3970_v47, %v3966_v59 }
0x1704   : > { %v5820_v0 = vpop.eup %5819  ;;  %v3997_v32 = vpack.c.bf16 %v3969_v11, %v3965_v24  ;;  %v3972_v36 = vmul.f32 %v5818_v51, %v7086_v56 }
0x1705   : > { %v5822_v19 = vpop.eup %5821  ;;  %v3999_v15 = vpack.c.bf16 %v3971_v4, %v3967_v28  ;;  %v3974_v62 = vmul.f32 %v5820_v0, %v7090_v38 }
0x1706   : > { %v5824_v42 = vpop.eup %5823  ;;  %4307 = vmatprep.mubr.bf16.mxu1 %v3997_v32  ;;  %v3973_v5 = vmul.f32 %v5822_v19, %v7094_v8 }
0x1707   : > { %v5826_v16 = vpop.eup %5825  ;;  %4372 = vmatprep.mubr.bf16.mxu0 %v3999_v15  ;;  %4308 = vmatmul.mubr.bf16.vlgmr.msra.gmra.mxu1 %v3996_v54  ;;  %v3975_v52 = vmul.f32 %v5824_v42, %v7098_v49 }
0x1708   : > { %v5828_v30 = vpop.eup %5827  ;;  %4373 = vmatmul.mubr.bf16.vlgmr.msra.gmra.mxu0 %v3998_v3  ;;  %v3976_v21 = vmul.f32 %v5826_v16, %v7102_v58 }
0x1709   : > { %v5830_v61 = vpop.eup %5829  ;;  %v3978_v23 = vmul.f32 %v5828_v30, %v7106_v57 }
0x170a   : > { %v5832_v53 = vpop.eup %5831  ;;  %v3977_v34 = vmul.f32 %v5830_v61, %v7110_v10  ;;  %v4000_v13 = vpack.c.bf16 %v3976_v21, %v3972_v36 }
0x170b   : > { %v3979_v50 = vmul.f32 %v5832_v53, %v7114_v33  ;;  %v4002_v58 = vpack.c.bf16 %v3978_v23, %v3974_v62 }
0x170c   : > { %v4001_v39 = vpack.c.bf16 %v3977_v34, %v3973_v5 }
0x170d   : > { %v4003_v45 = vpack.c.bf16 %v3979_v50, %v3975_v52 }
0x170e   : > { %4315 = vmatprep.mubr.bf16.mxu1 %v4001_v39 }
0x170f   : > { %4380 = vmatprep.mubr.bf16.mxu0 %v4003_v45  ;;  %4316 = vmatmul.mubr.bf16.gmra.mxu1 %v4000_v13 }
0x1710   : > { %4381 = vmatmul.mubr.bf16.gmra.mxu0 %v4002_v58 }
0x175f   : > { %v3648_v8 = vpop.f32.mrf.mxu1  ;;  %v3721_v57 = vpop.f32.mrf.mxu0 }
0x1760   : > { %v7135_v10 = vadd.f32 %v3648_v8, %v7042_v22  ;;  %v7138_v56 = vadd.f32 %v3721_v57, %v7046_v63 }
0x1761   : > { %v3650_v49 = vpop.f32.mrf.mxu1  ;;  %v3723_v33 = vpop.f32.mrf.mxu0 }
0x1762   : > { %v4873_v38 = vmul.f32 -1.702, %v7135_v10  ;;  %v4875_v20 = vmul.f32 -1.702, %v7138_v56  ;;  %v7143_v18 = vadd.f32 %v3650_v49, %v7050_v55  ;;  %v7146_v46 = vadd.f32 %v3723_v33, %v7052_v48 }
0x1763   : > { %v3652_v35 = vpop.f32.mrf.mxu1  ;;  %v3725_v40 = vpop.f32.mrf.mxu0 }
0x1764   : > { %v3836_v12 = vmul.f32 1.442695, %v4873_v38  ;;  %v3840_v14 = vmul.f32 1.442695, %v4875_v20  ;;  %v4874_v29 = vmul.f32 -1.702, %v7143_v18  ;;  %v7150_v27 = vadd.f32 %v3652_v35, %v7042_v22 }
0x1765   : > { %v4876_v17 = vmul.f32 -1.702, %v7146_v46  ;;  %v7154_v37 = vadd.f32 %v3725_v40, %v7046_v63  ;;  %v3654_v31 = vpop.f32.mrf.mxu1  ;;  %v3727_v7 = vpop.f32.mrf.mxu0 }
0x1766   : > { %5833 = vpow2.f32 %v3836_v12  ;;  %v3838_v43 = vmul.f32 1.442695, %v4874_v29  ;;  %v4877_v24 = vmul.f32 -1.702, %v7150_v27  ;;  %v7158_v47 = vadd.f32 %v3654_v31, %v7050_v55 }
0x1767   : > { %5835 = vpow2.f32 %v3840_v14  ;;  %v3842_v11 = vmul.f32 1.442695, %v4876_v17  ;;  %v4879_v51 = vmul.f32 -1.702, %v7154_v37  ;;  %v7162_v2 = vadd.f32 %v3727_v7, %v7052_v48  ;;  %v3658_v28 = vpop.f32.mrf.mxu1  ;;  %v3731_v4 = vpop.f32.mrf.mxu0 }
0x1768   : > { %5837 = vpow2.f32 %v3838_v43  ;;  %v3844_v0 = vmul.f32 1.442695, %v4877_v24  ;;  %v4878_v59 = vmul.f32 -1.702, %v7158_v47  ;;  %v7166_v32 = vadd.f32 %v3658_v28, %v7042_v22 }
0x1769   : > { %5839 = vpow2.f32 %v3842_v11  ;;  %v3848_v19 = vmul.f32 1.442695, %v4879_v51  ;;  %v4880_v54 = vmul.f32 -1.702, %v7162_v2  ;;  %v7170_v15 = vadd.f32 %v3731_v4, %v7046_v63  ;;  %v3660_v42 = vpop.f32.mrf.mxu1  ;;  %v3733_v3 = vpop.f32.mrf.mxu0 }
0x176a   : > { %5841 = vpow2.f32 %v3844_v0  ;;  %v3846_v16 = vmul.f32 1.442695, %v4878_v59  ;;  %v4881_v30 = vmul.f32 -1.702, %v7166_v32  ;;  %v7174_v61 = vadd.f32 %v3660_v42, %v7050_v55 }
0x176b   : > { %5843 = vpow2.f32 %v3848_v19  ;;  %v3850_v21 = vmul.f32 1.442695, %v4880_v54  ;;  %v4883_v53 = vmul.f32 -1.702, %v7170_v15  ;;  %v7178_v5 = vadd.f32 %v3733_v3, %v7052_v48  ;;  %v3662_v23 = vpop.f32.mrf.mxu1  ;;  %v3735_v34 = vpop.f32.mrf.mxu0 }
0x176c   : > { %5845 = vpow2.f32 %v3846_v16  ;;  %v3852_v36 = vmul.f32 1.442695, %v4881_v30  ;;  %v4882_v52 = vmul.f32 -1.702, %v7174_v61  ;;  %v7182_v50 = vadd.f32 %v3662_v23, %v7042_v22 }
0x176d   : > { %5847 = vpow2.f32 %v3850_v21  ;;  %v3856_v62 = vmul.f32 1.442695, %v4883_v53  ;;  %v4884_v39 = vmul.f32 -1.702, %v7178_v5  ;;  %v7186_v45 = vadd.f32 %v3735_v34, %v7046_v63  ;;  %v3664_v13 = vpop.f32.mrf.mxu1  ;;  %v3737_v58 = vpop.f32.mrf.mxu0 }
0x176e   : > { %5849 = vpow2.f32 %v3852_v36  ;;  %v3854_v8 = vmul.f32 1.442695, %v4882_v52  ;;  %v4885_v57 = vmul.f32 -1.702, %v7182_v50  ;;  %v7190_v49 = vadd.f32 %v3664_v13, %v7050_v55 }
0x176f   : > { %5851 = vpow2.f32 %v3856_v62  ;;  %v3858_v33 = vmul.f32 1.442695, %v4884_v39  ;;  %v4887_v22 = vmul.f32 -1.702, %v7186_v45  ;;  %v7194_v38 = vadd.f32 %v3737_v58, %v7052_v48 }
0x1770   : > { %5853 = vpow2.f32 %v3854_v8  ;;  %v3860_v20 = vmul.f32 1.442695, %v4885_v57  ;;  %v4886_v63 = vmul.f32 -1.702, %v7190_v49 }
0x1771   : > { %5855 = vpow2.f32 %v3858_v33  ;;  %v3864_v35 = vmul.f32 1.442695, %v4887_v22  ;;  %v4888_v40 = vmul.f32 -1.702, %v7194_v38 }
0x1772   : > { %5857 = vpow2.f32 %v3860_v20  ;;  %v3862_v12 = vmul.f32 1.442695, %v4886_v63 }
0x1773   : > { %v5834_v14 = vpop.eup %5833  ;;  %5859 = vpow2.f32 %v3864_v35  ;;  %v3866_v55 = vmul.f32 1.442695, %v4888_v40 }
0x1774   : > { %v5836_v29 = vpop.eup %5835  ;;  %v3884_v17 = vadd.f32 1.0, %v5834_v14  ;;  %5861 = vpow2.f32 %v3862_v12 }
0x1775   : > { %v5838_v31 = vpop.eup %5837  ;;  %v3886_v7 = vadd.f32 1.0, %v5836_v29  ;;  %5863 = vpow2.f32 %v3866_v55 }
0x1776   : > { %v5840_v48 = vpop.eup %5839  ;;  %5865 = vrcp.f32 %v3884_v17  ;;  %v3885_v43 = vadd.f32 1.0, %v5838_v31 }
0x1777   : > { %v5842_v24 = vpop.eup %5841  ;;  %5867 = vrcp.f32 %v3886_v7  ;;  %v3887_v11 = vadd.f32 1.0, %v5840_v48 }
0x1778   : > { %v5844_v51 = vpop.eup %5843  ;;  %5869 = vrcp.f32 %v3885_v43  ;;  %v3888_v28 = vadd.f32 1.0, %v5842_v24 }
0x1779   : > { %v5846_v4 = vpop.eup %5845  ;;  %5871 = vrcp.f32 %v3887_v11  ;;  %v3890_v0 = vadd.f32 1.0, %v5844_v51 }
0x177a   : > { %v5848_v59 = vpop.eup %5847  ;;  %5873 = vrcp.f32 %v3888_v28  ;;  %v3889_v19 = vadd.f32 1.0, %v5846_v4 }
0x177b   : > { %v5850_v54 = vpop.eup %5849  ;;  %5875 = vrcp.f32 %v3890_v0  ;;  %v3891_v42 = vadd.f32 1.0, %v5848_v59 }
0x177c   : > { %v5852_v3 = vpop.eup %5851  ;;  %5877 = vrcp.f32 %v3889_v19  ;;  %v3892_v16 = vadd.f32 1.0, %v5850_v54 }
0x177d   : > { %v5854_v30 = vpop.eup %5853  ;;  %5879 = vrcp.f32 %v3891_v42  ;;  %v3894_v21 = vadd.f32 1.0, %v5852_v3 }
0x177e   : > { %v5856_v53 = vpop.eup %5855  ;;  %5881 = vrcp.f32 %v3892_v16  ;;  %v3893_v23 = vadd.f32 1.0, %v5854_v30 }
0x177f   : > { %v5858_v34 = vpop.eup %5857  ;;  %5883 = vrcp.f32 %v3894_v21  ;;  %v3895_v36 = vadd.f32 1.0, %v5856_v53 }
0x1780   : > { %v5860_v52 = vpop.eup %5859  ;;  %5885 = vrcp.f32 %v3893_v23  ;;  %v3896_v62 = vadd.f32 1.0, %v5858_v34 }
0x1781   : > { %v5862_v39 = vpop.eup %5861  ;;  %5887 = vrcp.f32 %v3895_v36  ;;  %v3898_v13 = vadd.f32 1.0, %v5860_v52 }
0x1782   : > { %v5864_v58 = vpop.eup %5863  ;;  %5889 = vrcp.f32 %v3896_v62  ;;  %v3897_v8 = vadd.f32 1.0, %v5862_v39 }
0x1783   : > { %v5866_v57 = vpop.eup %5865  ;;  %5891 = vrcp.f32 %v3898_v13  ;;  %v3899_v33 = vadd.f32 1.0, %v5864_v58 }
0x1784   : > { %v5868_v22 = vpop.eup %5867  ;;  %5893 = vrcp.f32 %v3897_v8  ;;  %v3980_v48 = vmul.f32 %v5866_v57, %v7135_v10 }
0x1785   : > { %v5870_v20 = vpop.eup %5869  ;;  %5895 = vrcp.f32 %v3899_v33  ;;  %v3982_v51 = vmul.f32 %v5868_v22, %v7138_v56 }
0x1786   : > { %v5872_v63 = vpop.eup %5871  ;;  %v3981_v29 = vmul.f32 %v5870_v20, %v7143_v18 }
0x1787   : > { %v5874_v35 = vpop.eup %5873  ;;  %v3983_v43 = vmul.f32 %v5872_v63, %v7146_v46 }
0x1788   : > { %v5876_v40 = vpop.eup %5875  ;;  %v3984_v14 = vmul.f32 %v5874_v35, %v7150_v27 }
0x1789   : > { %v5878_v12 = vpop.eup %5877  ;;  %v3986_v17 = vmul.f32 %v5876_v40, %v7154_v37 }
0x178a   : > { %v5880_v55 = vpop.eup %5879  ;;  %v3985_v31 = vmul.f32 %v5878_v12, %v7158_v47  ;;  %v4004_v0 = vpack.c.bf16 %v3984_v14, %v3980_v48 }
0x178b   : > { %v5882_v7 = vpop.eup %5881  ;;  %v3987_v24 = vmul.f32 %v5880_v55, %v7162_v2  ;;  %v4006_v18 = vpack.c.bf16 %v3986_v17, %v3982_v51 }
0x178c   : > { %v5884_v11 = vpop.eup %5883  ;;  %v4005_v28 = vpack.c.bf16 %v3985_v31, %v3981_v29  ;;  %v3988_v42 = vmul.f32 %v5882_v7, %v7166_v32  ;;  %v7219_v32 = vld [vmem:[%s820_s24] ss:$0 sm:$0xff]  ;;  %s7346_s24 = sld [smem:[#allocation15_spill]] (!%p4922_p5) }
0x178d   : > { %v5886_v4 = vpop.eup %5885  ;;  %v4007_v27 = vpack.c.bf16 %v3987_v24, %v3983_v43  ;;  %v3990_v30 = vmul.f32 %v5884_v11, %v7170_v15 }
0x178e   : > { %v5888_v59 = vpop.eup %5887  ;;  %4323 = vmatprep.mubr.bf16.mxu1 %v4005_v28  ;;  %v3989_v2 = vmul.f32 %v5886_v4, %v7174_v61 }
0x178f   : > { %v5890_v37 = vpop.eup %5889  ;;  %4388 = vmatprep.mubr.bf16.mxu0 %v4007_v27  ;;  %4324 = vmatmul.mubr.bf16.gmra.mxu1 %v4004_v0  ;;  %v3991_v3 = vmul.f32 %v5888_v59, %v7178_v5 }
0x1790   : > { %v5892_v47 = vpop.eup %5891  ;;  %4389 = vmatmul.mubr.bf16.gmra.mxu0 %v4006_v18  ;;  %v3992_v46 = vmul.f32 %v5890_v37, %v7182_v50 }
0x1791   : > { %v5894_v10 = vpop.eup %5893  ;;  %v3994_v56 = vmul.f32 %v5892_v47, %v7186_v45 }
0x1792   : > { %v5896_v19 = vpop.eup %5895  ;;  %v3993_v54 = vmul.f32 %v5894_v10, %v7190_v49  ;;  %v4008_v23 = vpack.c.bf16 %v3992_v46, %v3988_v42 }
0x1793   : > { %v3995_v16 = vmul.f32 %v5896_v19, %v7194_v38  ;;  %v4010_v50 = vpack.c.bf16 %v3994_v56, %v3990_v30 }
0x1794   : > { %v4009_v21 = vpack.c.bf16 %v3993_v54, %v3989_v2 }
0x1795   : > { %v4011_v53 = vpack.c.bf16 %v3995_v16, %v3991_v3 }
0x1796   : > { %4331 = vmatprep.mubr.bf16.mxu1 %v4009_v21 }
0x1797   : > { %4396 = vmatprep.mubr.bf16.mxu0 %v4011_v53  ;;  %4332 = vmatmul.mubr.bf16.gmra.mxu1 %v4008_v23 }
0x1798   : > { %4397 = vmatmul.mubr.bf16.gmra.mxu0 %v4010_v50 }
0x17c7   : > { %v5057_v61 = vpop.f32.mrf.mxu1 }
0x17c8   : > { %v5097_v45 = vpop.f32.mrf.mxu0 }
0x17c9   : > { %v5058_v5 = vpop.f32.mrf.mxu1 }
0x17ca   : > { %v5059_v49 = vadd.f32 %v5058_v5, %v5057_v61  ;;  %v5098_v38 = vpop.f32.mrf.mxu0 }
0x17cb   : > { %v5060_v15 = vpop.f32.mrf.mxu1  ;;  %v5099_v36 = vadd.f32 %v5098_v38, %v5097_v45 }
0x17cc   : > { %v4310_v34 = vadd.f32 %v5059_v49, %v7219_v32  ;;  %v5100_v52 = vpop.f32.mrf.mxu0 }
0x17cd   : > { %v5061_v62 = vpop.f32.mrf.mxu1 }
0x17ce   : > { %v4375_v39 = vadd.f32 %v5099_v36, %v4310_v34  ;;  %v5062_v13 = vadd.f32 %v5061_v62, %v5060_v15  ;;  %v5101_v58 = vpop.f32.mrf.mxu0 }
0x17cf   : > { %v5063_v8 = vpop.f32.mrf.mxu1  ;;  %v5102_v22 = vadd.f32 %v5101_v58, %v5100_v52 }
0x17d0   : > { %v7223_v57 = vadd.f32 %v4375_v39, %v6843_v41  ;;  %v4313_v33 = vadd.f32 %v5062_v13, %v7219_v32  ;;  %v5103_v20 = vpop.f32.mrf.mxu0 }
0x17d1   : > { %v5064_v63 = vpop.f32.mrf.mxu1 }
0x17d2   : > { %4413 = vst [vmem:[#allocation2 + $0x30] sm:$0xff] %v7223_v57  ;;  %v4378_v35 = vadd.f32 %v5102_v22, %v4313_v33  ;;  %v5065_v40 = vadd.f32 %v5064_v63, %v5063_v8  ;;  %v5104_v12 = vpop.f32.mrf.mxu0 }
0x17d3   : > { %v5066_v14 = vpop.f32.mrf.mxu1  ;;  %v5105_v17 = vadd.f32 %v5104_v12, %v5103_v20 }
0x17d4   : > { %v4406_v55 = vadd.f32 %v4378_v35, %v6847_v44  ;;  %v4318_v29 = vadd.f32 %v5065_v40, %v7219_v32  ;;  %v5106_v31 = vpop.f32.mrf.mxu0 }
0x17d5   : > { %v5067_v7 = vpop.f32.mrf.mxu1 }
0x17d6   : > { %4414 = vst [vmem:[#allocation2] sm:$0xff] %v4406_v55  ;;  %v4383_v41 = vadd.f32 %v5105_v17, %v4318_v29  ;;  %v5068_v48 = vadd.f32 %v5067_v7, %v5066_v14  ;;  %v5107_v43 = vpop.f32.mrf.mxu0 }
0x17d7   : > { %v5108_v51 = vadd.f32 %v5107_v43, %v5106_v31 }
0x17d8   : > { %v4407_v24 = vadd.f32 %v4383_v41, %v6849_v9  ;;  %v4321_v11 = vadd.f32 %v5068_v48, %v7219_v32 }
0x17da   : > { %4415 = vst [vmem:[#allocation2 + $0x18] sm:$0xff] %v4407_v24  ;;  %v4386_v28 = vadd.f32 %v5108_v51, %v4321_v11 }
0x17dc   : > { %v4408_v4 = vadd.f32 %v4386_v28, %v6854_v60 }
0x17de   : > { %4416 = vst [vmem:[#allocation2 + $0x10] sm:$0xff] %v4408_v4 }
0x184f   : > { %v5069_v44 = vpop.f32.mrf.mxu1 }
0x1850   : > { %v5109_v27 = vpop.f32.mrf.mxu0 }
0x1851   : > { %v5070_v0 = vpop.f32.mrf.mxu1 }
0x1852   : > { %v5071_v59 = vadd.f32 %v5070_v0, %v5069_v44  ;;  %v5110_v18 = vpop.f32.mrf.mxu0 }
0x1853   : > { %v5072_v37 = vpop.f32.mrf.mxu1  ;;  %v5111_v10 = vadd.f32 %v5110_v18, %v5109_v27 }
0x1854   : > { %v4326_v47 = vadd.f32 %v5071_v59, %v7219_v32  ;;  %v5112_v46 = vpop.f32.mrf.mxu0 }
0x1855   : > { %v5073_v19 = vpop.f32.mrf.mxu1 }
0x1856   : > { %v4391_v9 = vadd.f32 %v5111_v10, %v4326_v47  ;;  %v5074_v2 = vadd.f32 %v5073_v19, %v5072_v37  ;;  %v5113_v56 = vpop.f32.mrf.mxu0 }
0x1857   : > { %v5075_v54 = vpop.f32.mrf.mxu1  ;;  %v5114_v3 = vadd.f32 %v5113_v56, %v5112_v46 }
0x1858   : > { %v4409_v42 = vadd.f32 %v4391_v9, %v6876_v6  ;;  %v4329_v60 = vadd.f32 %v5074_v2, %v7219_v32  ;;  %v5115_v16 = vpop.f32.mrf.mxu0 }
0x1859   : > { %v5076_v30 = vpop.f32.mrf.mxu1 }
0x185a   : > { %4417 = vst [vmem:[#allocation2 + $0x8] sm:$0xff] %v4409_v42  ;;  %v4394_v21 = vadd.f32 %v5114_v3, %v4329_v60  ;;  %v5077_v53 = vadd.f32 %v5076_v30, %v5075_v54  ;;  %v5116_v23 = vpop.f32.mrf.mxu0 }
0x185b   : > { %v5078_v50 = vpop.f32.mrf.mxu1  ;;  %v5117_v5 = vadd.f32 %v5116_v23, %v5115_v16 }
0x185c   : > { %v4410_v61 = vadd.f32 %v4394_v21, %v6886_v1  ;;  %v4334_v45 = vadd.f32 %v5077_v53, %v7219_v32  ;;  %v5118_v49 = vpop.f32.mrf.mxu0 }
0x185d   : > { %v5079_v38 = vpop.f32.mrf.mxu1 }
0x185e   : > { %4418 = vst [vmem:[#allocation2 + $0x20] sm:$0xff] %v4410_v61  ;;  %v4399_v15 = vadd.f32 %v5117_v5, %v4334_v45  ;;  %v5080_v6 = vadd.f32 %v5079_v38, %v5078_v50  ;;  %v5119_v34 = vpop.f32.mrf.mxu0 }
0x185f   : > { %v5120_v62 = vadd.f32 %v5119_v34, %v5118_v49 }
0x1860   : > { %v4411_v36 = vadd.f32 %v4399_v15, %v6883_v25  ;;  %v4337_v52 = vadd.f32 %v5080_v6, %v7219_v32 }
0x1862   : > { %4419 = vst [vmem:[#allocation2 + $0x28] sm:$0xff] %v4411_v36  ;;  %v4402_v39 = vadd.f32 %v5120_v62, %v4337_v52  ;;  %4424 = sbr.rel (%p4922_p5) target bundleno = 6759 (0x1a67), region = 112 }
0x1864   : > { %v4412_v13 = vadd.f32 %v4402_v39, %v6898_v26 }
0x1866   : > { %4420 = vst [vmem:[#allocation2 + $0x38] sm:$0xff] %v4412_v13 }
0x1867   : > { %v4426_v1 = vrot.slane %v4409_v42, 7  ;;  %vm4428_vm4 = vcmask 1040384   ;;  %vm4430_vm5 = vcmask 1041408   ;;  %v5905_v25 = vld [vmem:[%s7311_s19 + $0x38] sm:$0xff]   ;;  %v5955_v32 = vmov 0.0   ;;  %v5906_v26 = vld [vmem:[%s7311_s19 + $0x30] sm:$0xff]  }
0x1868   : > { %5330 = vmatprep.subr.bf16.mxu0 %v5955_v32  ;;  %v5907_v35 = vld [vmem:[%s7311_s19 + $0x28] sm:$0xff]   ;;  %v5908_v40 = vld [vmem:[%s7311_s19 + $0x20] sm:$0xff]   ;;  %vm5956_vm6 = vmmov 0   ;;  %v5909_v12 = vld [vmem:[%s7311_s19 + $0x18] sm:$0xff]  }
0x1869   : > { %v4429_v58 = vsel %vm4428_vm4, %v7223_v57, %v4426_v1  ;;  %5331 = vmatpush3.bf16.msra.mxu0 %v5905_v25  ;;  %5346 = vmatprep.mubr.msk.bf16.mxu0 %vm5956_vm6, %v5955_v32  ;;  %v5910_v14 = vld [vmem:[%s7311_s19 + $0x10] sm:$0xff]   ;;  %v5911_v55 = vld [vmem:[%s7311_s19 + $0x8] sm:$0xff]   ;;  %v5912_v29 = vld [vmem:[%s7311_s19] sm:$0xff]  }
0x186a   : > { %v4431_v8 = vsel %vm4430_vm5, %v4429_v58, 0.0  ;;  %5332 = vmatprep.subr.bf16.mxu0 %v5955_v32  ;;  %v4923_v48 = vld [vmem:[%s7346_s24] ss:$0 sm:$0xff] }
0x186b   : > { %4432 = vadd.xlane.f32.xlu0 %v4431_v8  ;;  %v4924_v24 = vld [vmem:[%s7347_s2] ss:$0 sm:$0xff] }
0x186c   : > { %v4925_v4 = vld [vmem:[%s7348_s0] ss:$0 sm:$0xff] }
0x186d   : > { %5333 = vmatpush3.bf16.msra.mxu0 %v5906_v26 }
0x186e   : > { %5334 = vmatprep.subr.bf16.mxu0 %v5955_v32 }
0x1871   : > { %5335 = vmatpush3.bf16.msra.mxu0 %v5907_v35 }
0x1872   : > { %5336 = vmatprep.subr.bf16.mxu0 %v5955_v32 }
0x1875   : > { %5337 = vmatpush3.bf16.msra.mxu0 %v5908_v40 }
0x1876   : > { %5338 = vmatprep.subr.bf16.mxu0 %v5955_v32 }
0x1879   : > { %5339 = vmatpush3.bf16.msra.mxu0 %v5909_v12 }
0x187a   : > { %5340 = vmatprep.subr.bf16.mxu0 %v5955_v32 }
0x187d   : > { %5341 = vmatpush3.bf16.msra.mxu0 %v5910_v14 }
0x187e   : > { %5342 = vmatprep.subr.bf16.mxu0 %v5955_v32 }
0x1881   : > { %5343 = vmatpush3.bf16.msra.mxu0 %v5911_v55 }
0x1882   : > { %5344 = vmatprep.subr.bf16.mxu0 %v5955_v32 }
0x1885   : > { %5345 = vmatpush3.bf16.msra.mxu0 %v5912_v29 }
0x18f4   : > { %v4433_v33 = vpop.xlane.xlu0 %4432 }
0x18f5   : > { %v4434_v22 = vmul.f32 0.0078125, %v4433_v33 }
0x18f7   : > { %v4435_v57 = vsub.f32 %v4429_v58, %v4434_v22 }
0x18f9   : > { %v4436_v20 = vmul.f32 %v4435_v57, %v4435_v57 }
0x18fb   : > { %v4437_v63 = vsel %vm4430_vm5, %v4436_v20, 0.0 }
0x18fc   : > { %4438 = vadd.xlane.f32.xlu0 %v4437_v63 }
0x1985   : > { %v4439_v17 = vpop.xlane.xlu0 %4438 }
0x1986   : > { %v4440_v31 = vmul.f32 0.0078125, %v4439_v17 }
0x1988   : > { %v4441_v7 = vadd.f32 1e-05, %v4440_v31 }
0x198a   : > { %5913 = vrsqrt.f32 %v4441_v7 }
0x1997   : > { %v5914_v41 = vpop.eup %5913 }
0x1998   : > { %v4443_v43 = vmul.f32 %v5914_v41, %v4435_v57 }
0x199a   : > { %v4451_v11 = vmul.f32 %v4923_v48, %v4443_v43 }
0x199c   : > { %v4459_v51 = vadd.f32 %v4924_v24, %v4451_v11 }
0x199e   : > { %v4460_v28 = vpack.c.bf16 %v4459_v51, %v4459_v51 }
0x19a0   : > { %5347 = vmatmul.mubr.bf16.vlgmr.msra.gmra.mxu0 %v4460_v28 }
0x1a60   : > { %v4566_v44 = vpop.f32.mrf.mxu0 }
0x1a61   : > { %v4567_v27 = vadd.f32 %v4925_v4, %v4566_v44 }
0x1a62   : > { %v5348_v0 = vpop.f32.mrf.mxu0 }
0x1a63   : > { %4572 = vst [vmem:[#allocation3] sm:$0x3] %v4567_v27 }
0x1a64   : > { %v4569_v59 = vpop.f32.mrf.mxu0 }
0x1a66   : > { %v5349_v18 = vpop.f32.mrf.mxu0 }
0x1a67 PF: > { %p5388_p6 = scmp.eq.s32.totalorder %s6074_s25, 1  ;;  %s5957_s21 = smov [#allocation3]  }
0x1a68   : > { %s4580_s7 = sshll.u32 %s5957_s21, 4  ;;  %s4581_s7 = int_to_ptr.vmem [resolvable:$true] %s4580_s7 }
0x1a69   : > { %s5915_s1 = scalar_lea.vmem %s4581_s7, 32  ;;  %p5922_p10 = scmp.lt.s32.totalorder %s4581_s7, %s4581_s7 }
0x1a6a   : > { %p5916_p7 = scmp.ne.s32.totalorder %s4581_s7, %s5915_s1  ;;  %p5923_p11 = scmp.lt.s32.totalorder %s5915_s1, %s5915_s1 }
0x1a6c   : > { %p5917_p8 = pnand %p5916_p7, %p5388_p6  ;;  %p5924_p12 = por %p5923_p11, %p5922_p10 }
0x1a6e   : > { %p5918_p9 = pneg %p5917_p8 }
0x1a70   : > { %p5925_p13 = pnand %p5924_p12, %p5918_p9 }
0x1a72   : > { %5928 = shalt.err (!%p5925_p13)
}
0x1a73   : > { %s7349_s5 = sld [smem:[#allocation18_spill]] }
0x1a79   : > { %5385 = dma.vmem_to_hbm [thread:$0]  (%p5388_p6), %s4581_s7, 32, %s7349_s5, [#allocation4]  }
0x1a7a   : > { %5944 = dma.done.wait (%p5388_p6), [#allocation4], 32  }
0x1a7b   : > { %5946 = vsyncadd (%p5388_p6), [#allocation4], 4294967264 }
0x1a7c PF: > { %s7350_s3 = sld [smem:[#allocation6_spill]] }
0x1a82   : > { %s32_s2 = sadd.s32 1, %s7350_s3  }
0x1a83   : > { %p29_p0 = scmp.ge.s32.totalorder %s32_s2, 4  }
0x1a85   :  { %31 = sbr.rel (!%p29_p0) target bundleno = 14 (0xe), region = 172 }
0x1a8a   :  { %4593 = vsyncpa [#allocation4], 1 }
0x1a8b   :  { %4595 = vsyncpa [#allocation4 + $0x1], 1 }

</bundles_post_ra>
